<compile_context>
chip_gen: v7x
topology: tpu7x:2x2x1
jax: 0.10.0
libtpu: 0.0.40
codegen_flags: <defaults>
</compile_context>

<pallas_src>
import numpy as np
import jax
import jax.numpy as jnp
from jax import lax
from jax.experimental import pallas as pl
from jax.experimental.pallas import tpu as pltpu

# ---- small, shape-consistent config (synthetic; not the 512/2048/10000 defaults) ----
VOCAB = 128          # lane-dense output (multiple of 128)
MAX_LEN = 8
DIM_HIDDEN = 32
DIM_WORD = 32
DIM_VID = 64
BATCH = 2
N_FRAMES = 8
B_PAD = 8            # pad batch to one full sublane tile


def _gru_step(x, h, w_ih, w_hh, b_ih, b_hh):
    """PyTorch nn.GRU single-layer cell (packed (Din,3H) weights). Reference only."""
    H = h.shape[-1]
    gi = jnp.dot(x, w_ih, preferred_element_type=jnp.float32) + b_ih  # (B, 3H)
    gh = jnp.dot(h, w_hh, preferred_element_type=jnp.float32) + b_hh  # (B, 3H)
    r = jax.nn.sigmoid(gi[:, :H] + gh[:, :H])
    z = jax.nn.sigmoid(gi[:, H:2 * H] + gh[:, H:2 * H])
    n = jnp.tanh(gi[:, 2 * H:] + r * gh[:, 2 * H:])
    return (1.0 - z) * n + z * h


def s2vt_kernel(vid_ref, act_ref, tgt_ref,
                wih1_ref, whh1_ref, bih1_ref, bhh1_ref,
                wih2h_ref, wih2w_ref, whh2_ref, bih2_ref, bhh2_ref,
                wout_ref, bout_ref,
                out_ref,
                gi1_s, t2_s, h2_all_s):
    BP = act_ref.shape[0]                       # padded batch (8)
    T = vid_ref.shape[0] // BP
    L1 = tgt_ref.shape[0] // BP
    H = whh1_ref.shape[0]
    H3 = 3 * H
    f32 = jnp.float32

    # ---- packed recurrent weights, loaded once (3H = 96 lanes each) ----
    whh1 = whh1_ref[...]                        # (H, 3H)
    whh2 = whh2_ref[...]                        # (H, 3H)
    wih2h = wih2h_ref[...]                      # (H, 3H)  h1-rows of rnn2 w_ih

    # ---- hoisted bias broadcasts ----
    bhh1_b = jnp.broadcast_to(bhh1_ref[...], (BP, H3))
    bhh2_b = jnp.broadcast_to(bhh2_ref[...], (BP, H3))
    # decoder rnn1 input is all-zeros -> its input-side gates are a constant bias
    d1_gi = jnp.broadcast_to(bih1_ref[...], (BP, H3))

    # ---- hoisted, h-independent precomputes staged into VMEM scratch ----
    # encoder video input gates for all T frames: one packed matmul
    gi1_s[...] = (jnp.dot(vid_ref[...], wih1_ref[...], preferred_element_type=f32)
                  + bih1_ref[...])                                  # (T*BP, 3H)
    # rnn2 word-part: loop-invariant action embedding part (small, kept live) ...
    a2 = (jnp.dot(act_ref[...], wih2w_ref[...], preferred_element_type=f32)
          + bih2_ref[...])                                          # (BP, 3H)
    # ... and all decoder teacher-forced words, staged in scratch
    t2_s[...] = (jnp.dot(tgt_ref[...], wih2w_ref[...], preferred_element_type=f32)
                 + bih2_ref[...])                                   # (L1*BP, 3H)

    def gru_core(gi, h, whh, bhh_b):
        """h-dependent half of a GRU step; gi already holds all input-side terms + b_ih.
        One packed (H,3H) matmul, one packed sigmoid over [r|z], blend as n + z*(h-n)."""
        gh = jnp.dot(h, whh, preferred_element_type=f32) + bhh_b    # (BP, 3H)
        rz = jax.nn.sigmoid(gi[:, :2 * H] + gh[:, :2 * H])          # (BP, 2H)
        r = rz[:, :H]
        z = rz[:, H:]
        n = jnp.tanh(gi[:, 2 * H:] + r * gh[:, 2 * H:])
        return n + z * (h - n)

    h1 = jnp.zeros((BP, H), f32)
    h2 = jnp.zeros((BP, H), f32)

    # -------- encoder pass over video frames (fully unrolled, static T) --------
    for t in range(T):
        gi1 = gi1_s[pl.ds(t * BP, BP), :]
        h1 = gru_core(gi1, h1, whh1, bhh1_b)
        gi2 = jnp.dot(h1, wih2h, preferred_element_type=f32) + a2
        h2 = gru_core(gi2, h2, whh2, bhh2_b)

    # -------- decoder (teacher forcing), max_len-1 steps (fully unrolled) --------
    for i in range(L1):
        h1 = gru_core(d1_gi, h1, whh1, bhh1_b)
        gi2 = (jnp.dot(h1, wih2h, preferred_element_type=f32)
               + t2_s[pl.ds(i * BP, BP), :])
        h2 = gru_core(gi2, h2, whh2, bhh2_b)
        h2_all_s[pl.ds(i * BP, BP), :] = h2

    # -------- one batched output projection + log_softmax + lane-dense store --------
    logits = (jnp.dot(h2_all_s[...], wout_ref[...], preferred_element_type=f32)
              + bout_ref[...])                                      # (L1*BP, V)
    m = jnp.max(logits, axis=1, keepdims=True)
    lse = jnp.log(jnp.sum(jnp.exp(logits - m), axis=1, keepdims=True)) + m
    out_ref[...] = logits - lse                                     # V = 128 lanes


def init_params(key):
    """Deterministic synthetic parameters matching the module's shapes (small dims)."""
    ks = jax.random.split(key, 16)
    H, W, Dv, V = DIM_HIDDEN, DIM_WORD, DIM_VID, VOCAB
    s = 1.0 / np.sqrt(H)

    def u(k, shape):
        return jax.random.uniform(k, shape, jnp.float32, -s, s)

    return dict(
        embedding=jax.random.normal(ks[0], (V, W), jnp.float32) * 0.1,
        # rnn1: GRU(dim_vid -> dim_hidden); weights stored transposed (Din, 3H), (r,z,n)
        w_ih1=u(ks[1], (Dv, 3 * H)), w_hh1=u(ks[2], (H, 3 * H)),
        b_ih1=u(ks[3], (1, 3 * H)), b_hh1=u(ks[4], (1, 3 * H)),
        # rnn2: GRU(dim_hidden + dim_word -> dim_hidden)
        w_ih2=u(ks[5], (H + W, 3 * H)), w_hh2=u(ks[6], (H, 3 * H)),
        b_ih2=u(ks[7], (1, 3 * H)), b_hh2=u(ks[8], (1, 3 * H)),
        # out: Linear(dim_hidden -> vocab), stored as (H, V)
        w_out=u(ks[9], (H, V)), b_out=u(ks[10], (1, V)),
    )


def s2vt_forward(params, vid_feats, action, target_variable):
    """Train-mode forward. Returns seq_probs (B, max_len-1, vocab); seq_preds is []."""
    B, T, Dv = vid_feats.shape
    H, W, V, L1 = DIM_HIDDEN, DIM_WORD, VOCAB, MAX_LEN - 1
    f32 = jnp.float32
    emb = params["embedding"]

    # ---- embeddings + batch padding to a full sublane tile (B_PAD = 8) ----
    act_emb = jnp.take(emb, action, axis=0).astype(f32)                     # (B, W)
    tgt_emb = jnp.take(emb, target_variable[:, :L1], axis=0).astype(f32)    # (B, L1, W)

    vid_p = jnp.zeros((B_PAD, T, Dv), f32).at[:B].set(vid_feats.astype(f32))
    act_p = jnp.zeros((B_PAD, W), f32).at[:B].set(act_emb)
    tgt_p = jnp.zeros((B_PAD, L1, W), f32).at[:B].set(tgt_emb)

    vid_flat = jnp.transpose(vid_p, (1, 0, 2)).reshape(T * B_PAD, Dv)       # (T*BP, Dv)
    tgt_flat = jnp.transpose(tgt_p, (1, 0, 2)).reshape(L1 * B_PAD, W)       # (L1*BP, W)

    # ---- keep weights gate-packed (r|z|n); split rnn2 input rows into h / word ----
    w_ih2 = params["w_ih2"]
    wih2_h, wih2_w = w_ih2[:H], w_ih2[H:]

    inputs = (vid_flat, act_p, tgt_flat,
              params["w_ih1"], params["w_hh1"], params["b_ih1"], params["b_hh1"],
              wih2_h, wih2_w, params["w_hh2"], params["b_ih2"], params["b_hh2"],
              params["w_out"], params["b_out"])

    vmem = pl.BlockSpec(memory_space=pltpu.MemorySpace.VMEM)
    probs_flat = pl.pallas_call(
        s2vt_kernel,
        out_shape=jax.ShapeDtypeStruct((L1 * B_PAD, V), jnp.float32),
        in_specs=[vmem] * len(inputs),
        out_specs=vmem,
        scratch_shapes=[
            pltpu.VMEM((T * B_PAD, 3 * H), jnp.float32),   # encoder gi1 precompute
            pltpu.VMEM((L1 * B_PAD, 3 * H), jnp.float32),  # decoder word-gate precompute
            pltpu.VMEM((L1 * B_PAD, H), jnp.float32),      # stacked decoder h2 states
        ],
    )(*inputs)

    probs_tm = probs_flat.reshape(L1, B_PAD, V)[:, :B, :]                   # (L1, B, V)
    seq_probs = jnp.transpose(probs_tm, (1, 0, 2))                          # (B, L1, V)
    return seq_probs


def s2vt_reference(params, vid_feats, action, target_variable):
    """Pure-JAX reference mirroring the PyTorch forward (train mode)."""
    B, T, Dv = vid_feats.shape
    emb = params["embedding"]
    act = jnp.take(emb, action, axis=0)
    h1 = jnp.zeros((B, DIM_HIDDEN), jnp.float32)
    h2 = jnp.zeros((B, DIM_HIDDEN), jnp.float32)
    for t in range(T):
        h1 = _gru_step(vid_feats[:, t, :], h1, params["w_ih1"], params["w_hh1"],
                       params["b_ih1"], params["b_hh1"])
        x2 = jnp.concatenate([h1, act], axis=1)
        h2 = _gru_step(x2, h2, params["w_ih2"], params["w_hh2"],
                       params["b_ih2"], params["b_hh2"])
    probs = []
    zero_frame = jnp.zeros((B, Dv), jnp.float32)
    for i in range(MAX_LEN - 1):
        h1 = _gru_step(zero_frame, h1, params["w_ih1"], params["w_hh1"],
                       params["b_ih1"], params["b_hh1"])
        cw = jnp.take(emb, target_variable[:, i], axis=0)
        x2 = jnp.concatenate([h1, cw], axis=1)
        h2 = _gru_step(x2, h2, params["w_ih2"], params["w_hh2"],
                       params["b_ih2"], params["b_hh2"])
        logits = jnp.dot(h2, params["w_out"]) + params["b_out"]
        probs.append(jax.nn.log_softmax(logits, axis=1)[:, None, :])
    return jnp.concatenate(probs, axis=1)


if __name__ == "__main__":
    key = jax.random.PRNGKey(0)
    kp, kv, ka, kt = jax.random.split(key, 4)

    params = init_params(kp)
    vid_feats = jax.random.normal(kv, (BATCH, N_FRAMES, DIM_VID), jnp.float32)
    action = jax.random.randint(ka, (BATCH,), 0, VOCAB)
    target_variable = jax.random.randint(kt, (BATCH, MAX_LEN), 0, VOCAB)

    seq_probs = jax.block_until_ready(
        s2vt_forward(params, vid_feats, action, target_variable))
    ref = jax.block_until_ready(
        s2vt_reference(params, vid_feats, action, target_variable))

    assert seq_probs.shape == (BATCH, MAX_LEN - 1, VOCAB)
    np.testing.assert_allclose(np.asarray(seq_probs), np.asarray(ref),
                               rtol=1e-5, atol=1e-5)
    print("KERNEL_OK")
</pallas_src>

<mosaic_0001>
module attributes {stable_mosaic.version = 11 : i64} {
  func.func @s2vt_kernel(%arg0: memref<64x64xf32, #tpu.memory_space<vmem>>, %arg1: memref<8x32xf32, #tpu.memory_space<vmem>>, %arg2: memref<56x32xf32, #tpu.memory_space<vmem>>, %arg3: memref<64x96xf32, #tpu.memory_space<vmem>>, %arg4: memref<32x96xf32, #tpu.memory_space<vmem>>, %arg5: memref<1x96xf32, #tpu.memory_space<vmem>>, %arg6: memref<1x96xf32, #tpu.memory_space<vmem>>, %arg7: memref<32x96xf32, #tpu.memory_space<vmem>>, %arg8: memref<32x96xf32, #tpu.memory_space<vmem>>, %arg9: memref<32x96xf32, #tpu.memory_space<vmem>>, %arg10: memref<1x96xf32, #tpu.memory_space<vmem>>, %arg11: memref<1x96xf32, #tpu.memory_space<vmem>>, %arg12: memref<32x128xf32, #tpu.memory_space<vmem>>, %arg13: memref<1x128xf32, #tpu.memory_space<vmem>>, %arg14: memref<56x128xf32, #tpu.memory_space<vmem>>, %arg15: memref<64x96xf32, #tpu.memory_space<vmem>>, %arg16: memref<56x96xf32, #tpu.memory_space<vmem>>, %arg17: memref<56x32xf32, #tpu.memory_space<vmem>>) attributes {dimension_semantics = [], scalar_prefetch = 0 : i64, scratch_operands = 3 : i64, tpu.core_type = #tpu.core_type<tc>} {
    %c0 = arith.constant 0 : index
    %c0_0 = arith.constant 0 : index
    %0 = vector.load %arg4[%c0, %c0_0] : memref<32x96xf32, #tpu.memory_space<vmem>>, vector<32x96xf32>
    %c0_1 = arith.constant 0 : index
    %c0_2 = arith.constant 0 : index
    %1 = vector.load %arg9[%c0_1, %c0_2] : memref<32x96xf32, #tpu.memory_space<vmem>>, vector<32x96xf32>
    %c0_3 = arith.constant 0 : index
    %c0_4 = arith.constant 0 : index
    %2 = vector.load %arg7[%c0_3, %c0_4] : memref<32x96xf32, #tpu.memory_space<vmem>>, vector<32x96xf32>
    %c0_5 = arith.constant 0 : index
    %c0_6 = arith.constant 0 : index
    %3 = vector.load %arg6[%c0_5, %c0_6] : memref<1x96xf32, #tpu.memory_space<vmem>>, vector<1x96xf32>
    %4 = vector.shape_cast %3 : vector<1x96xf32> to vector<1x96xf32>
    %5 = vector.broadcast %4 : vector<1x96xf32> to vector<8x96xf32>
    %c0_7 = arith.constant 0 : index
    %c0_8 = arith.constant 0 : index
    %6 = vector.load %arg11[%c0_7, %c0_8] : memref<1x96xf32, #tpu.memory_space<vmem>>, vector<1x96xf32>
    %7 = vector.shape_cast %6 : vector<1x96xf32> to vector<1x96xf32>
    %8 = vector.broadcast %7 : vector<1x96xf32> to vector<8x96xf32>
    %c0_9 = arith.constant 0 : index
    %c0_10 = arith.constant 0 : index
    %9 = vector.load %arg5[%c0_9, %c0_10] : memref<1x96xf32, #tpu.memory_space<vmem>>, vector<1x96xf32>
    %10 = vector.shape_cast %9 : vector<1x96xf32> to vector<1x96xf32>
    %11 = vector.broadcast %10 : vector<1x96xf32> to vector<8x96xf32>
    %c0_11 = arith.constant 0 : index
    %c0_12 = arith.constant 0 : index
    %12 = vector.load %arg0[%c0_11, %c0_12] : memref<64x64xf32, #tpu.memory_space<vmem>>, vector<64x64xf32>
    %c0_13 = arith.constant 0 : index
    %c0_14 = arith.constant 0 : index
    %13 = vector.load %arg3[%c0_13, %c0_14] : memref<64x96xf32, #tpu.memory_space<vmem>>, vector<64x96xf32>
    %cst = arith.constant dense<0.000000e+00> : vector<64x96xf32>
    %14 = tpu.matmul %12, %13, %cst {dimension_numbers = #tpu.dot_dimension_numbers<[1], [0], [0], [1], [0, 0, 1, 1], [], []>} : vector<64x64xf32>, vector<64x96xf32>, vector<64x96xf32> -> vector<64x96xf32>
    %c0_15 = arith.constant 0 : index
    %c0_16 = arith.constant 0 : index
    %15 = vector.load %arg5[%c0_15, %c0_16] : memref<1x96xf32, #tpu.memory_space<vmem>>, vector<1x96xf32>
    %16 = vector.broadcast %15 : vector<1x96xf32> to vector<64x96xf32>
    %17 = arith.addf %14, %16 : vector<64x96xf32>
    %c0_17 = arith.constant 0 : index
    %c0_18 = arith.constant 0 : index
    %18 = vector.load %arg15[%c0_17, %c0_18] : memref<64x96xf32, #tpu.memory_space<vmem>>, vector<64x96xf32>
    tpu.vector_store %arg15[%c0_17, %c0_18], %17 {strides = array<i32>} : memref<64x96xf32, #tpu.memory_space<vmem>>, vector<64x96xf32>,
    %c0_19 = arith.constant 0 : index
    %c0_20 = arith.constant 0 : index
    %19 = vector.load %arg1[%c0_19, %c0_20] : memref<8x32xf32, #tpu.memory_space<vmem>>, vector<8x32xf32>
    %c0_21 = arith.constant 0 : index
    %c0_22 = arith.constant 0 : index
    %20 = vector.load %arg8[%c0_21, %c0_22] : memref<32x96xf32, #tpu.memory_space<vmem>>, vector<32x96xf32>
    %cst_23 = arith.constant dense<0.000000e+00> : vector<8x96xf32>
    %21 = tpu.matmul %19, %20, %cst_23 {dimension_numbers = #tpu.dot_dimension_numbers<[1], [0], [0], [1], [0, 0, 1, 1], [], []>} : vector<8x32xf32>, vector<32x96xf32>, vector<8x96xf32> -> vector<8x96xf32>
    %c0_24 = arith.constant 0 : index
    %c0_25 = arith.constant 0 : index
    %22 = vector.load %arg10[%c0_24, %c0_25] : memref<1x96xf32, #tpu.memory_space<vmem>>, vector<1x96xf32>
    %23 = vector.broadcast %22 : vector<1x96xf32> to vector<8x96xf32>
    %24 = arith.addf %21, %23 : vector<8x96xf32>
    %c0_26 = arith.constant 0 : index
    %c0_27 = arith.constant 0 : index
    %25 = vector.load %arg2[%c0_26, %c0_27] : memref<56x32xf32, #tpu.memory_space<vmem>>, vector<56x32xf32>
    %c0_28 = arith.constant 0 : index
    %c0_29 = arith.constant 0 : index
    %26 = vector.load %arg8[%c0_28, %c0_29] : memref<32x96xf32, #tpu.memory_space<vmem>>, vector<32x96xf32>
    %cst_30 = arith.constant dense<0.000000e+00> : vector<56x96xf32>
    %27 = tpu.matmul %25, %26, %cst_30 {dimension_numbers = #tpu.dot_dimension_numbers<[1], [0], [0], [1], [0, 0, 1, 1], [], []>} : vector<56x32xf32>, vector<32x96xf32>, vector<56x96xf32> -> vector<56x96xf32>
    %c0_31 = arith.constant 0 : index
    %c0_32 = arith.constant 0 : index
    %28 = vector.load %arg10[%c0_31, %c0_32] : memref<1x96xf32, #tpu.memory_space<vmem>>, vector<1x96xf32>
    %29 = vector.broadcast %28 : vector<1x96xf32> to vector<56x96xf32>
    %30 = arith.addf %27, %29 : vector<56x96xf32>
    %c0_33 = arith.constant 0 : index
    %c0_34 = arith.constant 0 : index
    %31 = vector.load %arg16[%c0_33, %c0_34] : memref<56x96xf32, #tpu.memory_space<vmem>>, vector<56x96xf32>
    tpu.vector_store %arg16[%c0_33, %c0_34], %30 {strides = array<i32>} : memref<56x96xf32, #tpu.memory_space<vmem>>, vector<56x96xf32>,
    %cst_35 = arith.constant 0.000000e+00 : f32
    %32 = vector.broadcast %cst_35 : f32 to vector<8x32xf32>
    %cst_36 = arith.constant 0.000000e+00 : f32
    %33 = vector.broadcast %cst_36 : f32 to vector<8x32xf32>
    %c0_37 = arith.constant 0 : index
    %c0_38 = arith.constant 0 : index
    %34 = vector.load %arg15[%c0_37, %c0_38] : memref<64x96xf32, #tpu.memory_space<vmem>>, vector<8x96xf32>
    %cst_39 = arith.constant dense<0.000000e+00> : vector<8x96xf32>
    %35 = tpu.matmul %32, %0, %cst_39 {dimension_numbers = #tpu.dot_dimension_numbers<[1], [0], [0], [1], [0, 0, 1, 1], [], []>} : vector<8x32xf32>, vector<32x96xf32>, vector<8x96xf32> -> vector<8x96xf32>
    %36 = arith.addf %35, %5 : vector<8x96xf32>
    %37 = vector.extract_strided_slice %34 {offsets = [0, 0], sizes = [8, 64], strides = [1, 1]} : vector<8x96xf32> to vector<8x64xf32>
    %38 = vector.extract_strided_slice %36 {offsets = [0, 0], sizes = [8, 64], strides = [1, 1]} : vector<8x96xf32> to vector<8x64xf32>
    %39 = arith.addf %37, %38 : vector<8x64xf32>
    %40 = arith.negf %39 : vector<8x64xf32>
    %41 = math.exp %40 : vector<8x64xf32>
    %cst_40 = arith.constant 1.000000e+00 : f32
    %42 = vector.broadcast %cst_40 : f32 to vector<8x64xf32>
    %43 = arith.addf %42, %41 : vector<8x64xf32>
    %44 = arith.divf %42, %43 : vector<8x64xf32>
    %45 = vector.extract_strided_slice %44 {offsets = [0, 0], sizes = [8, 32], strides = [1, 1]} : vector<8x64xf32> to vector<8x32xf32>
    %46 = vector.extract_strided_slice %44 {offsets = [0, 32], sizes = [8, 32], strides = [1, 1]} : vector<8x64xf32> to vector<8x32xf32>
    %47 = vector.extract_strided_slice %34 {offsets = [0, 64], sizes = [8, 32], strides = [1, 1]} : vector<8x96xf32> to vector<8x32xf32>
    %48 = vector.extract_strided_slice %36 {offsets = [0, 64], sizes = [8, 32], strides = [1, 1]} : vector<8x96xf32> to vector<8x32xf32>
    %49 = arith.mulf %45, %48 : vector<8x32xf32>
    %50 = arith.addf %47, %49 : vector<8x32xf32>
    %51 = math.tanh %50 : vector<8x32xf32>
    %52 = arith.subf %32, %51 : vector<8x32xf32>
    %53 = arith.mulf %46, %52 : vector<8x32xf32>
    %54 = arith.addf %51, %53 : vector<8x32xf32>
    %cst_41 = arith.constant dense<0.000000e+00> : vector<8x96xf32>
    %55 = tpu.matmul %54, %2, %cst_41 {dimension_numbers = #tpu.dot_dimension_numbers<[1], [0], [0], [1], [0, 0, 1, 1], [], []>} : vector<8x32xf32>, vector<32x96xf32>, vector<8x96xf32> -> vector<8x96xf32>
    %56 = arith.addf %55, %24 : vector<8x96xf32>
    %cst_42 = arith.constant dense<0.000000e+00> : vector<8x96xf32>
    %57 = tpu.matmul %33, %1, %cst_42 {dimension_numbers = #tpu.dot_dimension_numbers<[1], [0], [0], [1], [0, 0, 1, 1], [], []>} : vector<8x32xf32>, vector<32x96xf32>, vector<8x96xf32> -> vector<8x96xf32>
    %58 = arith.addf %57, %8 : vector<8x96xf32>
    %59 = vector.extract_strided_slice %56 {offsets = [0, 0], sizes = [8, 64], strides = [1, 1]} : vector<8x96xf32> to vector<8x64xf32>
    %60 = vector.extract_strided_slice %58 {offsets = [0, 0], sizes = [8, 64], strides = [1, 1]} : vector<8x96xf32> to vector<8x64xf32>
    %61 = arith.addf %59, %60 : vector<8x64xf32>
    %62 = arith.negf %61 : vector<8x64xf32>
    %63 = math.exp %62 : vector<8x64xf32>
    %cst_43 = arith.constant 1.000000e+00 : f32
    %64 = vector.broadcast %cst_43 : f32 to vector<8x64xf32>
    %65 = arith.addf %64, %63 : vector<8x64xf32>
    %66 = arith.divf %64, %65 : vector<8x64xf32>
    %67 = vector.extract_strided_slice %66 {offsets = [0, 0], sizes = [8, 32], strides = [1, 1]} : vector<8x64xf32> to vector<8x32xf32>
    %68 = vector.extract_strided_slice %66 {offsets = [0, 32], sizes = [8, 32], strides = [1, 1]} : vector<8x64xf32> to vector<8x32xf32>
    %69 = vector.extract_strided_slice %56 {offsets = [0, 64], sizes = [8, 32], strides = [1, 1]} : vector<8x96xf32> to vector<8x32xf32>
    %70 = vector.extract_strided_slice %58 {offsets = [0, 64], sizes = [8, 32], strides = [1, 1]} : vector<8x96xf32> to vector<8x32xf32>
    %71 = arith.mulf %67, %70 : vector<8x32xf32>
    %72 = arith.addf %69, %71 : vector<8x32xf32>
    %73 = math.tanh %72 : vector<8x32xf32>
    %74 = arith.subf %33, %73 : vector<8x32xf32>
    %75 = arith.mulf %68, %74 : vector<8x32xf32>
    %76 = arith.addf %73, %75 : vector<8x32xf32>
    %c8 = arith.constant 8 : index
    %c0_44 = arith.constant 0 : index
    %77 = vector.load %arg15[%c8, %c0_44] : memref<64x96xf32, #tpu.memory_space<vmem>>, vector<8x96xf32>
    %cst_45 = arith.constant dense<0.000000e+00> : vector<8x96xf32>
    %78 = tpu.matmul %54, %0, %cst_45 {dimension_numbers = #tpu.dot_dimension_numbers<[1], [0], [0], [1], [0, 0, 1, 1], [], []>} : vector<8x32xf32>, vector<32x96xf32>, vector<8x96xf32> -> vector<8x96xf32>
    %79 = arith.addf %78, %5 : vector<8x96xf32>
    %80 = vector.extract_strided_slice %77 {offsets = [0, 0], sizes = [8, 64], strides = [1, 1]} : vector<8x96xf32> to vector<8x64xf32>
    %81 = vector.extract_strided_slice %79 {offsets = [0, 0], sizes = [8, 64], strides = [1, 1]} : vector<8x96xf32> to vector<8x64xf32>
    %82 = arith.addf %80, %81 : vector<8x64xf32>
    %83 = arith.negf %82 : vector<8x64xf32>
    %84 = math.exp %83 : vector<8x64xf32>
    %cst_46 = arith.constant 1.000000e+00 : f32
    %85 = vector.broadcast %cst_46 : f32 to vector<8x64xf32>
    %86 = arith.addf %85, %84 : vector<8x64xf32>
    %87 = arith.divf %85, %86 : vector<8x64xf32>
    %88 = vector.extract_strided_slice %87 {offsets = [0, 0], sizes = [8, 32], strides = [1, 1]} : vector<8x64xf32> to vector<8x32xf32>
    %89 = vector.extract_strided_slice %87 {offsets = [0, 32], sizes = [8, 32], strides = [1, 1]} : vector<8x64xf32> to vector<8x32xf32>
    %90 = vector.extract_strided_slice %77 {offsets = [0, 64], sizes = [8, 32], strides = [1, 1]} : vector<8x96xf32> to vector<8x32xf32>
    %91 = vector.extract_strided_slice %79 {offsets = [0, 64], sizes = [8, 32], strides = [1, 1]} : vector<8x96xf32> to vector<8x32xf32>
    %92 = arith.mulf %88, %91 : vector<8x32xf32>
    %93 = arith.addf %90, %92 : vector<8x32xf32>
    %94 = math.tanh %93 : vector<8x32xf32>
    %95 = arith.subf %54, %94 : vector<8x32xf32>
    %96 = arith.mulf %89, %95 : vector<8x32xf32>
    %97 = arith.addf %94, %96 : vector<8x32xf32>
    %cst_47 = arith.constant dense<0.000000e+00> : vector<8x96xf32>
    %98 = tpu.matmul %97, %2, %cst_47 {dimension_numbers = #tpu.dot_dimension_numbers<[1], [0], [0], [1], [0, 0, 1, 1], [], []>} : vector<8x32xf32>, vector<32x96xf32>, vector<8x96xf32> -> vector<8x96xf32>
    %99 = arith.addf %98, %24 : vector<8x96xf32>
    %cst_48 = arith.constant dense<0.000000e+00> : vector<8x96xf32>
    %100 = tpu.matmul %76, %1, %cst_48 {dimension_numbers = #tpu.dot_dimension_numbers<[1], [0], [0], [1], [0, 0, 1, 1], [], []>} : vector<8x32xf32>, vector<32x96xf32>, vector<8x96xf32> -> vector<8x96xf32>
    %101 = arith.addf %100, %8 : vector<8x96xf32>
    %102 = vector.extract_strided_slice %99 {offsets = [0, 0], sizes = [8, 64], strides = [1, 1]} : vector<8x96xf32> to vector<8x64xf32>
    %103 = vector.extract_strided_slice %101 {offsets = [0, 0], sizes = [8, 64], strides = [1, 1]} : vector<8x96xf32> to vector<8x64xf32>
    %104 = arith.addf %102, %103 : vector<8x64xf32>
    %105 = arith.negf %104 : vector<8x64xf32>
    %106 = math.exp %105 : vector<8x64xf32>
    %cst_49 = arith.constant 1.000000e+00 : f32
    %107 = vector.broadcast %cst_49 : f32 to vector<8x64xf32>
    %108 = arith.addf %107, %106 : vector<8x64xf32>
    %109 = arith.divf %107, %108 : vector<8x64xf32>
    %110 = vector.extract_strided_slice %109 {offsets = [0, 0], sizes = [8, 32], strides = [1, 1]} : vector<8x64xf32> to vector<8x32xf32>
    %111 = vector.extract_strided_slice %109 {offsets = [0, 32], sizes = [8, 32], strides = [1, 1]} : vector<8x64xf32> to vector<8x32xf32>
    %112 = vector.extract_strided_slice %99 {offsets = [0, 64], sizes = [8, 32], strides = [1, 1]} : vector<8x96xf32> to vector<8x32xf32>
    %113 = vector.extract_strided_slice %101 {offsets = [0, 64], sizes = [8, 32], strides = [1, 1]} : vector<8x96xf32> to vector<8x32xf32>
    %114 = arith.mulf %110, %113 : vector<8x32xf32>
    %115 = arith.addf %112, %114 : vector<8x32xf32>
    %116 = math.tanh %115 : vector<8x32xf32>
    %117 = arith.subf %76, %116 : vector<8x32xf32>
    %118 = arith.mulf %111, %117 : vector<8x32xf32>
    %119 = arith.addf %116, %118 : vector<8x32xf32>
    %c16 = arith.constant 16 : index
    %c0_50 = arith.constant 0 : index
    %120 = vector.load %arg15[%c16, %c0_50] : memref<64x96xf32, #tpu.memory_space<vmem>>, vector<8x96xf32>
    %cst_51 = arith.constant dense<0.000000e+00> : vector<8x96xf32>
    %121 = tpu.matmul %97, %0, %cst_51 {dimension_numbers = #tpu.dot_dimension_numbers<[1], [0], [0], [1], [0, 0, 1, 1], [], []>} : vector<8x32xf32>, vector<32x96xf32>, vector<8x96xf32> -> vector<8x96xf32>
    %122 = arith.addf %121, %5 : vector<8x96xf32>
    %123 = vector.extract_strided_slice %120 {offsets = [0, 0], sizes = [8, 64], strides = [1, 1]} : vector<8x96xf32> to vector<8x64xf32>
    %124 = vector.extract_strided_slice %122 {offsets = [0, 0], sizes = [8, 64], strides = [1, 1]} : vector<8x96xf32> to vector<8x64xf32>
    %125 = arith.addf %123, %124 : vector<8x64xf32>
    %126 = arith.negf %125 : vector<8x64xf32>
    %127 = math.exp %126 : vector<8x64xf32>
    %cst_52 = arith.constant 1.000000e+00 : f32
    %128 = vector.broadcast %cst_52 : f32 to vector<8x64xf32>
    %129 = arith.addf %128, %127 : vector<8x64xf32>
    %130 = arith.divf %128, %129 : vector<8x64xf32>
    %131 = vector.extract_strided_slice %130 {offsets = [0, 0], sizes = [8, 32], strides = [1, 1]} : vector<8x64xf32> to vector<8x32xf32>
    %132 = vector.extract_strided_slice %130 {offsets = [0, 32], sizes = [8, 32], strides = [1, 1]} : vector<8x64xf32> to vector<8x32xf32>
    %133 = vector.extract_strided_slice %120 {offsets = [0, 64], sizes = [8, 32], strides = [1, 1]} : vector<8x96xf32> to vector<8x32xf32>
    %134 = vector.extract_strided_slice %122 {offsets = [0, 64], sizes = [8, 32], strides = [1, 1]} : vector<8x96xf32> to vector<8x32xf32>
    %135 = arith.mulf %131, %134 : vector<8x32xf32>
    %136 = arith.addf %133, %135 : vector<8x32xf32>
    %137 = math.tanh %136 : vector<8x32xf32>
    %138 = arith.subf %97, %137 : vector<8x32xf32>
    %139 = arith.mulf %132, %138 : vector<8x32xf32>
    %140 = arith.addf %137, %139 : vector<8x32xf32>
    %cst_53 = arith.constant dense<0.000000e+00> : vector<8x96xf32>
    %141 = tpu.matmul %140, %2, %cst_53 {dimension_numbers = #tpu.dot_dimension_numbers<[1], [0], [0], [1], [0, 0, 1, 1], [], []>} : vector<8x32xf32>, vector<32x96xf32>, vector<8x96xf32> -> vector<8x96xf32>
    %142 = arith.addf %141, %24 : vector<8x96xf32>
    %cst_54 = arith.constant dense<0.000000e+00> : vector<8x96xf32>
    %143 = tpu.matmul %119, %1, %cst_54 {dimension_numbers = #tpu.dot_dimension_numbers<[1], [0], [0], [1], [0, 0, 1, 1], [], []>} : vector<8x32xf32>, vector<32x96xf32>, vector<8x96xf32> -> vector<8x96xf32>
    %144 = arith.addf %143, %8 : vector<8x96xf32>
    %145 = vector.extract_strided_slice %142 {offsets = [0, 0], sizes = [8, 64], strides = [1, 1]} : vector<8x96xf32> to vector<8x64xf32>
    %146 = vector.extract_strided_slice %144 {offsets = [0, 0], sizes = [8, 64], strides = [1, 1]} : vector<8x96xf32> to vector<8x64xf32>
    %147 = arith.addf %145, %146 : vector<8x64xf32>
    %148 = arith.negf %147 : vector<8x64xf32>
    %149 = math.exp %148 : vector<8x64xf32>
    %cst_55 = arith.constant 1.000000e+00 : f32
    %150 = vector.broadcast %cst_55 : f32 to vector<8x64xf32>
    %151 = arith.addf %150, %149 : vector<8x64xf32>
    %152 = arith.divf %150, %151 : vector<8x64xf32>
    %153 = vector.extract_strided_slice %152 {offsets = [0, 0], sizes = [8, 32], strides = [1, 1]} : vector<8x64xf32> to vector<8x32xf32>
    %154 = vector.extract_strided_slice %152 {offsets = [0, 32], sizes = [8, 32], strides = [1, 1]} : vector<8x64xf32> to vector<8x32xf32>
    %155 = vector.extract_strided_slice %142 {offsets = [0, 64], sizes = [8, 32], strides = [1, 1]} : vector<8x96xf32> to vector<8x32xf32>
    %156 = vector.extract_strided_slice %144 {offsets = [0, 64], sizes = [8, 32], strides = [1, 1]} : vector<8x96xf32> to vector<8x32xf32>
    %157 = arith.mulf %153, %156 : vector<8x32xf32>
    %158 = arith.addf %155, %157 : vector<8x32xf32>
    %159 = math.tanh %158 : vector<8x32xf32>
    %160 = arith.subf %119, %159 : vector<8x32xf32>
    %161 = arith.mulf %154, %160 : vector<8x32xf32>
    %162 = arith.addf %159, %161 : vector<8x32xf32>
    %c24 = arith.constant 24 : index
    %c0_56 = arith.constant 0 : index
    %163 = vector.load %arg15[%c24, %c0_56] : memref<64x96xf32, #tpu.memory_space<vmem>>, vector<8x96xf32>
    %cst_57 = arith.constant dense<0.000000e+00> : vector<8x96xf32>
    %164 = tpu.matmul %140, %0, %cst_57 {dimension_numbers = #tpu.dot_dimension_numbers<[1], [0], [0], [1], [0, 0, 1, 1], [], []>} : vector<8x32xf32>, vector<32x96xf32>, vector<8x96xf32> -> vector<8x96xf32>
    %165 = arith.addf %164, %5 : vector<8x96xf32>
    %166 = vector.extract_strided_slice %163 {offsets = [0, 0], sizes = [8, 64], strides = [1, 1]} : vector<8x96xf32> to vector<8x64xf32>
    %167 = vector.extract_strided_slice %165 {offsets = [0, 0], sizes = [8, 64], strides = [1, 1]} : vector<8x96xf32> to vector<8x64xf32>
    %168 = arith.addf %166, %167 : vector<8x64xf32>
    %169 = arith.negf %168 : vector<8x64xf32>
    %170 = math.exp %169 : vector<8x64xf32>
    %cst_58 = arith.constant 1.000000e+00 : f32
    %171 = vector.broadcast %cst_58 : f32 to vector<8x64xf32>
    %172 = arith.addf %171, %170 : vector<8x64xf32>
    %173 = arith.divf %171, %172 : vector<8x64xf32>
    %174 = vector.extract_strided_slice %173 {offsets = [0, 0], sizes = [8, 32], strides = [1, 1]} : vector<8x64xf32> to vector<8x32xf32>
    %175 = vector.extract_strided_slice %173 {offsets = [0, 32], sizes = [8, 32], strides = [1, 1]} : vector<8x64xf32> to vector<8x32xf32>
    %176 = vector.extract_strided_slice %163 {offsets = [0, 64], sizes = [8, 32], strides = [1, 1]} : vector<8x96xf32> to vector<8x32xf32>
    %177 = vector.extract_strided_slice %165 {offsets = [0, 64], sizes = [8, 32], strides = [1, 1]} : vector<8x96xf32> to vector<8x32xf32>
    %178 = arith.mulf %174, %177 : vector<8x32xf32>
    %179 = arith.addf %176, %178 : vector<8x32xf32>
    %180 = math.tanh %179 : vector<8x32xf32>
    %181 = arith.subf %140, %180 : vector<8x32xf32>
    %182 = arith.mulf %175, %181 : vector<8x32xf32>
    %183 = arith.addf %180, %182 : vector<8x32xf32>
    %cst_59 = arith.constant dense<0.000000e+00> : vector<8x96xf32>
    %184 = tpu.matmul %183, %2, %cst_59 {dimension_numbers = #tpu.dot_dimension_numbers<[1], [0], [0], [1], [0, 0, 1, 1], [], []>} : vector<8x32xf32>, vector<32x96xf32>, vector<8x96xf32> -> vector<8x96xf32>
    %185 = arith.addf %184, %24 : vector<8x96xf32>
    %cst_60 = arith.constant dense<0.000000e+00> : vector<8x96xf32>
    %186 = tpu.matmul %162, %1, %cst_60 {dimension_numbers = #tpu.dot_dimension_numbers<[1], [0], [0], [1], [0, 0, 1, 1], [], []>} : vector<8x32xf32>, vector<32x96xf32>, vector<8x96xf32> -> vector<8x96xf32>
    %187 = arith.addf %186, %8 : vector<8x96xf32>
    %188 = vector.extract_strided_slice %185 {offsets = [0, 0], sizes = [8, 64], strides = [1, 1]} : vector<8x96xf32> to vector<8x64xf32>
    %189 = vector.extract_strided_slice %187 {offsets = [0, 0], sizes = [8, 64], strides = [1, 1]} : vector<8x96xf32> to vector<8x64xf32>
    %190 = arith.addf %188, %189 : vector<8x64xf32>
    %191 = arith.negf %190 : vector<8x64xf32>
    %192 = math.exp %191 : vector<8x64xf32>
    %cst_61 = arith.constant 1.000000e+00 : f32
    %193 = vector.broadcast %cst_61 : f32 to vector<8x64xf32>
    %194 = arith.addf %193, %192 : vector<8x64xf32>
    %195 = arith.divf %193, %194 : vector<8x64xf32>
    %196 = vector.extract_strided_slice %195 {offsets = [0, 0], sizes = [8, 32], strides = [1, 1]} : vector<8x64xf32> to vector<8x32xf32>
    %197 = vector.extract_strided_slice %195 {offsets = [0, 32], sizes = [8, 32], strides = [1, 1]} : vector<8x64xf32> to vector<8x32xf32>
    %198 = vector.extract_strided_slice %185 {offsets = [0, 64], sizes = [8, 32], strides = [1, 1]} : vector<8x96xf32> to vector<8x32xf32>
    %199 = vector.extract_strided_slice %187 {offsets = [0, 64], sizes = [8, 32], strides = [1, 1]} : vector<8x96xf32> to vector<8x32xf32>
    %200 = arith.mulf %196, %199 : vector<8x32xf32>
    %201 = arith.addf %198, %200 : vector<8x32xf32>
    %202 = math.tanh %201 : vector<8x32xf32>
    %203 = arith.subf %162, %202 : vector<8x32xf32>
    %204 = arith.mulf %197, %203 : vector<8x32xf32>
    %205 = arith.addf %202, %204 : vector<8x32xf32>
    %c32 = arith.constant 32 : index
    %c0_62 = arith.constant 0 : index
    %206 = vector.load %arg15[%c32, %c0_62] : memref<64x96xf32, #tpu.memory_space<vmem>>, vector<8x96xf32>
    %cst_63 = arith.constant dense<0.000000e+00> : vector<8x96xf32>
    %207 = tpu.matmul %183, %0, %cst_63 {dimension_numbers = #tpu.dot_dimension_numbers<[1], [0], [0], [1], [0, 0, 1, 1], [], []>} : vector<8x32xf32>, vector<32x96xf32>, vector<8x96xf32> -> vector<8x96xf32>
    %208 = arith.addf %207, %5 : vector<8x96xf32>
    %209 = vector.extract_strided_slice %206 {offsets = [0, 0], sizes = [8, 64], strides = [1, 1]} : vector<8x96xf32> to vector<8x64xf32>
    %210 = vector.extract_strided_slice %208 {offsets = [0, 0], sizes = [8, 64], strides = [1, 1]} : vector<8x96xf32> to vector<8x64xf32>
    %211 = arith.addf %209, %210 : vector<8x64xf32>
    %212 = arith.negf %211 : vector<8x64xf32>
    %213 = math.exp %212 : vector<8x64xf32>
    %cst_64 = arith.constant 1.000000e+00 : f32
    %214 = vector.broadcast %cst_64 : f32 to vector<8x64xf32>
    %215 = arith.addf %214, %213 : vector<8x64xf32>
    %216 = arith.divf %214, %215 : vector<8x64xf32>
    %217 = vector.extract_strided_slice %216 {offsets = [0, 0], sizes = [8, 32], strides = [1, 1]} : vector<8x64xf32> to vector<8x32xf32>
    %218 = vector.extract_strided_slice %216 {offsets = [0, 32], sizes = [8, 32], strides = [1, 1]} : vector<8x64xf32> to vector<8x32xf32>
    %219 = vector.extract_strided_slice %206 {offsets = [0, 64], sizes = [8, 32], strides = [1, 1]} : vector<8x96xf32> to vector<8x32xf32>
    %220 = vector.extract_strided_slice %208 {offsets = [0, 64], sizes = [8, 32], strides = [1, 1]} : vector<8x96xf32> to vector<8x32xf32>
    %221 = arith.mulf %217, %220 : vector<8x32xf32>
    %222 = arith.addf %219, %221 : vector<8x32xf32>
    %223 = math.tanh %222 : vector<8x32xf32>
    %224 = arith.subf %183, %223 : vector<8x32xf32>
    %225 = arith.mulf %218, %224 : vector<8x32xf32>
    %226 = arith.addf %223, %225 : vector<8x32xf32>
    %cst_65 = arith.constant dense<0.000000e+00> : vector<8x96xf32>
    %227 = tpu.matmul %226, %2, %cst_65 {dimension_numbers = #tpu.dot_dimension_numbers<[1], [0], [0], [1], [0, 0, 1, 1], [], []>} : vector<8x32xf32>, vector<32x96xf32>, vector<8x96xf32> -> vector<8x96xf32>
    %228 = arith.addf %227, %24 : vector<8x96xf32>
    %cst_66 = arith.constant dense<0.000000e+00> : vector<8x96xf32>
    %229 = tpu.matmul %205, %1, %cst_66 {dimension_numbers = #tpu.dot_dimension_numbers<[1], [0], [0], [1], [0, 0, 1, 1], [], []>} : vector<8x32xf32>, vector<32x96xf32>, vector<8x96xf32> -> vector<8x96xf32>
    %230 = arith.addf %229, %8 : vector<8x96xf32>
    %231 = vector.extract_strided_slice %228 {offsets = [0, 0], sizes = [8, 64], strides = [1, 1]} : vector<8x96xf32> to vector<8x64xf32>
    %232 = vector.extract_strided_slice %230 {offsets = [0, 0], sizes = [8, 64], strides = [1, 1]} : vector<8x96xf32> to vector<8x64xf32>
    %233 = arith.addf %231, %232 : vector<8x64xf32>
    %234 = arith.negf %233 : vector<8x64xf32>
    %235 = math.exp %234 : vector<8x64xf32>
    %cst_67 = arith.constant 1.000000e+00 : f32
    %236 = vector.broadcast %cst_67 : f32 to vector<8x64xf32>
    %237 = arith.addf %236, %235 : vector<8x64xf32>
    %238 = arith.divf %236, %237 : vector<8x64xf32>
    %239 = vector.extract_strided_slice %238 {offsets = [0, 0], sizes = [8, 32], strides = [1, 1]} : vector<8x64xf32> to vector<8x32xf32>
    %240 = vector.extract_strided_slice %238 {offsets = [0, 32], sizes = [8, 32], strides = [1, 1]} : vector<8x64xf32> to vector<8x32xf32>
    %241 = vector.extract_strided_slice %228 {offsets = [0, 64], sizes = [8, 32], strides = [1, 1]} : vector<8x96xf32> to vector<8x32xf32>
    %242 = vector.extract_strided_slice %230 {offsets = [0, 64], sizes = [8, 32], strides = [1, 1]} : vector<8x96xf32> to vector<8x32xf32>
    %243 = arith.mulf %239, %242 : vector<8x32xf32>
    %244 = arith.addf %241, %243 : vector<8x32xf32>
    %245 = math.tanh %244 : vector<8x32xf32>
    %246 = arith.subf %205, %245 : vector<8x32xf32>
    %247 = arith.mulf %240, %246 : vector<8x32xf32>
    %248 = arith.addf %245, %247 : vector<8x32xf32>
    %c40 = arith.constant 40 : index
    %c0_68 = arith.constant 0 : index
    %249 = vector.load %arg15[%c40, %c0_68] : memref<64x96xf32, #tpu.memory_space<vmem>>, vector<8x96xf32>
    %cst_69 = arith.constant dense<0.000000e+00> : vector<8x96xf32>
    %250 = tpu.matmul %226, %0, %cst_69 {dimension_numbers = #tpu.dot_dimension_numbers<[1], [0], [0], [1], [0, 0, 1, 1], [], []>} : vector<8x32xf32>, vector<32x96xf32>, vector<8x96xf32> -> vector<8x96xf32>
    %251 = arith.addf %250, %5 : vector<8x96xf32>
    %252 = vector.extract_strided_slice %249 {offsets = [0, 0], sizes = [8, 64], strides = [1, 1]} : vector<8x96xf32> to vector<8x64xf32>
    %253 = vector.extract_strided_slice %251 {offsets = [0, 0], sizes = [8, 64], strides = [1, 1]} : vector<8x96xf32> to vector<8x64xf32>
    %254 = arith.addf %252, %253 : vector<8x64xf32>
    %255 = arith.negf %254 : vector<8x64xf32>
    %256 = math.exp %255 : vector<8x64xf32>
    %cst_70 = arith.constant 1.000000e+00 : f32
    %257 = vector.broadcast %cst_70 : f32 to vector<8x64xf32>
    %258 = arith.addf %257, %256 : vector<8x64xf32>
    %259 = arith.divf %257, %258 : vector<8x64xf32>
    %260 = vector.extract_strided_slice %259 {offsets = [0, 0], sizes = [8, 32], strides = [1, 1]} : vector<8x64xf32> to vector<8x32xf32>
    %261 = vector.extract_strided_slice %259 {offsets = [0, 32], sizes = [8, 32], strides = [1, 1]} : vector<8x64xf32> to vector<8x32xf32>
    %262 = vector.extract_strided_slice %249 {offsets = [0, 64], sizes = [8, 32], strides = [1, 1]} : vector<8x96xf32> to vector<8x32xf32>
    %263 = vector.extract_strided_slice %251 {offsets = [0, 64], sizes = [8, 32], strides = [1, 1]} : vector<8x96xf32> to vector<8x32xf32>
    %264 = arith.mulf %260, %263 : vector<8x32xf32>
    %265 = arith.addf %262, %264 : vector<8x32xf32>
    %266 = math.tanh %265 : vector<8x32xf32>
    %267 = arith.subf %226, %266 : vector<8x32xf32>
    %268 = arith.mulf %261, %267 : vector<8x32xf32>
    %269 = arith.addf %266, %268 : vector<8x32xf32>
    %cst_71 = arith.constant dense<0.000000e+00> : vector<8x96xf32>
    %270 = tpu.matmul %269, %2, %cst_71 {dimension_numbers = #tpu.dot_dimension_numbers<[1], [0], [0], [1], [0, 0, 1, 1], [], []>} : vector<8x32xf32>, vector<32x96xf32>, vector<8x96xf32> -> vector<8x96xf32>
    %271 = arith.addf %270, %24 : vector<8x96xf32>
    %cst_72 = arith.constant dense<0.000000e+00> : vector<8x96xf32>
    %272 = tpu.matmul %248, %1, %cst_72 {dimension_numbers = #tpu.dot_dimension_numbers<[1], [0], [0], [1], [0, 0, 1, 1], [], []>} : vector<8x32xf32>, vector<32x96xf32>, vector<8x96xf32> -> vector<8x96xf32>
    %273 = arith.addf %272, %8 : vector<8x96xf32>
    %274 = vector.extract_strided_slice %271 {offsets = [0, 0], sizes = [8, 64], strides = [1, 1]} : vector<8x96xf32> to vector<8x64xf32>
    %275 = vector.extract_strided_slice %273 {offsets = [0, 0], sizes = [8, 64], strides = [1, 1]} : vector<8x96xf32> to vector<8x64xf32>
    %276 = arith.addf %274, %275 : vector<8x64xf32>
    %277 = arith.negf %276 : vector<8x64xf32>
    %278 = math.exp %277 : vector<8x64xf32>
    %cst_73 = arith.constant 1.000000e+00 : f32
    %279 = vector.broadcast %cst_73 : f32 to vector<8x64xf32>
    %280 = arith.addf %279, %278 : vector<8x64xf32>
    %281 = arith.divf %279, %280 : vector<8x64xf32>
    %282 = vector.extract_strided_slice %281 {offsets = [0, 0], sizes = [8, 32], strides = [1, 1]} : vector<8x64xf32> to vector<8x32xf32>
    %283 = vector.extract_strided_slice %281 {offsets = [0, 32], sizes = [8, 32], strides = [1, 1]} : vector<8x64xf32> to vector<8x32xf32>
    %284 = vector.extract_strided_slice %271 {offsets = [0, 64], sizes = [8, 32], strides = [1, 1]} : vector<8x96xf32> to vector<8x32xf32>
    %285 = vector.extract_strided_slice %273 {offsets = [0, 64], sizes = [8, 32], strides = [1, 1]} : vector<8x96xf32> to vector<8x32xf32>
    %286 = arith.mulf %282, %285 : vector<8x32xf32>
    %287 = arith.addf %284, %286 : vector<8x32xf32>
    %288 = math.tanh %287 : vector<8x32xf32>
    %289 = arith.subf %248, %288 : vector<8x32xf32>
    %290 = arith.mulf %283, %289 : vector<8x32xf32>
    %291 = arith.addf %288, %290 : vector<8x32xf32>
    %c48 = arith.constant 48 : index
    %c0_74 = arith.constant 0 : index
    %292 = vector.load %arg15[%c48, %c0_74] : memref<64x96xf32, #tpu.memory_space<vmem>>, vector<8x96xf32>
    %cst_75 = arith.constant dense<0.000000e+00> : vector<8x96xf32>
    %293 = tpu.matmul %269, %0, %cst_75 {dimension_numbers = #tpu.dot_dimension_numbers<[1], [0], [0], [1], [0, 0, 1, 1], [], []>} : vector<8x32xf32>, vector<32x96xf32>, vector<8x96xf32> -> vector<8x96xf32>
    %294 = arith.addf %293, %5 : vector<8x96xf32>
    %295 = vector.extract_strided_slice %292 {offsets = [0, 0], sizes = [8, 64], strides = [1, 1]} : vector<8x96xf32> to vector<8x64xf32>
    %296 = vector.extract_strided_slice %294 {offsets = [0, 0], sizes = [8, 64], strides = [1, 1]} : vector<8x96xf32> to vector<8x64xf32>
    %297 = arith.addf %295, %296 : vector<8x64xf32>
    %298 = arith.negf %297 : vector<8x64xf32>
    %299 = math.exp %298 : vector<8x64xf32>
    %cst_76 = arith.constant 1.000000e+00 : f32
    %300 = vector.broadcast %cst_76 : f32 to vector<8x64xf32>
    %301 = arith.addf %300, %299 : vector<8x64xf32>
    %302 = arith.divf %300, %301 : vector<8x64xf32>
    %303 = vector.extract_strided_slice %302 {offsets = [0, 0], sizes = [8, 32], strides = [1, 1]} : vector<8x64xf32> to vector<8x32xf32>
    %304 = vector.extract_strided_slice %302 {offsets = [0, 32], sizes = [8, 32], strides = [1, 1]} : vector<8x64xf32> to vector<8x32xf32>
    %305 = vector.extract_strided_slice %292 {offsets = [0, 64], sizes = [8, 32], strides = [1, 1]} : vector<8x96xf32> to vector<8x32xf32>
    %306 = vector.extract_strided_slice %294 {offsets = [0, 64], sizes = [8, 32], strides = [1, 1]} : vector<8x96xf32> to vector<8x32xf32>
    %307 = arith.mulf %303, %306 : vector<8x32xf32>
    %308 = arith.addf %305, %307 : vector<8x32xf32>
    %309 = math.tanh %308 : vector<8x32xf32>
    %310 = arith.subf %269, %309 : vector<8x32xf32>
    %311 = arith.mulf %304, %310 : vector<8x32xf32>
    %312 = arith.addf %309, %311 : vector<8x32xf32>
    %cst_77 = arith.constant dense<0.000000e+00> : vector<8x96xf32>
    %313 = tpu.matmul %312, %2, %cst_77 {dimension_numbers = #tpu.dot_dimension_numbers<[1], [0], [0], [1], [0, 0, 1, 1], [], []>} : vector<8x32xf32>, vector<32x96xf32>, vector<8x96xf32> -> vector<8x96xf32>
    %314 = arith.addf %313, %24 : vector<8x96xf32>
    %cst_78 = arith.constant dense<0.000000e+00> : vector<8x96xf32>
    %315 = tpu.matmul %291, %1, %cst_78 {dimension_numbers = #tpu.dot_dimension_numbers<[1], [0], [0], [1], [0, 0, 1, 1], [], []>} : vector<8x32xf32>, vector<32x96xf32>, vector<8x96xf32> -> vector<8x96xf32>
    %316 = arith.addf %315, %8 : vector<8x96xf32>
    %317 = vector.extract_strided_slice %314 {offsets = [0, 0], sizes = [8, 64], strides = [1, 1]} : vector<8x96xf32> to vector<8x64xf32>
    %318 = vector.extract_strided_slice %316 {offsets = [0, 0], sizes = [8, 64], strides = [1, 1]} : vector<8x96xf32> to vector<8x64xf32>
    %319 = arith.addf %317, %318 : vector<8x64xf32>
    %320 = arith.negf %319 : vector<8x64xf32>
    %321 = math.exp %320 : vector<8x64xf32>
    %cst_79 = arith.constant 1.000000e+00 : f32
    %322 = vector.broadcast %cst_79 : f32 to vector<8x64xf32>
    %323 = arith.addf %322, %321 : vector<8x64xf32>
    %324 = arith.divf %322, %323 : vector<8x64xf32>
    %325 = vector.extract_strided_slice %324 {offsets = [0, 0], sizes = [8, 32], strides = [1, 1]} : vector<8x64xf32> to vector<8x32xf32>
    %326 = vector.extract_strided_slice %324 {offsets = [0, 32], sizes = [8, 32], strides = [1, 1]} : vector<8x64xf32> to vector<8x32xf32>
    %327 = vector.extract_strided_slice %314 {offsets = [0, 64], sizes = [8, 32], strides = [1, 1]} : vector<8x96xf32> to vector<8x32xf32>
    %328 = vector.extract_strided_slice %316 {offsets = [0, 64], sizes = [8, 32], strides = [1, 1]} : vector<8x96xf32> to vector<8x32xf32>
    %329 = arith.mulf %325, %328 : vector<8x32xf32>
    %330 = arith.addf %327, %329 : vector<8x32xf32>
    %331 = math.tanh %330 : vector<8x32xf32>
    %332 = arith.subf %291, %331 : vector<8x32xf32>
    %333 = arith.mulf %326, %332 : vector<8x32xf32>
    %334 = arith.addf %331, %333 : vector<8x32xf32>
    %c56 = arith.constant 56 : index
    %c0_80 = arith.constant 0 : index
    %335 = vector.load %arg15[%c56, %c0_80] : memref<64x96xf32, #tpu.memory_space<vmem>>, vector<8x96xf32>
    %cst_81 = arith.constant dense<0.000000e+00> : vector<8x96xf32>
    %336 = tpu.matmul %312, %0, %cst_81 {dimension_numbers = #tpu.dot_dimension_numbers<[1], [0], [0], [1], [0, 0, 1, 1], [], []>} : vector<8x32xf32>, vector<32x96xf32>, vector<8x96xf32> -> vector<8x96xf32>
    %337 = arith.addf %336, %5 : vector<8x96xf32>
    %338 = vector.extract_strided_slice %335 {offsets = [0, 0], sizes = [8, 64], strides = [1, 1]} : vector<8x96xf32> to vector<8x64xf32>
    %339 = vector.extract_strided_slice %337 {offsets = [0, 0], sizes = [8, 64], strides = [1, 1]} : vector<8x96xf32> to vector<8x64xf32>
    %340 = arith.addf %338, %339 : vector<8x64xf32>
    %341 = arith.negf %340 : vector<8x64xf32>
    %342 = math.exp %341 : vector<8x64xf32>
    %cst_82 = arith.constant 1.000000e+00 : f32
    %343 = vector.broadcast %cst_82 : f32 to vector<8x64xf32>
    %344 = arith.addf %343, %342 : vector<8x64xf32>
    %345 = arith.divf %343, %344 : vector<8x64xf32>
    %346 = vector.extract_strided_slice %345 {offsets = [0, 0], sizes = [8, 32], strides = [1, 1]} : vector<8x64xf32> to vector<8x32xf32>
    %347 = vector.extract_strided_slice %345 {offsets = [0, 32], sizes = [8, 32], strides = [1, 1]} : vector<8x64xf32> to vector<8x32xf32>
    %348 = vector.extract_strided_slice %335 {offsets = [0, 64], sizes = [8, 32], strides = [1, 1]} : vector<8x96xf32> to vector<8x32xf32>
    %349 = vector.extract_strided_slice %337 {offsets = [0, 64], sizes = [8, 32], strides = [1, 1]} : vector<8x96xf32> to vector<8x32xf32>
    %350 = arith.mulf %346, %349 : vector<8x32xf32>
    %351 = arith.addf %348, %350 : vector<8x32xf32>
    %352 = math.tanh %351 : vector<8x32xf32>
    %353 = arith.subf %312, %352 : vector<8x32xf32>
    %354 = arith.mulf %347, %353 : vector<8x32xf32>
    %355 = arith.addf %352, %354 : vector<8x32xf32>
    %cst_83 = arith.constant dense<0.000000e+00> : vector<8x96xf32>
    %356 = tpu.matmul %355, %2, %cst_83 {dimension_numbers = #tpu.dot_dimension_numbers<[1], [0], [0], [1], [0, 0, 1, 1], [], []>} : vector<8x32xf32>, vector<32x96xf32>, vector<8x96xf32> -> vector<8x96xf32>
    %357 = arith.addf %356, %24 : vector<8x96xf32>
    %cst_84 = arith.constant dense<0.000000e+00> : vector<8x96xf32>
    %358 = tpu.matmul %334, %1, %cst_84 {dimension_numbers = #tpu.dot_dimension_numbers<[1], [0], [0], [1], [0, 0, 1, 1], [], []>} : vector<8x32xf32>, vector<32x96xf32>, vector<8x96xf32> -> vector<8x96xf32>
    %359 = arith.addf %358, %8 : vector<8x96xf32>
    %360 = vector.extract_strided_slice %357 {offsets = [0, 0], sizes = [8, 64], strides = [1, 1]} : vector<8x96xf32> to vector<8x64xf32>
    %361 = vector.extract_strided_slice %359 {offsets = [0, 0], sizes = [8, 64], strides = [1, 1]} : vector<8x96xf32> to vector<8x64xf32>
    %362 = arith.addf %360, %361 : vector<8x64xf32>
    %363 = arith.negf %362 : vector<8x64xf32>
    %364 = math.exp %363 : vector<8x64xf32>
    %cst_85 = arith.constant 1.000000e+00 : f32
    %365 = vector.broadcast %cst_85 : f32 to vector<8x64xf32>
    %366 = arith.addf %365, %364 : vector<8x64xf32>
    %367 = arith.divf %365, %366 : vector<8x64xf32>
    %368 = vector.extract_strided_slice %367 {offsets = [0, 0], sizes = [8, 32], strides = [1, 1]} : vector<8x64xf32> to vector<8x32xf32>
    %369 = vector.extract_strided_slice %367 {offsets = [0, 32], sizes = [8, 32], strides = [1, 1]} : vector<8x64xf32> to vector<8x32xf32>
    %370 = vector.extract_strided_slice %357 {offsets = [0, 64], sizes = [8, 32], strides = [1, 1]} : vector<8x96xf32> to vector<8x32xf32>
    %371 = vector.extract_strided_slice %359 {offsets = [0, 64], sizes = [8, 32], strides = [1, 1]} : vector<8x96xf32> to vector<8x32xf32>
    %372 = arith.mulf %368, %371 : vector<8x32xf32>
    %373 = arith.addf %370, %372 : vector<8x32xf32>
    %374 = math.tanh %373 : vector<8x32xf32>
    %375 = arith.subf %334, %374 : vector<8x32xf32>
    %376 = arith.mulf %369, %375 : vector<8x32xf32>
    %377 = arith.addf %374, %376 : vector<8x32xf32>
    %cst_86 = arith.constant dense<0.000000e+00> : vector<8x96xf32>
    %378 = tpu.matmul %355, %0, %cst_86 {dimension_numbers = #tpu.dot_dimension_numbers<[1], [0], [0], [1], [0, 0, 1, 1], [], []>} : vector<8x32xf32>, vector<32x96xf32>, vector<8x96xf32> -> vector<8x96xf32>
    %379 = arith.addf %378, %5 : vector<8x96xf32>
    %380 = vector.extract_strided_slice %11 {offsets = [0, 0], sizes = [8, 64], strides = [1, 1]} : vector<8x96xf32> to vector<8x64xf32>
    %381 = vector.extract_strided_slice %379 {offsets = [0, 0], sizes = [8, 64], strides = [1, 1]} : vector<8x96xf32> to vector<8x64xf32>
    %382 = arith.addf %380, %381 : vector<8x64xf32>
    %383 = arith.negf %382 : vector<8x64xf32>
    %384 = math.exp %383 : vector<8x64xf32>
    %cst_87 = arith.constant 1.000000e+00 : f32
    %385 = vector.broadcast %cst_87 : f32 to vector<8x64xf32>
    %386 = arith.addf %385, %384 : vector<8x64xf32>
    %387 = arith.divf %385, %386 : vector<8x64xf32>
    %388 = vector.extract_strided_slice %387 {offsets = [0, 0], sizes = [8, 32], strides = [1, 1]} : vector<8x64xf32> to vector<8x32xf32>
    %389 = vector.extract_strided_slice %387 {offsets = [0, 32], sizes = [8, 32], strides = [1, 1]} : vector<8x64xf32> to vector<8x32xf32>
    %390 = vector.extract_strided_slice %11 {offsets = [0, 64], sizes = [8, 32], strides = [1, 1]} : vector<8x96xf32> to vector<8x32xf32>
    %391 = vector.extract_strided_slice %379 {offsets = [0, 64], sizes = [8, 32], strides = [1, 1]} : vector<8x96xf32> to vector<8x32xf32>
    %392 = arith.mulf %388, %391 : vector<8x32xf32>
    %393 = arith.addf %390, %392 : vector<8x32xf32>
    %394 = math.tanh %393 : vector<8x32xf32>
    %395 = arith.subf %355, %394 : vector<8x32xf32>
    %396 = arith.mulf %389, %395 : vector<8x32xf32>
    %397 = arith.addf %394, %396 : vector<8x32xf32>
    %cst_88 = arith.constant dense<0.000000e+00> : vector<8x96xf32>
    %398 = tpu.matmul %397, %2, %cst_88 {dimension_numbers = #tpu.dot_dimension_numbers<[1], [0], [0], [1], [0, 0, 1, 1], [], []>} : vector<8x32xf32>, vector<32x96xf32>, vector<8x96xf32> -> vector<8x96xf32>
    %c0_89 = arith.constant 0 : index
    %c0_90 = arith.constant 0 : index
    %399 = vector.load %arg16[%c0_89, %c0_90] : memref<56x96xf32, #tpu.memory_space<vmem>>, vector<8x96xf32>
    %400 = arith.addf %398, %399 : vector<8x96xf32>
    %cst_91 = arith.constant dense<0.000000e+00> : vector<8x96xf32>
    %401 = tpu.matmul %377, %1, %cst_91 {dimension_numbers = #tpu.dot_dimension_numbers<[1], [0], [0], [1], [0, 0, 1, 1], [], []>} : vector<8x32xf32>, vector<32x96xf32>, vector<8x96xf32> -> vector<8x96xf32>
    %402 = arith.addf %401, %8 : vector<8x96xf32>
    %403 = vector.extract_strided_slice %400 {offsets = [0, 0], sizes = [8, 64], strides = [1, 1]} : vector<8x96xf32> to vector<8x64xf32>
    %404 = vector.extract_strided_slice %402 {offsets = [0, 0], sizes = [8, 64], strides = [1, 1]} : vector<8x96xf32> to vector<8x64xf32>
    %405 = arith.addf %403, %404 : vector<8x64xf32>
    %406 = arith.negf %405 : vector<8x64xf32>
    %407 = math.exp %406 : vector<8x64xf32>
    %cst_92 = arith.constant 1.000000e+00 : f32
    %408 = vector.broadcast %cst_92 : f32 to vector<8x64xf32>
    %409 = arith.addf %408, %407 : vector<8x64xf32>
    %410 = arith.divf %408, %409 : vector<8x64xf32>
    %411 = vector.extract_strided_slice %410 {offsets = [0, 0], sizes = [8, 32], strides = [1, 1]} : vector<8x64xf32> to vector<8x32xf32>
    %412 = vector.extract_strided_slice %410 {offsets = [0, 32], sizes = [8, 32], strides = [1, 1]} : vector<8x64xf32> to vector<8x32xf32>
    %413 = vector.extract_strided_slice %400 {offsets = [0, 64], sizes = [8, 32], strides = [1, 1]} : vector<8x96xf32> to vector<8x32xf32>
    %414 = vector.extract_strided_slice %402 {offsets = [0, 64], sizes = [8, 32], strides = [1, 1]} : vector<8x96xf32> to vector<8x32xf32>
    %415 = arith.mulf %411, %414 : vector<8x32xf32>
    %416 = arith.addf %413, %415 : vector<8x32xf32>
    %417 = math.tanh %416 : vector<8x32xf32>
    %418 = arith.subf %377, %417 : vector<8x32xf32>
    %419 = arith.mulf %412, %418 : vector<8x32xf32>
    %420 = arith.addf %417, %419 : vector<8x32xf32>
    %c0_93 = arith.constant 0 : index
    %c0_94 = arith.constant 0 : index
    %421 = vector.load %arg17[%c0_93, %c0_94] : memref<56x32xf32, #tpu.memory_space<vmem>>, vector<8x32xf32>
    tpu.vector_store %arg17[%c0_93, %c0_94], %420 {strides = array<i32>} : memref<56x32xf32, #tpu.memory_space<vmem>>, vector<8x32xf32>,
    %cst_95 = arith.constant dense<0.000000e+00> : vector<8x96xf32>
    %422 = tpu.matmul %397, %0, %cst_95 {dimension_numbers = #tpu.dot_dimension_numbers<[1], [0], [0], [1], [0, 0, 1, 1], [], []>} : vector<8x32xf32>, vector<32x96xf32>, vector<8x96xf32> -> vector<8x96xf32>
    %423 = arith.addf %422, %5 : vector<8x96xf32>
    %424 = vector.extract_strided_slice %11 {offsets = [0, 0], sizes = [8, 64], strides = [1, 1]} : vector<8x96xf32> to vector<8x64xf32>
    %425 = vector.extract_strided_slice %423 {offsets = [0, 0], sizes = [8, 64], strides = [1, 1]} : vector<8x96xf32> to vector<8x64xf32>
    %426 = arith.addf %424, %425 : vector<8x64xf32>
    %427 = arith.negf %426 : vector<8x64xf32>
    %428 = math.exp %427 : vector<8x64xf32>
    %cst_96 = arith.constant 1.000000e+00 : f32
    %429 = vector.broadcast %cst_96 : f32 to vector<8x64xf32>
    %430 = arith.addf %429, %428 : vector<8x64xf32>
    %431 = arith.divf %429, %430 : vector<8x64xf32>
    %432 = vector.extract_strided_slice %431 {offsets = [0, 0], sizes = [8, 32], strides = [1, 1]} : vector<8x64xf32> to vector<8x32xf32>
    %433 = vector.extract_strided_slice %431 {offsets = [0, 32], sizes = [8, 32], strides = [1, 1]} : vector<8x64xf32> to vector<8x32xf32>
    %434 = vector.extract_strided_slice %11 {offsets = [0, 64], sizes = [8, 32], strides = [1, 1]} : vector<8x96xf32> to vector<8x32xf32>
    %435 = vector.extract_strided_slice %423 {offsets = [0, 64], sizes = [8, 32], strides = [1, 1]} : vector<8x96xf32> to vector<8x32xf32>
    %436 = arith.mulf %432, %435 : vector<8x32xf32>
    %437 = arith.addf %434, %436 : vector<8x32xf32>
    %438 = math.tanh %437 : vector<8x32xf32>
    %439 = arith.subf %397, %438 : vector<8x32xf32>
    %440 = arith.mulf %433, %439 : vector<8x32xf32>
    %441 = arith.addf %438, %440 : vector<8x32xf32>
    %cst_97 = arith.constant dense<0.000000e+00> : vector<8x96xf32>
    %442 = tpu.matmul %441, %2, %cst_97 {dimension_numbers = #tpu.dot_dimension_numbers<[1], [0], [0], [1], [0, 0, 1, 1], [], []>} : vector<8x32xf32>, vector<32x96xf32>, vector<8x96xf32> -> vector<8x96xf32>
    %c8_98 = arith.constant 8 : index
    %c0_99 = arith.constant 0 : index
    %443 = vector.load %arg16[%c8_98, %c0_99] : memref<56x96xf32, #tpu.memory_space<vmem>>, vector<8x96xf32>
    %444 = arith.addf %442, %443 : vector<8x96xf32>
    %cst_100 = arith.constant dense<0.000000e+00> : vector<8x96xf32>
    %445 = tpu.matmul %420, %1, %cst_100 {dimension_numbers = #tpu.dot_dimension_numbers<[1], [0], [0], [1], [0, 0, 1, 1], [], []>} : vector<8x32xf32>, vector<32x96xf32>, vector<8x96xf32> -> vector<8x96xf32>
    %446 = arith.addf %445, %8 : vector<8x96xf32>
    %447 = vector.extract_strided_slice %444 {offsets = [0, 0], sizes = [8, 64], strides = [1, 1]} : vector<8x96xf32> to vector<8x64xf32>
    %448 = vector.extract_strided_slice %446 {offsets = [0, 0], sizes = [8, 64], strides = [1, 1]} : vector<8x96xf32> to vector<8x64xf32>
    %449 = arith.addf %447, %448 : vector<8x64xf32>
    %450 = arith.negf %449 : vector<8x64xf32>
    %451 = math.exp %450 : vector<8x64xf32>
    %cst_101 = arith.constant 1.000000e+00 : f32
    %452 = vector.broadcast %cst_101 : f32 to vector<8x64xf32>
    %453 = arith.addf %452, %451 : vector<8x64xf32>
    %454 = arith.divf %452, %453 : vector<8x64xf32>
    %455 = vector.extract_strided_slice %454 {offsets = [0, 0], sizes = [8, 32], strides = [1, 1]} : vector<8x64xf32> to vector<8x32xf32>
    %456 = vector.extract_strided_slice %454 {offsets = [0, 32], sizes = [8, 32], strides = [1, 1]} : vector<8x64xf32> to vector<8x32xf32>
    %457 = vector.extract_strided_slice %444 {offsets = [0, 64], sizes = [8, 32], strides = [1, 1]} : vector<8x96xf32> to vector<8x32xf32>
    %458 = vector.extract_strided_slice %446 {offsets = [0, 64], sizes = [8, 32], strides = [1, 1]} : vector<8x96xf32> to vector<8x32xf32>
    %459 = arith.mulf %455, %458 : vector<8x32xf32>
    %460 = arith.addf %457, %459 : vector<8x32xf32>
    %461 = math.tanh %460 : vector<8x32xf32>
    %462 = arith.subf %420, %461 : vector<8x32xf32>
    %463 = arith.mulf %456, %462 : vector<8x32xf32>
    %464 = arith.addf %461, %463 : vector<8x32xf32>
    %c8_102 = arith.constant 8 : index
    %c0_103 = arith.constant 0 : index
    %465 = vector.load %arg17[%c8_102, %c0_103] : memref<56x32xf32, #tpu.memory_space<vmem>>, vector<8x32xf32>
    tpu.vector_store %arg17[%c8_102, %c0_103], %464 {strides = array<i32>} : memref<56x32xf32, #tpu.memory_space<vmem>>, vector<8x32xf32>,
    %cst_104 = arith.constant dense<0.000000e+00> : vector<8x96xf32>
    %466 = tpu.matmul %441, %0, %cst_104 {dimension_numbers = #tpu.dot_dimension_numbers<[1], [0], [0], [1], [0, 0, 1, 1], [], []>} : vector<8x32xf32>, vector<32x96xf32>, vector<8x96xf32> -> vector<8x96xf32>
    %467 = arith.addf %466, %5 : vector<8x96xf32>
    %468 = vector.extract_strided_slice %11 {offsets = [0, 0], sizes = [8, 64], strides = [1, 1]} : vector<8x96xf32> to vector<8x64xf32>
    %469 = vector.extract_strided_slice %467 {offsets = [0, 0], sizes = [8, 64], strides = [1, 1]} : vector<8x96xf32> to vector<8x64xf32>
    %470 = arith.addf %468, %469 : vector<8x64xf32>
    %471 = arith.negf %470 : vector<8x64xf32>
    %472 = math.exp %471 : vector<8x64xf32>
    %cst_105 = arith.constant 1.000000e+00 : f32
    %473 = vector.broadcast %cst_105 : f32 to vector<8x64xf32>
    %474 = arith.addf %473, %472 : vector<8x64xf32>
    %475 = arith.divf %473, %474 : vector<8x64xf32>
    %476 = vector.extract_strided_slice %475 {offsets = [0, 0], sizes = [8, 32], strides = [1, 1]} : vector<8x64xf32> to vector<8x32xf32>
    %477 = vector.extract_strided_slice %475 {offsets = [0, 32], sizes = [8, 32], strides = [1, 1]} : vector<8x64xf32> to vector<8x32xf32>
    %478 = vector.extract_strided_slice %11 {offsets = [0, 64], sizes = [8, 32], strides = [1, 1]} : vector<8x96xf32> to vector<8x32xf32>
    %479 = vector.extract_strided_slice %467 {offsets = [0, 64], sizes = [8, 32], strides = [1, 1]} : vector<8x96xf32> to vector<8x32xf32>
    %480 = arith.mulf %476, %479 : vector<8x32xf32>
    %481 = arith.addf %478, %480 : vector<8x32xf32>
    %482 = math.tanh %481 : vector<8x32xf32>
    %483 = arith.subf %441, %482 : vector<8x32xf32>
    %484 = arith.mulf %477, %483 : vector<8x32xf32>
    %485 = arith.addf %482, %484 : vector<8x32xf32>
    %cst_106 = arith.constant dense<0.000000e+00> : vector<8x96xf32>
    %486 = tpu.matmul %485, %2, %cst_106 {dimension_numbers = #tpu.dot_dimension_numbers<[1], [0], [0], [1], [0, 0, 1, 1], [], []>} : vector<8x32xf32>, vector<32x96xf32>, vector<8x96xf32> -> vector<8x96xf32>
    %c16_107 = arith.constant 16 : index
    %c0_108 = arith.constant 0 : index
    %487 = vector.load %arg16[%c16_107, %c0_108] : memref<56x96xf32, #tpu.memory_space<vmem>>, vector<8x96xf32>
    %488 = arith.addf %486, %487 : vector<8x96xf32>
    %cst_109 = arith.constant dense<0.000000e+00> : vector<8x96xf32>
    %489 = tpu.matmul %464, %1, %cst_109 {dimension_numbers = #tpu.dot_dimension_numbers<[1], [0], [0], [1], [0, 0, 1, 1], [], []>} : vector<8x32xf32>, vector<32x96xf32>, vector<8x96xf32> -> vector<8x96xf32>
    %490 = arith.addf %489, %8 : vector<8x96xf32>
    %491 = vector.extract_strided_slice %488 {offsets = [0, 0], sizes = [8, 64], strides = [1, 1]} : vector<8x96xf32> to vector<8x64xf32>
    %492 = vector.extract_strided_slice %490 {offsets = [0, 0], sizes = [8, 64], strides = [1, 1]} : vector<8x96xf32> to vector<8x64xf32>
    %493 = arith.addf %491, %492 : vector<8x64xf32>
    %494 = arith.negf %493 : vector<8x64xf32>
    %495 = math.exp %494 : vector<8x64xf32>
    %cst_110 = arith.constant 1.000000e+00 : f32
    %496 = vector.broadcast %cst_110 : f32 to vector<8x64xf32>
    %497 = arith.addf %496, %495 : vector<8x64xf32>
    %498 = arith.divf %496, %497 : vector<8x64xf32>
    %499 = vector.extract_strided_slice %498 {offsets = [0, 0], sizes = [8, 32], strides = [1, 1]} : vector<8x64xf32> to vector<8x32xf32>
    %500 = vector.extract_strided_slice %498 {offsets = [0, 32], sizes = [8, 32], strides = [1, 1]} : vector<8x64xf32> to vector<8x32xf32>
    %501 = vector.extract_strided_slice %488 {offsets = [0, 64], sizes = [8, 32], strides = [1, 1]} : vector<8x96xf32> to vector<8x32xf32>
    %502 = vector.extract_strided_slice %490 {offsets = [0, 64], sizes = [8, 32], strides = [1, 1]} : vector<8x96xf32> to vector<8x32xf32>
    %503 = arith.mulf %499, %502 : vector<8x32xf32>
    %504 = arith.addf %501, %503 : vector<8x32xf32>
    %505 = math.tanh %504 : vector<8x32xf32>
    %506 = arith.subf %464, %505 : vector<8x32xf32>
    %507 = arith.mulf %500, %506 : vector<8x32xf32>
    %508 = arith.addf %505, %507 : vector<8x32xf32>
    %c16_111 = arith.constant 16 : index
    %c0_112 = arith.constant 0 : index
    %509 = vector.load %arg17[%c16_111, %c0_112] : memref<56x32xf32, #tpu.memory_space<vmem>>, vector<8x32xf32>
    tpu.vector_store %arg17[%c16_111, %c0_112], %508 {strides = array<i32>} : memref<56x32xf32, #tpu.memory_space<vmem>>, vector<8x32xf32>,
    %cst_113 = arith.constant dense<0.000000e+00> : vector<8x96xf32>
    %510 = tpu.matmul %485, %0, %cst_113 {dimension_numbers = #tpu.dot_dimension_numbers<[1], [0], [0], [1], [0, 0, 1, 1], [], []>} : vector<8x32xf32>, vector<32x96xf32>, vector<8x96xf32> -> vector<8x96xf32>
    %511 = arith.addf %510, %5 : vector<8x96xf32>
    %512 = vector.extract_strided_slice %11 {offsets = [0, 0], sizes = [8, 64], strides = [1, 1]} : vector<8x96xf32> to vector<8x64xf32>
    %513 = vector.extract_strided_slice %511 {offsets = [0, 0], sizes = [8, 64], strides = [1, 1]} : vector<8x96xf32> to vector<8x64xf32>
    %514 = arith.addf %512, %513 : vector<8x64xf32>
    %515 = arith.negf %514 : vector<8x64xf32>
    %516 = math.exp %515 : vector<8x64xf32>
    %cst_114 = arith.constant 1.000000e+00 : f32
    %517 = vector.broadcast %cst_114 : f32 to vector<8x64xf32>
    %518 = arith.addf %517, %516 : vector<8x64xf32>
    %519 = arith.divf %517, %518 : vector<8x64xf32>
    %520 = vector.extract_strided_slice %519 {offsets = [0, 0], sizes = [8, 32], strides = [1, 1]} : vector<8x64xf32> to vector<8x32xf32>
    %521 = vector.extract_strided_slice %519 {offsets = [0, 32], sizes = [8, 32], strides = [1, 1]} : vector<8x64xf32> to vector<8x32xf32>
    %522 = vector.extract_strided_slice %11 {offsets = [0, 64], sizes = [8, 32], strides = [1, 1]} : vector<8x96xf32> to vector<8x32xf32>
    %523 = vector.extract_strided_slice %511 {offsets = [0, 64], sizes = [8, 32], strides = [1, 1]} : vector<8x96xf32> to vector<8x32xf32>
    %524 = arith.mulf %520, %523 : vector<8x32xf32>
    %525 = arith.addf %522, %524 : vector<8x32xf32>
    %526 = math.tanh %525 : vector<8x32xf32>
    %527 = arith.subf %485, %526 : vector<8x32xf32>
    %528 = arith.mulf %521, %527 : vector<8x32xf32>
    %529 = arith.addf %526, %528 : vector<8x32xf32>
    %cst_115 = arith.constant dense<0.000000e+00> : vector<8x96xf32>
    %530 = tpu.matmul %529, %2, %cst_115 {dimension_numbers = #tpu.dot_dimension_numbers<[1], [0], [0], [1], [0, 0, 1, 1], [], []>} : vector<8x32xf32>, vector<32x96xf32>, vector<8x96xf32> -> vector<8x96xf32>
    %c24_116 = arith.constant 24 : index
    %c0_117 = arith.constant 0 : index
    %531 = vector.load %arg16[%c24_116, %c0_117] : memref<56x96xf32, #tpu.memory_space<vmem>>, vector<8x96xf32>
    %532 = arith.addf %530, %531 : vector<8x96xf32>
    %cst_118 = arith.constant dense<0.000000e+00> : vector<8x96xf32>
    %533 = tpu.matmul %508, %1, %cst_118 {dimension_numbers = #tpu.dot_dimension_numbers<[1], [0], [0], [1], [0, 0, 1, 1], [], []>} : vector<8x32xf32>, vector<32x96xf32>, vector<8x96xf32> -> vector<8x96xf32>
    %534 = arith.addf %533, %8 : vector<8x96xf32>
    %535 = vector.extract_strided_slice %532 {offsets = [0, 0], sizes = [8, 64], strides = [1, 1]} : vector<8x96xf32> to vector<8x64xf32>
    %536 = vector.extract_strided_slice %534 {offsets = [0, 0], sizes = [8, 64], strides = [1, 1]} : vector<8x96xf32> to vector<8x64xf32>
    %537 = arith.addf %535, %536 : vector<8x64xf32>
    %538 = arith.negf %537 : vector<8x64xf32>
    %539 = math.exp %538 : vector<8x64xf32>
    %cst_119 = arith.constant 1.000000e+00 : f32
    %540 = vector.broadcast %cst_119 : f32 to vector<8x64xf32>
    %541 = arith.addf %540, %539 : vector<8x64xf32>
    %542 = arith.divf %540, %541 : vector<8x64xf32>
    %543 = vector.extract_strided_slice %542 {offsets = [0, 0], sizes = [8, 32], strides = [1, 1]} : vector<8x64xf32> to vector<8x32xf32>
    %544 = vector.extract_strided_slice %542 {offsets = [0, 32], sizes = [8, 32], strides = [1, 1]} : vector<8x64xf32> to vector<8x32xf32>
    %545 = vector.extract_strided_slice %532 {offsets = [0, 64], sizes = [8, 32], strides = [1, 1]} : vector<8x96xf32> to vector<8x32xf32>
    %546 = vector.extract_strided_slice %534 {offsets = [0, 64], sizes = [8, 32], strides = [1, 1]} : vector<8x96xf32> to vector<8x32xf32>
    %547 = arith.mulf %543, %546 : vector<8x32xf32>
    %548 = arith.addf %545, %547 : vector<8x32xf32>
    %549 = math.tanh %548 : vector<8x32xf32>
    %550 = arith.subf %508, %549 : vector<8x32xf32>
    %551 = arith.mulf %544, %550 : vector<8x32xf32>
    %552 = arith.addf %549, %551 : vector<8x32xf32>
    %c24_120 = arith.constant 24 : index
    %c0_121 = arith.constant 0 : index
    %553 = vector.load %arg17[%c24_120, %c0_121] : memref<56x32xf32, #tpu.memory_space<vmem>>, vector<8x32xf32>
    tpu.vector_store %arg17[%c24_120, %c0_121], %552 {strides = array<i32>} : memref<56x32xf32, #tpu.memory_space<vmem>>, vector<8x32xf32>,
    %cst_122 = arith.constant dense<0.000000e+00> : vector<8x96xf32>
    %554 = tpu.matmul %529, %0, %cst_122 {dimension_numbers = #tpu.dot_dimension_numbers<[1], [0], [0], [1], [0, 0, 1, 1], [], []>} : vector<8x32xf32>, vector<32x96xf32>, vector<8x96xf32> -> vector<8x96xf32>
    %555 = arith.addf %554, %5 : vector<8x96xf32>
    %556 = vector.extract_strided_slice %11 {offsets = [0, 0], sizes = [8, 64], strides = [1, 1]} : vector<8x96xf32> to vector<8x64xf32>
    %557 = vector.extract_strided_slice %555 {offsets = [0, 0], sizes = [8, 64], strides = [1, 1]} : vector<8x96xf32> to vector<8x64xf32>
    %558 = arith.addf %556, %557 : vector<8x64xf32>
    %559 = arith.negf %558 : vector<8x64xf32>
    %560 = math.exp %559 : vector<8x64xf32>
    %cst_123 = arith.constant 1.000000e+00 : f32
    %561 = vector.broadcast %cst_123 : f32 to vector<8x64xf32>
    %562 = arith.addf %561, %560 : vector<8x64xf32>
    %563 = arith.divf %561, %562 : vector<8x64xf32>
    %564 = vector.extract_strided_slice %563 {offsets = [0, 0], sizes = [8, 32], strides = [1, 1]} : vector<8x64xf32> to vector<8x32xf32>
    %565 = vector.extract_strided_slice %563 {offsets = [0, 32], sizes = [8, 32], strides = [1, 1]} : vector<8x64xf32> to vector<8x32xf32>
    %566 = vector.extract_strided_slice %11 {offsets = [0, 64], sizes = [8, 32], strides = [1, 1]} : vector<8x96xf32> to vector<8x32xf32>
    %567 = vector.extract_strided_slice %555 {offsets = [0, 64], sizes = [8, 32], strides = [1, 1]} : vector<8x96xf32> to vector<8x32xf32>
    %568 = arith.mulf %564, %567 : vector<8x32xf32>
    %569 = arith.addf %566, %568 : vector<8x32xf32>
    %570 = math.tanh %569 : vector<8x32xf32>
    %571 = arith.subf %529, %570 : vector<8x32xf32>
    %572 = arith.mulf %565, %571 : vector<8x32xf32>
    %573 = arith.addf %570, %572 : vector<8x32xf32>
    %cst_124 = arith.constant dense<0.000000e+00> : vector<8x96xf32>
    %574 = tpu.matmul %573, %2, %cst_124 {dimension_numbers = #tpu.dot_dimension_numbers<[1], [0], [0], [1], [0, 0, 1, 1], [], []>} : vector<8x32xf32>, vector<32x96xf32>, vector<8x96xf32> -> vector<8x96xf32>
    %c32_125 = arith.constant 32 : index
    %c0_126 = arith.constant 0 : index
    %575 = vector.load %arg16[%c32_125, %c0_126] : memref<56x96xf32, #tpu.memory_space<vmem>>, vector<8x96xf32>
    %576 = arith.addf %574, %575 : vector<8x96xf32>
    %cst_127 = arith.constant dense<0.000000e+00> : vector<8x96xf32>
    %577 = tpu.matmul %552, %1, %cst_127 {dimension_numbers = #tpu.dot_dimension_numbers<[1], [0], [0], [1], [0, 0, 1, 1], [], []>} : vector<8x32xf32>, vector<32x96xf32>, vector<8x96xf32> -> vector<8x96xf32>
    %578 = arith.addf %577, %8 : vector<8x96xf32>
    %579 = vector.extract_strided_slice %576 {offsets = [0, 0], sizes = [8, 64], strides = [1, 1]} : vector<8x96xf32> to vector<8x64xf32>
    %580 = vector.extract_strided_slice %578 {offsets = [0, 0], sizes = [8, 64], strides = [1, 1]} : vector<8x96xf32> to vector<8x64xf32>
    %581 = arith.addf %579, %580 : vector<8x64xf32>
    %582 = arith.negf %581 : vector<8x64xf32>
    %583 = math.exp %582 : vector<8x64xf32>
    %cst_128 = arith.constant 1.000000e+00 : f32
    %584 = vector.broadcast %cst_128 : f32 to vector<8x64xf32>
    %585 = arith.addf %584, %583 : vector<8x64xf32>
    %586 = arith.divf %584, %585 : vector<8x64xf32>
    %587 = vector.extract_strided_slice %586 {offsets = [0, 0], sizes = [8, 32], strides = [1, 1]} : vector<8x64xf32> to vector<8x32xf32>
    %588 = vector.extract_strided_slice %586 {offsets = [0, 32], sizes = [8, 32], strides = [1, 1]} : vector<8x64xf32> to vector<8x32xf32>
    %589 = vector.extract_strided_slice %576 {offsets = [0, 64], sizes = [8, 32], strides = [1, 1]} : vector<8x96xf32> to vector<8x32xf32>
    %590 = vector.extract_strided_slice %578 {offsets = [0, 64], sizes = [8, 32], strides = [1, 1]} : vector<8x96xf32> to vector<8x32xf32>
    %591 = arith.mulf %587, %590 : vector<8x32xf32>
    %592 = arith.addf %589, %591 : vector<8x32xf32>
    %593 = math.tanh %592 : vector<8x32xf32>
    %594 = arith.subf %552, %593 : vector<8x32xf32>
    %595 = arith.mulf %588, %594 : vector<8x32xf32>
    %596 = arith.addf %593, %595 : vector<8x32xf32>
    %c32_129 = arith.constant 32 : index
    %c0_130 = arith.constant 0 : index
    %597 = vector.load %arg17[%c32_129, %c0_130] : memref<56x32xf32, #tpu.memory_space<vmem>>, vector<8x32xf32>
    tpu.vector_store %arg17[%c32_129, %c0_130], %596 {strides = array<i32>} : memref<56x32xf32, #tpu.memory_space<vmem>>, vector<8x32xf32>,
    %cst_131 = arith.constant dense<0.000000e+00> : vector<8x96xf32>
    %598 = tpu.matmul %573, %0, %cst_131 {dimension_numbers = #tpu.dot_dimension_numbers<[1], [0], [0], [1], [0, 0, 1, 1], [], []>} : vector<8x32xf32>, vector<32x96xf32>, vector<8x96xf32> -> vector<8x96xf32>
    %599 = arith.addf %598, %5 : vector<8x96xf32>
    %600 = vector.extract_strided_slice %11 {offsets = [0, 0], sizes = [8, 64], strides = [1, 1]} : vector<8x96xf32> to vector<8x64xf32>
    %601 = vector.extract_strided_slice %599 {offsets = [0, 0], sizes = [8, 64], strides = [1, 1]} : vector<8x96xf32> to vector<8x64xf32>
    %602 = arith.addf %600, %601 : vector<8x64xf32>
    %603 = arith.negf %602 : vector<8x64xf32>
    %604 = math.exp %603 : vector<8x64xf32>
    %cst_132 = arith.constant 1.000000e+00 : f32
    %605 = vector.broadcast %cst_132 : f32 to vector<8x64xf32>
    %606 = arith.addf %605, %604 : vector<8x64xf32>
    %607 = arith.divf %605, %606 : vector<8x64xf32>
    %608 = vector.extract_strided_slice %607 {offsets = [0, 0], sizes = [8, 32], strides = [1, 1]} : vector<8x64xf32> to vector<8x32xf32>
    %609 = vector.extract_strided_slice %607 {offsets = [0, 32], sizes = [8, 32], strides = [1, 1]} : vector<8x64xf32> to vector<8x32xf32>
    %610 = vector.extract_strided_slice %11 {offsets = [0, 64], sizes = [8, 32], strides = [1, 1]} : vector<8x96xf32> to vector<8x32xf32>
    %611 = vector.extract_strided_slice %599 {offsets = [0, 64], sizes = [8, 32], strides = [1, 1]} : vector<8x96xf32> to vector<8x32xf32>
    %612 = arith.mulf %608, %611 : vector<8x32xf32>
    %613 = arith.addf %610, %612 : vector<8x32xf32>
    %614 = math.tanh %613 : vector<8x32xf32>
    %615 = arith.subf %573, %614 : vector<8x32xf32>
    %616 = arith.mulf %609, %615 : vector<8x32xf32>
    %617 = arith.addf %614, %616 : vector<8x32xf32>
    %cst_133 = arith.constant dense<0.000000e+00> : vector<8x96xf32>
    %618 = tpu.matmul %617, %2, %cst_133 {dimension_numbers = #tpu.dot_dimension_numbers<[1], [0], [0], [1], [0, 0, 1, 1], [], []>} : vector<8x32xf32>, vector<32x96xf32>, vector<8x96xf32> -> vector<8x96xf32>
    %c40_134 = arith.constant 40 : index
    %c0_135 = arith.constant 0 : index
    %619 = vector.load %arg16[%c40_134, %c0_135] : memref<56x96xf32, #tpu.memory_space<vmem>>, vector<8x96xf32>
    %620 = arith.addf %618, %619 : vector<8x96xf32>
    %cst_136 = arith.constant dense<0.000000e+00> : vector<8x96xf32>
    %621 = tpu.matmul %596, %1, %cst_136 {dimension_numbers = #tpu.dot_dimension_numbers<[1], [0], [0], [1], [0, 0, 1, 1], [], []>} : vector<8x32xf32>, vector<32x96xf32>, vector<8x96xf32> -> vector<8x96xf32>
    %622 = arith.addf %621, %8 : vector<8x96xf32>
    %623 = vector.extract_strided_slice %620 {offsets = [0, 0], sizes = [8, 64], strides = [1, 1]} : vector<8x96xf32> to vector<8x64xf32>
    %624 = vector.extract_strided_slice %622 {offsets = [0, 0], sizes = [8, 64], strides = [1, 1]} : vector<8x96xf32> to vector<8x64xf32>
    %625 = arith.addf %623, %624 : vector<8x64xf32>
    %626 = arith.negf %625 : vector<8x64xf32>
    %627 = math.exp %626 : vector<8x64xf32>
    %cst_137 = arith.constant 1.000000e+00 : f32
    %628 = vector.broadcast %cst_137 : f32 to vector<8x64xf32>
    %629 = arith.addf %628, %627 : vector<8x64xf32>
    %630 = arith.divf %628, %629 : vector<8x64xf32>
    %631 = vector.extract_strided_slice %630 {offsets = [0, 0], sizes = [8, 32], strides = [1, 1]} : vector<8x64xf32> to vector<8x32xf32>
    %632 = vector.extract_strided_slice %630 {offsets = [0, 32], sizes = [8, 32], strides = [1, 1]} : vector<8x64xf32> to vector<8x32xf32>
    %633 = vector.extract_strided_slice %620 {offsets = [0, 64], sizes = [8, 32], strides = [1, 1]} : vector<8x96xf32> to vector<8x32xf32>
    %634 = vector.extract_strided_slice %622 {offsets = [0, 64], sizes = [8, 32], strides = [1, 1]} : vector<8x96xf32> to vector<8x32xf32>
    %635 = arith.mulf %631, %634 : vector<8x32xf32>
    %636 = arith.addf %633, %635 : vector<8x32xf32>
    %637 = math.tanh %636 : vector<8x32xf32>
    %638 = arith.subf %596, %637 : vector<8x32xf32>
    %639 = arith.mulf %632, %638 : vector<8x32xf32>
    %640 = arith.addf %637, %639 : vector<8x32xf32>
    %c40_138 = arith.constant 40 : index
    %c0_139 = arith.constant 0 : index
    %641 = vector.load %arg17[%c40_138, %c0_139] : memref<56x32xf32, #tpu.memory_space<vmem>>, vector<8x32xf32>
    tpu.vector_store %arg17[%c40_138, %c0_139], %640 {strides = array<i32>} : memref<56x32xf32, #tpu.memory_space<vmem>>, vector<8x32xf32>,
    %cst_140 = arith.constant dense<0.000000e+00> : vector<8x96xf32>
    %642 = tpu.matmul %617, %0, %cst_140 {dimension_numbers = #tpu.dot_dimension_numbers<[1], [0], [0], [1], [0, 0, 1, 1], [], []>} : vector<8x32xf32>, vector<32x96xf32>, vector<8x96xf32> -> vector<8x96xf32>
    %643 = arith.addf %642, %5 : vector<8x96xf32>
    %644 = vector.extract_strided_slice %11 {offsets = [0, 0], sizes = [8, 64], strides = [1, 1]} : vector<8x96xf32> to vector<8x64xf32>
    %645 = vector.extract_strided_slice %643 {offsets = [0, 0], sizes = [8, 64], strides = [1, 1]} : vector<8x96xf32> to vector<8x64xf32>
    %646 = arith.addf %644, %645 : vector<8x64xf32>
    %647 = arith.negf %646 : vector<8x64xf32>
    %648 = math.exp %647 : vector<8x64xf32>
    %cst_141 = arith.constant 1.000000e+00 : f32
    %649 = vector.broadcast %cst_141 : f32 to vector<8x64xf32>
    %650 = arith.addf %649, %648 : vector<8x64xf32>
    %651 = arith.divf %649, %650 : vector<8x64xf32>
    %652 = vector.extract_strided_slice %651 {offsets = [0, 0], sizes = [8, 32], strides = [1, 1]} : vector<8x64xf32> to vector<8x32xf32>
    %653 = vector.extract_strided_slice %651 {offsets = [0, 32], sizes = [8, 32], strides = [1, 1]} : vector<8x64xf32> to vector<8x32xf32>
    %654 = vector.extract_strided_slice %11 {offsets = [0, 64], sizes = [8, 32], strides = [1, 1]} : vector<8x96xf32> to vector<8x32xf32>
    %655 = vector.extract_strided_slice %643 {offsets = [0, 64], sizes = [8, 32], strides = [1, 1]} : vector<8x96xf32> to vector<8x32xf32>
    %656 = arith.mulf %652, %655 : vector<8x32xf32>
    %657 = arith.addf %654, %656 : vector<8x32xf32>
    %658 = math.tanh %657 : vector<8x32xf32>
    %659 = arith.subf %617, %658 : vector<8x32xf32>
    %660 = arith.mulf %653, %659 : vector<8x32xf32>
    %661 = arith.addf %658, %660 : vector<8x32xf32>
    %cst_142 = arith.constant dense<0.000000e+00> : vector<8x96xf32>
    %662 = tpu.matmul %661, %2, %cst_142 {dimension_numbers = #tpu.dot_dimension_numbers<[1], [0], [0], [1], [0, 0, 1, 1], [], []>} : vector<8x32xf32>, vector<32x96xf32>, vector<8x96xf32> -> vector<8x96xf32>
    %c48_143 = arith.constant 48 : index
    %c0_144 = arith.constant 0 : index
    %663 = vector.load %arg16[%c48_143, %c0_144] : memref<56x96xf32, #tpu.memory_space<vmem>>, vector<8x96xf32>
    %664 = arith.addf %662, %663 : vector<8x96xf32>
    %cst_145 = arith.constant dense<0.000000e+00> : vector<8x96xf32>
    %665 = tpu.matmul %640, %1, %cst_145 {dimension_numbers = #tpu.dot_dimension_numbers<[1], [0], [0], [1], [0, 0, 1, 1], [], []>} : vector<8x32xf32>, vector<32x96xf32>, vector<8x96xf32> -> vector<8x96xf32>
    %666 = arith.addf %665, %8 : vector<8x96xf32>
    %667 = vector.extract_strided_slice %664 {offsets = [0, 0], sizes = [8, 64], strides = [1, 1]} : vector<8x96xf32> to vector<8x64xf32>
    %668 = vector.extract_strided_slice %666 {offsets = [0, 0], sizes = [8, 64], strides = [1, 1]} : vector<8x96xf32> to vector<8x64xf32>
    %669 = arith.addf %667, %668 : vector<8x64xf32>
    %670 = arith.negf %669 : vector<8x64xf32>
    %671 = math.exp %670 : vector<8x64xf32>
    %cst_146 = arith.constant 1.000000e+00 : f32
    %672 = vector.broadcast %cst_146 : f32 to vector<8x64xf32>
    %673 = arith.addf %672, %671 : vector<8x64xf32>
    %674 = arith.divf %672, %673 : vector<8x64xf32>
    %675 = vector.extract_strided_slice %674 {offsets = [0, 0], sizes = [8, 32], strides = [1, 1]} : vector<8x64xf32> to vector<8x32xf32>
    %676 = vector.extract_strided_slice %674 {offsets = [0, 32], sizes = [8, 32], strides = [1, 1]} : vector<8x64xf32> to vector<8x32xf32>
    %677 = vector.extract_strided_slice %664 {offsets = [0, 64], sizes = [8, 32], strides = [1, 1]} : vector<8x96xf32> to vector<8x32xf32>
    %678 = vector.extract_strided_slice %666 {offsets = [0, 64], sizes = [8, 32], strides = [1, 1]} : vector<8x96xf32> to vector<8x32xf32>
    %679 = arith.mulf %675, %678 : vector<8x32xf32>
    %680 = arith.addf %677, %679 : vector<8x32xf32>
    %681 = math.tanh %680 : vector<8x32xf32>
    %682 = arith.subf %640, %681 : vector<8x32xf32>
    %683 = arith.mulf %676, %682 : vector<8x32xf32>
    %684 = arith.addf %681, %683 : vector<8x32xf32>
    %c48_147 = arith.constant 48 : index
    %c0_148 = arith.constant 0 : index
    %685 = vector.load %arg17[%c48_147, %c0_148] : memref<56x32xf32, #tpu.memory_space<vmem>>, vector<8x32xf32>
    tpu.vector_store %arg17[%c48_147, %c0_148], %684 {strides = array<i32>} : memref<56x32xf32, #tpu.memory_space<vmem>>, vector<8x32xf32>,
    %c0_149 = arith.constant 0 : index
    %c0_150 = arith.constant 0 : index
    %686 = vector.load %arg17[%c0_149, %c0_150] : memref<56x32xf32, #tpu.memory_space<vmem>>, vector<56x32xf32>
    %c0_151 = arith.constant 0 : index
    %c0_152 = arith.constant 0 : index
    %687 = vector.load %arg12[%c0_151, %c0_152] : memref<32x128xf32, #tpu.memory_space<vmem>>, vector<32x128xf32>
    %cst_153 = arith.constant dense<0.000000e+00> : vector<56x128xf32>
    %688 = tpu.matmul %686, %687, %cst_153 {dimension_numbers = #tpu.dot_dimension_numbers<[1], [0], [0], [1], [0, 0, 1, 1], [], []>} : vector<56x32xf32>, vector<32x128xf32>, vector<56x128xf32> -> vector<56x128xf32>
    %c0_154 = arith.constant 0 : index
    %c0_155 = arith.constant 0 : index
    %689 = vector.load %arg13[%c0_154, %c0_155] : memref<1x128xf32, #tpu.memory_space<vmem>>, vector<1x128xf32>
    %690 = vector.broadcast %689 : vector<1x128xf32> to vector<56x128xf32>
    %691 = arith.addf %688, %690 : vector<56x128xf32>
    %cst_156 = arith.constant dense<0xFF800000> : vector<56xf32>
    %692 = vector.multi_reduction <maximumf>, %691, %cst_156 [1] : vector<56x128xf32> to vector<56xf32>
    %693 = vector.shape_cast %692 : vector<56xf32> to vector<56x1xf32>
    %694 = vector.broadcast %693 : vector<56x1xf32> to vector<56x128xf32>
    %695 = arith.subf %691, %694 : vector<56x128xf32>
    %696 = math.exp %695 : vector<56x128xf32>
    %cst_157 = arith.constant dense<0.000000e+00> : vector<56xf32>
    %697 = vector.multi_reduction <add>, %696, %cst_157 [1] : vector<56x128xf32> to vector<56xf32>
    %698 = vector.shape_cast %697 : vector<56xf32> to vector<56x1xf32>
    %699 = math.log %698 : vector<56x1xf32>
    %700 = arith.addf %699, %693 : vector<56x1xf32>
    %701 = vector.broadcast %700 : vector<56x1xf32> to vector<56x128xf32>
    %702 = arith.subf %691, %701 : vector<56x128xf32>
    %c0_158 = arith.constant 0 : index
    %c0_159 = arith.constant 0 : index
    %703 = vector.load %arg14[%c0_158, %c0_159] : memref<56x128xf32, #tpu.memory_space<vmem>>, vector<56x128xf32>
    tpu.vector_store %arg14[%c0_158, %c0_159], %702 {strides = array<i32>} : memref<56x128xf32, #tpu.memory_space<vmem>>, vector<56x128xf32>,
    return
  }
}

</mosaic_0001>

<bundles_post_ra>
// kernel: tpu_custom_call.1
= control target key start
LH: loop header
LB: loop body
LE: loop exit
PB: predicated region body
PF: predicated region fallthrough
CT: control target
= control target key end

     0   :  { %19 = vsyncpa [#allocation6], 0  ;;  %s7762_s0 = inlined_call_operand.vmem [shape: f32[64,64], index: 0, kind: input, shape index: {}]   ;;  %s7763_s1 = inlined_call_operand.hbm [shape: f32[8,32], index: 1, kind: input, shape index: {}]   ;;  %s7764_s2 = inlined_call_operand.vmem [shape: f32[56,32], index: 2, kind: input, shape index: {}]   ;;  %s7765_s3 = inlined_call_operand.hbm [shape: f32[64,96], index: 3, kind: input, shape index: {}]   ;;  %s7766_s4 = inlined_call_operand.vmem [shape: f32[32,96], index: 4, kind: input, shape index: {}]   ;;  %s7767_s5 = inlined_call_operand.vmem [shape: f32[1,96], index: 5, kind: input, shape index: {}]   ;;  %s7768_s6 = inlined_call_operand.hbm [shape: f32[1,96], index: 6, kind: input, shape index: {}]   ;;  %s7769_s7 = inlined_call_operand.hbm [shape: f32[32,96], index: 7, kind: input, shape index: {}]   ;;  %s7770_s8 = inlined_call_operand.hbm [shape: f32[32,96], index: 8, kind: input, shape index: {}]   ;;  %s7771_s9 = inlined_call_operand.hbm [shape: f32[32,96], index: 9, kind: input, shape index: {}]   ;;  %s7772_s10 = inlined_call_operand.hbm [shape: f32[1,96], index: 10, kind: input, shape index: {}]   ;;  %s7773_s11 = inlined_call_operand.hbm [shape: f32[1,96], index: 11, kind: input, shape index: {}]   ;;  %s7774_s12 = inlined_call_operand.vmem [shape: f32[32,128], index: 12, kind: input, shape index: {}]   ;;  %s7775_s13 = inlined_call_operand.vmem [shape: f32[1,128], index: 13, kind: input, shape index: {}]   ;;  %s7776_s14 = inlined_call_operand.hbm [shape: f32[56,128], index: 14, kind: output, shape index: {}]  }
   0x1   :  { %20 = vsyncpa [#allocation9], 0 }
   0x2   :  { %21 = vsyncpa [#allocation12], 0 }
   0x3   :  { %22 = vsyncpa [#allocation15], 0 }
   0x4   :  { %23 = vsyncpa [#allocation18], 0 }
   0x5   :  { %24 = vsyncpa [#allocation7], 0  ;;  %s6711_s29 = smov [#allocation8]   ;;  %s6501_s17 = scalar_lea.hbm %s7765_s3, 1024 }
   0x6   :  { %s44_s30 = sshll.u32 %s6711_s29, 4  ;;  %p6502_p0 = scmp.ne.s32.totalorder %s7765_s3, %s6501_s17  ;;  %s45_s30 = int_to_ptr.vmem [resolvable:$true] %s44_s30 }
   0x7   :  { %p6505_p1 = scmp.lt.u32.totalorder %s6501_s17, %s7765_s3 }
   0x9   :  { %p6507_p2 = pnand %p6505_p1, %p6502_p0 }
   0xb   :  { %6510 = shalt.err (!%p6507_p2)
}
   0xc   :  { %s6511_s22 = scalar_lea.vmem %s45_s30, 1024  ;;  %p6516_p4 = scmp.lt.s32.totalorder %s45_s30, %s45_s30 }
   0xd   :  { %p6512_p3 = scmp.ne.s32.totalorder %s45_s30, %s6511_s22  ;;  %p6517_p5 = scmp.lt.s32.totalorder %s6511_s22, %s6511_s22 }
   0xf   :  { %p6518_p6 = por %p6517_p5, %p6516_p4 }
  0x11   :  { %p6519_p7 = pnand %p6518_p6, %p6512_p3 }
  0x13   :  { %6522 = shalt.err (!%p6519_p7)
}
  0x14   :  { %s6712_s23 = smov 128   ;;  %s6713_s24 = smov 8  }
  0x15   :  { %50 = dma.hbm_to_vmem [thread:$0]  %s7765_s3, 1024, %s45_s30, [#allocation9], %s6712_s23, %s6712_s23, %s6713_s24  }
  0x16   :  { %s6714_s27 = smov [#allocation11]   ;;  %s6715_s29 = smov [#allocation14]  }
  0x17   :  { %s70_s28 = sshll.u32 %s6714_s27, 4  ;;  %s94_s15 = sshll.u32 %s6715_s29, 4  ;;  %s71_s28 = int_to_ptr.vmem [resolvable:$true] %s70_s28  ;;  %s95_s15 = int_to_ptr.vmem [resolvable:$true] %s94_s15 }
  0x18   :  { %s6523_s18 = scalar_lea.hbm %s7769_s7, 512 }
  0x19   :  { %p6524_p8 = scmp.ne.s32.totalorder %s7769_s7, %s6523_s18  ;;  %p6527_p9 = scmp.lt.u32.totalorder %s6523_s18, %s7769_s7 }
  0x1b   :  { %p6529_p10 = pnand %p6527_p9, %p6524_p8 }
  0x1d   :  { %6532 = shalt.err (!%p6529_p10)
}
  0x1e   :  { %s6533_s3 = scalar_lea.vmem %s71_s28, 512  ;;  %p6538_p12 = scmp.lt.s32.totalorder %s71_s28, %s71_s28 }
  0x1f   :  { %p6534_p11 = scmp.ne.s32.totalorder %s71_s28, %s6533_s3  ;;  %p6539_p13 = scmp.lt.s32.totalorder %s6533_s3, %s6533_s3 }
  0x21   :  { %p6540_p0 = por %p6539_p13, %p6538_p12 }
  0x23   :  { %p6541_p1 = pnand %p6540_p0, %p6534_p11 }
  0x25   :  { %6544 = shalt.err (!%p6541_p1)
}
  0x26   :  { %76 = dma.hbm_to_vmem [thread:$0]  %s7769_s7, 512, %s71_s28, [#allocation12], %s6712_s23, %s6712_s23, %s6713_s24  }
  0x27   :  { %s6545_s29 = scalar_lea.hbm %s7771_s9, 512 }
  0x28   :  { %p6546_p2 = scmp.ne.s32.totalorder %s7771_s9, %s6545_s29  ;;  %p6549_p3 = scmp.lt.u32.totalorder %s6545_s29, %s7771_s9 }
  0x2a   :  { %p6551_p4 = pnand %p6549_p3, %p6546_p2 }
  0x2c   :  { %6554 = shalt.err (!%p6551_p4)
}
  0x2d   :  { %s6555_s20 = scalar_lea.vmem %s95_s15, 512  ;;  %p6560_p6 = scmp.lt.s32.totalorder %s95_s15, %s95_s15 }
  0x2e   :  { %p6556_p5 = scmp.ne.s32.totalorder %s95_s15, %s6555_s20  ;;  %p6561_p7 = scmp.lt.s32.totalorder %s6555_s20, %s6555_s20 }
  0x30   :  { %p6562_p8 = por %p6561_p7, %p6560_p6 }
  0x32   :  { %p6563_p9 = pnand %p6562_p8, %p6556_p5 }
  0x34   :  { %6566 = shalt.err (!%p6563_p9)
}
  0x35   :  { %100 = dma.hbm_to_vmem [thread:$0]  %s7771_s9, 512, %s95_s15, [#allocation15], %s6712_s23, %s6712_s23, %s6713_s24  }
  0x36   :  { %s6716_s21 = smov [#allocation5]   ;;  %s6717_s3 = smov [#allocation10]  }
  0x37   :  { %s33_s22 = sshll.u32 %s6716_s21, 4  ;;  %s61_s30 = sshll.u32 %s6717_s3, 4  ;;  %s34_s22 = int_to_ptr.vmem [resolvable:$true] %s33_s22  ;;  %s62_s30 = int_to_ptr.vmem [resolvable:$true] %s61_s30 }
  0x38   :  { %s6567_s27 = scalar_lea.hbm %s7763_s1, 128 }
  0x39   :  { %p6568_p10 = scmp.ne.s32.totalorder %s7763_s1, %s6567_s27  ;;  %p6571_p11 = scmp.lt.u32.totalorder %s6567_s27, %s7763_s1 }
  0x3b   :  { %p6573_p12 = pnand %p6571_p11, %p6568_p10 }
  0x3d   :  { %6576 = shalt.err (!%p6573_p12)
}
  0x3e   :  { %s6577_s9 = scalar_lea.vmem %s34_s22, 128  ;;  %p6582_p0 = scmp.lt.s32.totalorder %s34_s22, %s34_s22 }
  0x3f   :  { %p6578_p13 = scmp.ne.s32.totalorder %s34_s22, %s6577_s9  ;;  %p6583_p1 = scmp.lt.s32.totalorder %s6577_s9, %s6577_s9 }
  0x41   :  { %p6584_p2 = por %p6583_p1, %p6582_p0 }
  0x43   :  { %p6585_p3 = pnand %p6584_p2, %p6578_p13 }
  0x45   :  { %6588 = shalt.err (!%p6585_p3)
}
  0x46   :  { %36 = dma.hbm_to_vmem [thread:$0]  %s7763_s1, 128, %s34_s22, [#allocation6]  }
  0x47   :  { %s6589_s28 = scalar_lea.hbm %s7768_s6, 16 }
  0x48   :  { %p6590_p4 = scmp.ne.s32.totalorder %s7768_s6, %s6589_s28  ;;  %p6593_p5 = scmp.lt.u32.totalorder %s6589_s28, %s7768_s6 }
  0x4a   :  { %p6595_p6 = pnand %p6593_p5, %p6590_p4 }
  0x4c   :  { %6598 = shalt.err (!%p6595_p6)
}
  0x4d   :  { %s6599_s27 = scalar_lea.vmem %s62_s30, 16  ;;  %s6603_s29 = scalar_lea.vmem %s62_s30, 32 }
  0x4e   :  { %p6600_p7 = scmp.ne.s32.totalorder %s62_s30, %s6599_s27  ;;  %p6604_p8 = scmp.lt.s32.totalorder %s62_s30, %s62_s30 }
  0x4f   :  { %p6605_p9 = scmp.lt.s32.totalorder %s6603_s29, %s6599_s27 }
  0x51   :  { %p6606_p10 = por %p6605_p9, %p6604_p8 }
  0x53   :  { %p6607_p11 = pnand %p6606_p10, %p6600_p7 }
  0x55   :  { %6610 = shalt.err (!%p6607_p11)
}
  0x56   :  { %64 = dma.hbm_to_vmem [thread:$0]  %s7768_s6, 16, %s62_s30, [#allocation9]  }
  0x57   :  { %s6718_s16 = smov [#allocation13]   ;;  %s6719_s18 = smov [#allocation16]  }
  0x58   :  { %s82_s17 = sshll.u32 %s6718_s16, 4  ;;  %s107_s9 = sshll.u32 %s6719_s18, 4  ;;  %s83_s17 = int_to_ptr.vmem [resolvable:$true] %s82_s17  ;;  %s108_s9 = int_to_ptr.vmem [resolvable:$true] %s107_s9 }
  0x59   :  { %s6611_s20 = scalar_lea.hbm %s7770_s8, 512 }
  0x5a   :  { %p6612_p12 = scmp.ne.s32.totalorder %s7770_s8, %s6611_s20  ;;  %p6615_p13 = scmp.lt.u32.totalorder %s6611_s20, %s7770_s8 }
  0x5c   :  { %p6617_p0 = pnand %p6615_p13, %p6612_p12 }
  0x5e   :  { %6620 = shalt.err (!%p6617_p0)
}
  0x5f   :  { %s6621_s6 = scalar_lea.vmem %s83_s17, 512  ;;  %p6626_p2 = scmp.lt.s32.totalorder %s83_s17, %s83_s17 }
  0x60   :  { %p6622_p1 = scmp.ne.s32.totalorder %s83_s17, %s6621_s6  ;;  %p6627_p3 = scmp.lt.s32.totalorder %s6621_s6, %s6621_s6 }
  0x62   :  { %p6628_p4 = por %p6627_p3, %p6626_p2 }
  0x64   :  { %p6629_p5 = pnand %p6628_p4, %p6622_p1 }
  0x66   :  { %6632 = shalt.err (!%p6629_p5)
}
  0x67   :  { %88 = dma.hbm_to_vmem [thread:$0]  %s7770_s8, 512, %s83_s17, [#allocation12], %s6712_s23, %s6712_s23, %s6713_s24  }
  0x68   :  { %s6633_s29 = scalar_lea.hbm %s7772_s10, 16 }
  0x69   :  { %p6634_p6 = scmp.ne.s32.totalorder %s7772_s10, %s6633_s29  ;;  %p6637_p7 = scmp.lt.u32.totalorder %s6633_s29, %s7772_s10 }
  0x6b   :  { %p6639_p8 = pnand %p6637_p7, %p6634_p6 }
  0x6d   :  { %6642 = shalt.err (!%p6639_p8)
}
  0x6e   :  { %s6643_s15 = scalar_lea.vmem %s108_s9, 16  ;;  %s6647_s19 = scalar_lea.vmem %s108_s9, 32 }
  0x6f   :  { %p6644_p9 = scmp.ne.s32.totalorder %s108_s9, %s6643_s15  ;;  %p6648_p10 = scmp.lt.s32.totalorder %s108_s9, %s108_s9 }
  0x70   :  { %p6649_p11 = scmp.lt.s32.totalorder %s6647_s19, %s6643_s15 }
  0x72   :  { %p6650_p12 = por %p6649_p11, %p6648_p10 }
  0x74   :  { %p6651_p13 = pnand %p6650_p12, %p6644_p9 }
  0x76   :  { %6654 = shalt.err (!%p6651_p13)
}
  0x77   :  { %110 = dma.hbm_to_vmem [thread:$0]  %s7772_s10, 16, %s108_s9, [#allocation15]  }
  0x78   :  { %s6720_s20 = smov [#allocation17]   ;;  %s6655_s3 = scalar_lea.hbm %s7773_s11, 16 }
  0x79   :  { %s117_s7 = sshll.u32 %s6720_s20, 4  ;;  %p6656_p0 = scmp.ne.s32.totalorder %s7773_s11, %s6655_s3  ;;  %s118_s7 = int_to_ptr.vmem [resolvable:$true] %s117_s7 }
  0x7a   :  { %p6659_p1 = scmp.lt.u32.totalorder %s6655_s3, %s7773_s11 }
  0x7c   :  { %p6661_p2 = pnand %p6659_p1, %p6656_p0 }
  0x7e   :  { %6664 = shalt.err (!%p6661_p2)
}
  0x7f   :  { %s6665_s27 = scalar_lea.vmem %s118_s7, 16  ;;  %s6669_s10 = scalar_lea.vmem %s118_s7, 32 }
  0x80   :  { %p6666_p3 = scmp.ne.s32.totalorder %s118_s7, %s6665_s27  ;;  %p6670_p4 = scmp.lt.s32.totalorder %s118_s7, %s118_s7 }
  0x81   :  { %p6671_p5 = scmp.lt.s32.totalorder %s6669_s10, %s6665_s27 }
  0x83   :  { %p6672_p6 = por %p6671_p5, %p6670_p4 }
  0x85   :  { %p6673_p7 = pnand %p6672_p6, %p6666_p3 }
  0x87   :  { %6676 = shalt.err (!%p6673_p7)
}
  0x88   :  { %120 = dma.hbm_to_vmem [thread:$0]  %s7773_s11, 16, %s118_s7, [#allocation18]  }
  0x89   :  { %6699 = dma.done.wait [#allocation6], 128  }
  0x8a   :  { %6700 = vsyncadd [#allocation6], 4294967168 }
  0x8b   :  { %6701 = dma.done.wait [#allocation9], 1040  }
  0x8c   :  { %6702 = vsyncadd [#allocation9], 4294966256 }
  0x8d   :  { %6703 = dma.done.wait [#allocation12], 1024  }
  0x8e   :  { %6704 = vsyncadd [#allocation12], 4294966272 }
  0x8f   :  { %6705 = dma.done.wait [#allocation15], 528  }
  0x90   :  { %6706 = vsyncadd [#allocation15], 4294966768 }
  0x91   :  { %6707 = dma.done.wait [#allocation18], 16  }
  0x92   :  { %6708 = vsyncadd [#allocation18], 4294967280  ;;  %v6721_v0 = vmov 0.0|0.0   ;;  %vm6722_vm0 = vmmov 0   ;;  %v6723_v1 = vmov 0.0   ;;  %v184_v2 = vld [vmem:[#allocation8] sm:$0xff] }
  0x93   :  { %5979 = vmatprep.subr.bf16.mxu1 %v6721_v0  ;;  %5407 = vmatprep.mubr.msk.f32.mxu1 %vm6722_vm0, %v6723_v1  ;;  %v185_v3 = vld [vmem:[#allocation8 + $0x8] sm:$0xff]  ;;  %v186_v4 = vld [vmem:[#allocation8 + $0x10] sm:$0xff]  ;;  %vm198_vm1 = vcmask 523264   ;;  %v187_v6 = vld [vmem:[#allocation8 + $0x18] sm:$0xff]  ;;  %vm328_vm2 = vcmask 785408   ;;  %s6725_s16 = smov 96  }
  0x94   :  { %v5963_v5 = vpack.c.bf16 %v185_v3, %v184_v2  ;;  %v5967_v7 = vpack.c.bf16 %v187_v6, %v186_v4  ;;  %v188_v8 = vld [vmem:[#allocation8 + $0x20] sm:$0xff]  ;;  %v189_v9 = vld [vmem:[#allocation8 + $0x28] sm:$0xff]  ;;  %v190_v12 = vld [vmem:[#allocation8 + $0x30] sm:$0xff]  ;;  %vm349_vm3 = vcmask 261120   ;;  %s6726_s18 = smov 32  }
  0x95   :  { %v176_v10 = vld [vmem:[%s7762_s0] sm:$0xff]  ;;  %v5971_v11 = vpack.c.bf16 %v189_v9, %v188_v8  ;;  %v191_v13 = vld [vmem:[#allocation8 + $0x38] sm:$0xff]  ;;  %v150_v16 = vld [vmem:[%s7766_s4 + $0x8] sm:$0xff] }
  0x96   :  { %5964 = vmatprep.subr.bf16.mxu0 %v5963_v5  ;;  %5387 = vmatprep.mubr.msk.f32.mxu0 %vm198_vm1, %v176_v10  ;;  %v5975_v14 = vpack.c.bf16 %v191_v13, %v190_v12  ;;  %v149_v15 = vld [vmem:[%s7766_s4] sm:$0xff]  ;;  %v177_v17 = vld [vmem:[%s7762_s0 + $0x8] sm:$0xff]  ;;  %v178_v19 = vld [vmem:[%s7762_s0 + $0x10] sm:$0xff] }
  0x97   :  { %5966 = vmatpush3.bf16.msra.mxu0 %v5963_v5  ;;  %v6927_v18 = vpack.c.bf16 %v150_v16, %v149_v15  ;;  %v151_v20 = vld [vmem:[%s7766_s4 + $0x10] sm:$0xff]  ;;  %v152_v21 = vld [vmem:[%s7766_s4 + $0x18] sm:$0xff]  ;;  %v180_v24 = vld [vmem:[%s7762_s0 + $0x20] sm:$0xff] }
  0x98   :  { %5968 = vmatprep.subr.bf16.mxu0 %v5967_v7  ;;  %v179_v22 = vld [vmem:[%s7762_s0 + $0x18] sm:$0xff]  ;;  %v6945_v23 = vpack.c.bf16 %v152_v21, %v151_v20  ;;  %v181_v25 = vld [vmem:[%s7762_s0 + $0x28] sm:$0xff]  ;;  %v182_v26 = vld [vmem:[%s7762_s0 + $0x30] sm:$0xff] }
  0x99   :  { %v183_v27 = vld [vmem:[%s7762_s0 + $0x38] sm:$0xff]  ;;  %v5004_v28 = vld [vmem:[%s7767_s5] ss:$0 sm:$0xff]  ;;  %s6724_s0 = smov 64   ;;  %v339_v62 = vld [vmem:[#allocation13 + $0x8] sm:$0xff] }
  0x9a   :  { %v6981_v45 = vld [vmem:[#allocation10] ss:$0 sm:$0xff]  ;;  %v338_v61 = vld [vmem:[#allocation13] sm:$0xff]  ;;  %v340_v63 = vld [vmem:[#allocation13 + $0x10] sm:$0xff] }
  0x9b   :  { %5970 = vmatpush3.bf16.msra.mxu0 %v5967_v7  ;;  %v5980_v2 = vpack.c.bf16 %v339_v62, %v338_v61  ;;  %v341_v3 = vld [vmem:[#allocation13 + $0x18] sm:$0xff]  ;;  %v157_v5 = vld [vmem:[#allocation11] sm:$0xff]  ;;  %v158_v6 = vld [vmem:[#allocation11 + $0x8] sm:$0xff] }
  0x9c   :  { %5972 = vmatprep.subr.bf16.mxu0 %v5971_v11  ;;  %v5983_v4 = vpack.c.bf16 %v341_v3, %v340_v63  ;;  %v6993_v7 = vpack.c.bf16 %v158_v6, %v157_v5  ;;  %v159_v8 = vld [vmem:[#allocation11 + $0x10] sm:$0xff]  ;;  %v160_v9 = vld [vmem:[#allocation11 + $0x18] sm:$0xff]  ;;  %v154_v15 = vld [vmem:[#allocation14 + $0x8] sm:$0xff] }
  0x9d   :  { %5981 = vmatpush3.bf16.msra.mxu1 %v5980_v2  ;;  %v337_v10 = vld [vmem:[#allocation5] sm:$0xff]  ;;  %v6998_v13 = vpack.c.bf16 %v160_v9, %v159_v8  ;;  %v423_v16 = vld [vmem:[%s7764_s2] sm:$0xff]  ;;  %v424_v21 = vld [vmem:[%s7764_s2 + $0x8] sm:$0xff] }
  0x9e   :  { %5982 = vmatprep.subr.bf16.mxu1 %v6721_v0  ;;  %v156_v20 = vld [vmem:[#allocation14 + $0x18] sm:$0xff]  ;;  %v7094_v3 = vld [vmem:[#allocation17] ss:$0 sm:$0xff] }
  0x9f   :  { %5974 = vmatpush3.bf16.msra.mxu0 %v5971_v11 }
  0xa0   :  { %5976 = vmatprep.subr.bf16.mxu0 %v5975_v14 }
  0xa1   :  { %5984 = vmatpush3.bf16.msra.mxu1 %v5983_v4 }
  0xa2   :  { %5985 = vmatprep.subr.bf16.mxu1 %v6721_v0 }
  0xa3   :  { %5978 = vmatpush3.bf16.msra.mxu0 %v5975_v14  ;;  %v153_v14 = vld [vmem:[#allocation14] sm:$0xff] }
  0xa4   :  { %5991 = vmatprep.subr.bf16.mxu0 %v6721_v0  ;;  %5408 = vmatmul.mubr.msk.f32.vlgmr.msra.gmra.mrb[0].mxu1 %vm349_vm3, %v337_v10 }
  0xa5   :  { %5987 = vmatpush3.bf16.msra.mxu1 %v5980_v2  ;;  %5418 = vmatprep.mubr.msk.f32.mxu1 %vm6722_vm0, %v6723_v1 }
  0xa6   :  { %5388 = vmatmul.mubr.msk.f32.vlgmr.msra.gmra.mrb[0].mxu0 %vm198_vm1, %v177_v17  ;;  %5988 = vmatprep.subr.bf16.mxu1 %v6721_v0  ;;  %v7010_v17 = vpack.c.bf16 %v154_v15, %v153_v14 }
  0xa7   :  { %5993 = vmatpush3.bf16.msra.mxu0 %v6927_v18  ;;  %5390 = vmatprep.mubr.msk.f32.mxu0 %vm198_vm1, %v178_v19  ;;  %v155_v19 = vld [vmem:[#allocation14 + $0x10] sm:$0xff] }
  0xa8   :  { %5994 = vmatprep.subr.bf16.mxu0 %v6721_v0 }
  0xa9   :  { %5990 = vmatpush3.bf16.msra.mxu1 %v5983_v4 }
  0xaa   :  { %5391 = vmatmul.mubr.msk.f32.gmra.mrb[2].mxu0 %vm198_vm1, %v179_v22  ;;  %6003 = vmatprep.subr.bf16.mxu1 %v6721_v0  ;;  %v7020_v22 = vpack.c.bf16 %v156_v20, %v155_v19 }
  0xab   :  { %5393 = vmatprep.mubr.msk.f32.mxu0 %vm198_vm1, %v180_v24  ;;  %5996 = vmatpush3.bf16.msra.mxu0 %v6945_v23  ;;  %v425_v24 = vld [vmem:[%s7764_s2 + $0x10] sm:$0xff] }
  0xac   :  { %5997 = vmatprep.subr.bf16.mxu0 %v6721_v0  ;;  %5419 = vmatmul.mubr.msk.f32.vlgmr.msra.gmra.mrb[2].mxu1 %vm349_vm3, %v423_v16 }
  0xad   :  { %5421 = vmatprep.mubr.msk.f32.mxu1 %vm6722_vm0, %v6723_v1  ;;  %6005 = vmatpush3.bf16.msra.mxu1 %v7010_v17 }
  0xae   :  { %5394 = vmatmul.mubr.msk.f32.gmra.mrb[4].mxu0 %vm198_vm1, %v181_v25  ;;  %6006 = vmatprep.subr.bf16.mxu1 %v6721_v0  ;;  %v426_v25 = vld [vmem:[%s7764_s2 + $0x18] sm:$0xff] }
  0xaf   :  { %5396 = vmatprep.mubr.msk.f32.mxu0 %vm198_vm1, %v182_v26  ;;  %v427_v26 = vld [vmem:[%s7764_s2 + $0x20] sm:$0xff] }
  0xb0   :  { %5422 = vmatmul.mubr.msk.f32.gmra.mrb[4].mxu1 %vm349_vm3, %v424_v21 }
  0xb1   :  { %5424 = vmatprep.mubr.msk.f32.mxu1 %vm6722_vm0, %v6723_v1  ;;  %6008 = vmatpush3.bf16.msra.mxu1 %v7020_v22 }
  0xb2   :  { %5397 = vmatmul.mubr.msk.f32.gmra.mrb[6].mxu0 %vm198_vm1, %v183_v27  ;;  %6015 = vmatprep.subr.bf16.mxu1 %v6721_v0  ;;  %v428_v27 = vld [vmem:[%s7764_s2 + $0x28] sm:$0xff] }
  0xb3   :  { %5447 = vmatprep.mubr.msk.f32.mxu0 %vm6722_vm0, %v6723_v1 }
  0xb4   :  { %5425 = vmatmul.mubr.msk.f32.gmra.mrb[6].mxu1 %vm349_vm3, %v425_v24 }
  0xb5   :  { %5427 = vmatprep.mubr.msk.f32.mxu1 %vm6722_vm0, %v6723_v1 }
  0xb6   :  { %5448 = vmatmul.mubr.f32.vlgmr.msra.gmra.mrb[8].mxu0 %v6723_v1 }
  0xb7   :  { %5458 = vmatprep.mubr.msk.f32.mxu0 %vm6722_vm0, %v6723_v1  ;;  %5999 = vmatpush3.bf16.msra.mxu0 %v6993_v7 }
  0xb8   :  { %6000 = vmatprep.subr.bf16.mxu0 %v6721_v0  ;;  %5428 = vmatmul.mubr.msk.f32.gmra.mrb[8].mxu1 %vm349_vm3, %v426_v25 }
  0xb9   :  { %5430 = vmatprep.mubr.msk.f32.mxu1 %vm6722_vm0, %v6723_v1 }
  0xbb   :  { %6002 = vmatpush3.bf16.msra.mxu0 %v6998_v13 }
  0xbc   :  { %6009 = vmatprep.subr.bf16.mxu0 %v6721_v0  ;;  %5431 = vmatmul.mubr.msk.f32.gmra.mrb[10].mxu1 %vm349_vm3, %v427_v26 }
  0xbd   :  { %5433 = vmatprep.mubr.msk.f32.mxu1 %vm6722_vm0, %v6723_v1 }
  0xc0   :  { %5434 = vmatmul.mubr.msk.f32.gmra.mrb[12].mxu1 %vm349_vm3, %v428_v27 }
  0xc1   :  { %5436 = vmatprep.mubr.msk.f32.mxu1 %vm6722_vm0, %v6723_v1 }
 0x179   :  { %v5389_v29 = vpop.f32.mrb[0].mxu0 }
 0x17a   :  { %v295_v30 = vadd.f32 %v5389_v29, %v5004_v28  ;;  %v289_v31 = vpop.f32.mrb[1].mxu0 }
 0x17b   :  { %v290_v32 = vadd.f32 %v5004_v28, %v289_v31  ;;  %v5013_v31 = vld [vmem:[#allocation16] ss:$0 sm:$0xff] }
 0x17c   :  { %330 = vst.msk [vmem:[#allocation2 + $0x8] sm:$0xff] %vm328_vm2, %v295_v30 }
 0x17d   :  { %329 = vst.msk [vmem:[#allocation2] sm:$0xff] %vm328_vm2, %v290_v32  ;;  %v5392_v33 = vpop.f32.mrb[2].mxu0  ;;  %v419_v32 = vpop.f32.mrb[0].mxu1 }
 0x17e   :  { %v305_v34 = vadd.f32 %v5392_v33, %v5004_v28  ;;  %v299_v35 = vpop.f32.mrb[3].mxu0  ;;  %v7070_v33 = vadd.f32 %v5013_v31, %v419_v32 }
 0x17f   :  { %v300_v36 = vadd.f32 %v5004_v28, %v299_v35 }
 0x180   :  { %332 = vst.msk [vmem:[#allocation2 + $0x18] sm:$0xff] %vm328_vm2, %v305_v34  ;;  %v5409_v34 = vpop.f32.mrb[1].mxu1 }
 0x181   :  { %331 = vst.msk [vmem:[#allocation2 + $0x10] sm:$0xff] %vm328_vm2, %v300_v36  ;;  %v5395_v37 = vpop.f32.mrb[4].mxu0  ;;  %v517_v35 = vpop.f32.mrb[2].mxu1 }
 0x182   :  { %v315_v38 = vadd.f32 %v5395_v37, %v5004_v28  ;;  %v309_v39 = vpop.f32.mrb[5].mxu0  ;;  %v518_v36 = vadd.f32 %v5013_v31, %v517_v35  ;;  %v5420_v37 = vpop.f32.mrb[3].mxu1 }
 0x183   :  { %v310_v40 = vadd.f32 %v5004_v28, %v309_v39  ;;  %v835_v5 = vld [vmem:[#allocation2 + $0x8] sm:$0xff] }
 0x184   :  { %334 = vst.msk [vmem:[#allocation2 + $0x28] sm:$0xff] %vm328_vm2, %v315_v38  ;;  %v558_v49 = vld [vmem:[#allocation2] sm:$0xff]  ;;  %551 = vst.msk [vmem:[#allocation3] sm:$0xff] %vm328_vm2, %v518_v36  ;;  %v522_v38 = vpop.f32.mrb[4].mxu1 }
 0x185   :  { %333 = vst.msk [vmem:[#allocation2 + $0x20] sm:$0xff] %vm328_vm2, %v310_v40  ;;  %v5398_v41 = vpop.f32.mrb[6].mxu0  ;;  %v523_v39 = vadd.f32 %v5013_v31, %v522_v38  ;;  %v5423_v40 = vpop.f32.mrb[5].mxu1 }
 0x186   :  { %v325_v42 = vadd.f32 %v5398_v41, %v5004_v28  ;;  %v319_v43 = vpop.f32.mrb[7].mxu0 }
 0x187   :  { %v320_v44 = vadd.f32 %v5004_v28, %v319_v43  ;;  %v429_v28 = vld [vmem:[%s7764_s2 + $0x30] sm:$0xff]  ;;  %552 = vst.msk [vmem:[#allocation3 + $0x8] sm:$0xff] %vm328_vm2, %v523_v39  ;;  %v527_v41 = vpop.f32.mrb[6].mxu1 }
 0x188   :  { %336 = vst.msk [vmem:[#allocation2 + $0x38] sm:$0xff] %vm328_vm2, %v325_v42  ;;  %5437 = vmatmul.mubr.msk.f32.gmra.mrb[14].mxu1 %vm349_vm3, %v429_v28  ;;  %v528_v42 = vadd.f32 %v5013_v31, %v527_v41  ;;  %v5426_v43 = vpop.f32.mrb[7].mxu1 }
 0x189   :  { %335 = vst.msk [vmem:[#allocation2 + $0x30] sm:$0xff] %vm328_vm2, %v320_v44  ;;  %v628_v46 = vpop.f32.mrb[8].mxu0  ;;  %5469 = vmatprep.mubr.msk.f32.mxu1 %vm6722_vm0, %v6723_v1 }
 0x18a   :  { %v629_v47 = vadd.f32 %v6981_v45, %v628_v46  ;;  %v5449_v48 = vpop.f32.mrb[9].mxu0  ;;  %553 = vst.msk [vmem:[#allocation3 + $0x10] sm:$0xff] %vm328_vm2, %v528_v42 }
 0x18b   :  { %v532_v44 = vpop.f32.mrb[8].mxu1 }
 0x18c   :  { %640 = vrot.lane.b32.xlu0 %v629_v47, %s6724_s0  ;;  %v632_v50 = vadd.f32 %v629_v47, %v558_v49  ;;  %5470 = vmatmul.mubr.f32.vlgmr.msra.gmra.mrb[16].mxu1 %v6723_v1  ;;  %v533_v47 = vadd.f32 %v5013_v31, %v532_v44  ;;  %v5429_v48 = vpop.f32.mrb[9].mxu1 }
 0x18d   :  { %6017 = vmatpush3.bf16.msra.mxu1 %v6993_v7  ;;  %5491 = vmatprep.mubr.msk.f32.mxu1 %vm6722_vm0, %v6723_v1 }
 0x18e   :  { %v5022_v51 = vmul.f32 -1.442695, %v632_v50  ;;  %6018 = vmatprep.subr.bf16.mxu1 %v6721_v0  ;;  %554 = vst.msk [vmem:[#allocation3 + $0x18] sm:$0xff] %vm328_vm2, %v533_v47 }
 0x190   :  { %6288 = vpow2.f32 %v5022_v51 }
 0x191   :  { %6020 = vmatpush3.bf16.msra.mxu1 %v6998_v13 }
 0x192   :  { %6027 = vmatprep.subr.bf16.mxu1 %v6721_v0 }
 0x19a   :  { %v6289_v52 = vpop.eup %6288 }
 0x19b   :  { %v636_v53 = vadd.f32 1.0, %v6289_v52 }
 0x19d   :  { %6290 = vrcp.f32 %v636_v53 }
 0x1a7   :  { %v6291_v54 = vpop.eup %6290 }
 0x1fe   :  { %v641_v55 = vpop.permute.xlu0 %640 }
 0x1ff   :  { %v643_v56 = vmul.f32 %v6291_v54, %v641_v55 }
 0x201   :  { %645 = vrot.lane.b32.xlu0 %v643_v56, %s6724_s0 }
 0x273   :  { %v646_v57 = vpop.permute.xlu0 %645 }
 0x274   :  { %v648_v58 = vadd.f32 %v646_v57, %v558_v49  ;;  %v537_v49 = vpop.f32.mrb[10].mxu1 }
 0x275   :  { %v538_v50 = vadd.f32 %v5013_v31, %v537_v49  ;;  %v5432_v51 = vpop.f32.mrb[11].mxu1 }
 0x276   :  { %6292 = vtanh.f32 %v648_v58  ;;  %v542_v52 = vpop.f32.mrb[12].mxu1 }
 0x277   :  { %555 = vst.msk [vmem:[#allocation3 + $0x20] sm:$0xff] %vm328_vm2, %v538_v50  ;;  %v543_v53 = vadd.f32 %v5013_v31, %v542_v52 }
 0x279   :  { %556 = vst.msk [vmem:[#allocation3 + $0x28] sm:$0xff] %vm328_vm2, %v543_v53 }
 0x280   :  { %v6988_v59 = vpop.eup %6292 }
 0x281   :  { %v650_v60 = vsub.f32 0.0, %v6988_v59 }
 0x283   :  { %652 = vrot.lane.b32.xlu1 %v650_v60, %s6725_s16 }
 0x2f5   :  { %v653_v11 = vpop.permute.xlu1 %652 }
 0x2f6   :  { %v655_v12 = vmul.f32 %v6291_v54, %v653_v11  ;;  %v5435_v54 = vpop.f32.mrb[13].mxu1 }
 0x2f7   :  { %v547_v55 = vpop.f32.mrb[14].mxu1 }
 0x2f8   :  { %657 = vrot.lane.b32.xlu1 %v655_v12, %s6726_s18  ;;  %v548_v56 = vadd.f32 %v5013_v31, %v547_v55  ;;  %v5438_v57 = vpop.f32.mrb[15].mxu1 }
 0x2f9   :  { %v802_v58 = vpop.f32.mrb[16].mxu1  ;;  %v1114_v57 = vld [vmem:[#allocation2 + $0x10] sm:$0xff] }
 0x2fa   :  { %557 = vst.msk [vmem:[#allocation3 + $0x30] sm:$0xff] %vm328_vm2, %v548_v56  ;;  %v803_v4 = vadd.f32 %v7094_v3, %v802_v58 }
 0x36a   :  { %v658_v29 = vpop.permute.xlu1 %657 }
 0x36b   :  { %v7066_v30 = vadd.f32 %v6988_v59, %v658_v29  ;;  %v5471_v59 = vpop.f32.mrb[17].mxu1 }
 0x36d   :  { %662 = vrot.lane.b32.xlu0 %v7066_v30, %s6724_s0 }
 0x3df   :  { %v663_v46 = vpop.permute.xlu0 %662 }
 0x3e0   :  { %5459 = vmatmul.mubr.msk.f32.vlgmr.msra.gmra.mrb[10].mxu0 %vm349_vm3, %v663_v46 }
 0x3e1   :  { %6011 = vmatpush3.bf16.msra.mxu0 %v6927_v18  ;;  %5480 = vmatprep.mubr.msk.f32.mxu0 %vm6722_vm0, %v6723_v1 }
 0x3e2   :  { %6012 = vmatprep.subr.bf16.mxu0 %v6721_v0 }
 0x3e5   :  { %6014 = vmatpush3.bf16.msra.mxu0 %v6945_v23 }
 0x3e6   :  { %6021 = vmatprep.subr.bf16.mxu0 %v6721_v0 }
 0x3e8   :  { %5481 = vmatmul.mubr.msk.f32.vlgmr.msra.gmra.mrb[12].mxu0 %vm349_vm3, %v663_v46 }
 0x3e9   :  { %6023 = vmatpush3.bf16.msra.mxu0 %v7010_v17  ;;  %5502 = vmatprep.mubr.msk.f32.mxu0 %vm6722_vm0, %v6723_v1 }
 0x3ea   :  { %6024 = vmatprep.subr.bf16.mxu0 %v6721_v0 }
 0x3ed   :  { %6026 = vmatpush3.bf16.msra.mxu0 %v7020_v22 }
 0x3ee   :  { %6033 = vmatprep.subr.bf16.mxu0 %v6721_v0 }
 0x4b3   :  { %v732_v60 = vpop.f32.mrb[10].mxu0 }
 0x4b4   :  { %v5460_v61 = vpop.f32.mrb[11].mxu0  ;;  %v733_v6 = vadd.f32 %v732_v60, %v7070_v33 }
 0x4b6   :  { %v806_v9 = vadd.f32 %v803_v4, %v733_v6 }
 0x4b8   :  { %v5024_v11 = vmul.f32 -1.442695, %v806_v9 }
 0x4bb   :  { %v902_v62 = vpop.f32.mrb[12].mxu0 }
 0x4bc   :  { %v903_v63 = vadd.f32 %v6981_v45, %v902_v62  ;;  %v5482_v2 = vpop.f32.mrb[13].mxu0 }
 0x4be   :  { %914 = vrot.lane.b32.xlu1 %v903_v63, %s6724_s0  ;;  %v906_v8 = vadd.f32 %v903_v63, %v835_v5 }
 0x4c0   :  { %v5026_v10 = vmul.f32 -1.442695, %v906_v8 }
 0x4c2   :  { %814 = vrot.lane.b32.xlu1 %v803_v4, %s6724_s0  ;;  %6294 = vpow2.f32 %v5026_v10 }
 0x4c3   :  { %6296 = vpow2.f32 %v5024_v11 }
 0x4cc   :  { %v6295_v12 = vpop.eup %6294 }
 0x4cd   :  { %v910_v14 = vadd.f32 1.0, %v6295_v12  ;;  %v6297_v15 = vpop.eup %6296 }
 0x4ce   :  { %v810_v16 = vadd.f32 1.0, %v6297_v15 }
 0x4cf   :  { %6298 = vrcp.f32 %v910_v14 }
 0x4d0   :  { %6300 = vrcp.f32 %v810_v16 }
 0x4d9   :  { %v6299_v19 = vpop.eup %6298 }
 0x4da   :  { %v6301_v24 = vpop.eup %6300 }
 0x530   :  { %v915_v20 = vpop.permute.xlu1 %914 }
 0x531   :  { %v917_v21 = vmul.f32 %v6299_v19, %v915_v20 }
 0x533   :  { %919 = vrot.lane.b32.xlu0 %v917_v21, %s6724_s0 }
 0x534   :  { %v815_v25 = vpop.permute.xlu1 %814 }
 0x535   :  { %v817_v26 = vmul.f32 %v6301_v24, %v815_v25 }
 0x537   :  { %819 = vrot.lane.b32.xlu0 %v817_v26, %s6724_s0 }
 0x5a5   :  { %v920_v27 = vpop.permute.xlu0 %919 }
 0x5a6   :  { %v922_v28 = vadd.f32 %v920_v27, %v835_v5 }
 0x5a8   :  { %6302 = vtanh.f32 %v922_v28 }
 0x5a9   :  { %v820_v29 = vpop.permute.xlu0 %819 }
 0x5aa   :  { %v822_v31 = vadd.f32 %v820_v29, %v733_v6 }
 0x5ac   :  { %6304 = vtanh.f32 %v822_v31 }
 0x5b2   :  { %v6303_v32 = vpop.eup %6302 }
 0x5b3   :  { %v924_v34 = vsub.f32 %v7066_v30, %v6303_v32 }
 0x5b5   :  { %926 = vrot.lane.b32.xlu1 %v924_v34, %s6725_s16 }
 0x5b6   :  { %v6305_v35 = vpop.eup %6304 }
 0x5b7   :  { %v824_v36 = vsub.f32 0.0, %v6305_v35 }
 0x5b9   :  { %826 = vrot.lane.b32.xlu1 %v824_v36, %s6725_s16 }
 0x627   :  { %v927_v37 = vpop.permute.xlu1 %926 }
 0x628   :  { %v929_v38 = vmul.f32 %v6299_v19, %v927_v37 }
 0x62a   :  { %931 = vrot.lane.b32.xlu0 %v929_v38, %s6726_s18 }
 0x62b   :  { %v827_v39 = vpop.permute.xlu1 %826 }
 0x62c   :  { %v829_v40 = vmul.f32 %v6301_v24, %v827_v39 }
 0x62e   :  { %831 = vrot.lane.b32.xlu1 %v829_v40, %s6726_s18 }
 0x69c   :  { %v932_v41 = vpop.permute.xlu0 %931 }
 0x69d   :  { %v7107_v42 = vadd.f32 %v6303_v32, %v932_v41 }
 0x69f   :  { %936 = vrot.lane.b32.xlu0 %v7107_v42, %s6724_s0 }
 0x6a0   :  { %v832_v30 = vpop.permute.xlu1 %831 }
 0x6a1   :  { %v834_v43 = vadd.f32 %v6305_v35, %v832_v30 }
 0x6a3   :  { %1011 = vrot.lane.b32.xlu0 %v834_v43, %s6724_s0 }
 0x711   :  { %v937_v44 = vpop.permute.xlu0 %936 }
 0x712   :  { %5492 = vmatmul.mubr.msk.f32.vlgmr.msra.gmra.mrb[18].mxu1 %vm349_vm3, %v937_v44 }
 0x713   :  { %6029 = vmatpush3.bf16.msra.mxu1 %v6927_v18  ;;  %5513 = vmatprep.mubr.msk.f32.mxu1 %vm6722_vm0, %v6723_v1 }
 0x714   :  { %6030 = vmatprep.subr.bf16.mxu1 %v6721_v0 }
 0x715   :  { %v1012_v46 = vpop.permute.xlu0 %1011 }
 0x716   :  { %5503 = vmatmul.mubr.msk.f32.vlgmr.msra.gmra.mrb[14].mxu0 %vm349_vm3, %v1012_v46 }
 0x717   :  { %6032 = vmatpush3.bf16.msra.mxu1 %v6945_v23  ;;  %6035 = vmatpush3.bf16.msra.mxu0 %v6993_v7 }
 0x718   :  { %6039 = vmatprep.subr.bf16.mxu1 %v6721_v0  ;;  %6036 = vmatprep.subr.bf16.mxu0 %v6721_v0 }
 0x719   :  { %5524 = vmatprep.mubr.msk.f32.mxu0 %vm6722_vm0, %v6723_v1 }
 0x71a   :  { %5514 = vmatmul.mubr.msk.f32.vlgmr.msra.gmra.mrb[20].mxu1 %vm349_vm3, %v937_v44 }
 0x71b   :  { %6041 = vmatpush3.bf16.msra.mxu1 %v7010_v17  ;;  %6038 = vmatpush3.bf16.msra.mxu0 %v6998_v13 }
 0x71c   :  { %6042 = vmatprep.subr.bf16.mxu1 %v6721_v0  ;;  %5535 = vmatprep.mubr.msk.f32.mxu1 %vm6722_vm0, %v6723_v1 }
 0x71d   :  { %6045 = vmatprep.subr.bf16.mxu0 %v6721_v0 }
 0x71f   :  { %6044 = vmatpush3.bf16.msra.mxu1 %v7020_v22 }
 0x720   :  { %6051 = vmatprep.subr.bf16.mxu1 %v6721_v0 }
 0x7e5   :  { %v1006_v47 = vpop.f32.mrb[18].mxu1 }
 0x7e6   :  { %v5493_v48 = vpop.f32.mrb[19].mxu1  ;;  %v1007_v55 = vadd.f32 %v1006_v47, %v7070_v33  ;;  %v1393_v47 = vld [vmem:[#allocation2 + $0x18] sm:$0xff] }
 0x7e9   :  { %v1081_v49 = vpop.f32.mrb[14].mxu0 }
 0x7ea   :  { %v1082_v50 = vadd.f32 %v7094_v3, %v1081_v49  ;;  %v5504_v51 = vpop.f32.mrb[15].mxu0 }
 0x7ec   :  { %1093 = vrot.lane.b32.xlu0 %v1082_v50, %s6724_s0  ;;  %v1085_v56 = vadd.f32 %v1082_v50, %v1007_v55 }
 0x7ed   :  { %v1181_v52 = vpop.f32.mrb[20].mxu1 }
 0x7ee   :  { %v1182_v53 = vadd.f32 %v6981_v45, %v1181_v52  ;;  %v5515_v54 = vpop.f32.mrb[21].mxu1  ;;  %v5029_v58 = vmul.f32 -1.442695, %v1085_v56 }
 0x7f0   :  { %1193 = vrot.lane.b32.xlu1 %v1182_v53, %s6724_s0  ;;  %v1185_v59 = vadd.f32 %v1182_v53, %v1114_v57  ;;  %6306 = vpow2.f32 %v5029_v58 }
 0x7f2   :  { %v5031_v60 = vmul.f32 -1.442695, %v1185_v59 }
 0x7f4   :  { %6308 = vpow2.f32 %v5031_v60 }
 0x7fa   :  { %v6307_v61 = vpop.eup %6306 }
 0x7fb   :  { %v1089_v62 = vadd.f32 1.0, %v6307_v61 }
 0x7fd   :  { %6310 = vrcp.f32 %v1089_v62 }
 0x7fe   :  { %v6309_v63 = vpop.eup %6308 }
 0x7ff   :  { %v1189_v2 = vadd.f32 1.0, %v6309_v63 }
 0x801   :  { %6312 = vrcp.f32 %v1189_v2 }
 0x807   :  { %v6311_v4 = vpop.eup %6310 }
 0x80b   :  { %v6313_v8 = vpop.eup %6312 }
 0x85e   :  { %v1094_v5 = vpop.permute.xlu0 %1093 }
 0x85f   :  { %v1096_v6 = vmul.f32 %v6311_v4, %v1094_v5 }
 0x861   :  { %1098 = vrot.lane.b32.xlu0 %v1096_v6, %s6724_s0 }
 0x862   :  { %v1194_v9 = vpop.permute.xlu1 %1193 }
 0x863   :  { %v1196_v10 = vmul.f32 %v6313_v8, %v1194_v9 }
 0x865   :  { %1198 = vrot.lane.b32.xlu1 %v1196_v10, %s6724_s0 }
 0x8d3   :  { %v1099_v11 = vpop.permute.xlu0 %1098 }
 0x8d4   :  { %v1101_v12 = vadd.f32 %v1099_v11, %v1007_v55 }
 0x8d6   :  { %6314 = vtanh.f32 %v1101_v12 }
 0x8d7   :  { %v1199_v14 = vpop.permute.xlu1 %1198 }
 0x8d8   :  { %v1201_v15 = vadd.f32 %v1199_v14, %v1114_v57 }
 0x8da   :  { %6316 = vtanh.f32 %v1201_v15 }
 0x8e0   :  { %v6315_v16 = vpop.eup %6314 }
 0x8e1   :  { %v1103_v19 = vsub.f32 %v834_v43, %v6315_v16 }
 0x8e3   :  { %1105 = vrot.lane.b32.xlu0 %v1103_v19, %s6725_s16 }
 0x8e4   :  { %v6317_v20 = vpop.eup %6316 }
 0x8e5   :  { %v1203_v21 = vsub.f32 %v7107_v42, %v6317_v20 }
 0x8e7   :  { %1205 = vrot.lane.b32.xlu1 %v1203_v21, %s6725_s16 }
 0x955   :  { %v1106_v24 = vpop.permute.xlu0 %1105 }
 0x956   :  { %v1108_v25 = vmul.f32 %v6311_v4, %v1106_v24 }
 0x958   :  { %1110 = vrot.lane.b32.xlu0 %v1108_v25, %s6726_s18 }
 0x959   :  { %v1206_v26 = vpop.permute.xlu1 %1205 }
 0x95a   :  { %v1208_v27 = vmul.f32 %v6313_v8, %v1206_v26 }
 0x95c   :  { %1210 = vrot.lane.b32.xlu1 %v1208_v27, %s6726_s18 }
 0x9ca   :  { %v1111_v28 = vpop.permute.xlu0 %1110 }
 0x9cb   :  { %v7145_v29 = vadd.f32 %v6315_v16, %v1111_v28 }
 0x9cd   :  { %1290 = vrot.lane.b32.xlu0 %v7145_v29, %s6724_s0 }
 0x9ce   :  { %v1211_v31 = vpop.permute.xlu1 %1210 }
 0x9cf   :  { %v7149_v32 = vadd.f32 %v6317_v20, %v1211_v31 }
 0x9d1   :  { %1215 = vrot.lane.b32.xlu1 %v7149_v32, %s6724_s0 }
 0xa3f   :  { %v1291_v34 = vpop.permute.xlu0 %1290 }
 0xa40   :  { %5536 = vmatmul.mubr.msk.f32.vlgmr.msra.gmra.mrb[22].mxu1 %vm349_vm3, %v1291_v34 }
 0xa41   :  { %6053 = vmatpush3.bf16.msra.mxu1 %v6993_v7  ;;  %5557 = vmatprep.mubr.msk.f32.mxu1 %vm6722_vm0, %v6723_v1 }
 0xa42   :  { %6054 = vmatprep.subr.bf16.mxu1 %v6721_v0 }
 0xa43   :  { %v1216_v35 = vpop.permute.xlu1 %1215 }
 0xa44   :  { %5525 = vmatmul.mubr.msk.f32.vlgmr.msra.gmra.mrb[16].mxu0 %vm349_vm3, %v1216_v35 }
 0xa45   :  { %6047 = vmatpush3.bf16.msra.mxu0 %v6927_v18  ;;  %5546 = vmatprep.mubr.msk.f32.mxu0 %vm6722_vm0, %v6723_v1 }
 0xa46   :  { %6048 = vmatprep.subr.bf16.mxu0 %v6721_v0  ;;  %6056 = vmatpush3.bf16.msra.mxu1 %v6998_v13 }
 0xa47   :  { %6063 = vmatprep.subr.bf16.mxu1 %v6721_v0 }
 0xa49   :  { %6050 = vmatpush3.bf16.msra.mxu0 %v6945_v23 }
 0xa4a   :  { %6057 = vmatprep.subr.bf16.mxu0 %v6721_v0 }
 0xa4c   :  { %5547 = vmatmul.mubr.msk.f32.vlgmr.msra.gmra.mrb[18].mxu0 %vm349_vm3, %v1216_v35 }
 0xa4d   :  { %6059 = vmatpush3.bf16.msra.mxu0 %v7010_v17  ;;  %5568 = vmatprep.mubr.msk.f32.mxu0 %vm6722_vm0, %v6723_v1 }
 0xa4e   :  { %6060 = vmatprep.subr.bf16.mxu0 %v6721_v0 }
 0xa51   :  { %6062 = vmatpush3.bf16.msra.mxu0 %v7020_v22 }
 0xa52   :  { %6069 = vmatprep.subr.bf16.mxu0 %v6721_v0 }
 0xb13   :  { %v1360_v36 = vpop.f32.mrb[22].mxu1 }
 0xb14   :  { %v1361_v37 = vadd.f32 %v7094_v3, %v1360_v36  ;;  %v5537_v38 = vpop.f32.mrb[23].mxu1 }
 0xb16   :  { %1372 = vrot.lane.b32.xlu0 %v1361_v37, %s6724_s0 }
 0xb17   :  { %v1285_v39 = vpop.f32.mrb[16].mxu0 }
 0xb18   :  { %v5526_v40 = vpop.f32.mrb[17].mxu0  ;;  %v1286_v43 = vadd.f32 %v1285_v39, %v7070_v33 }
 0xb1a   :  { %v1364_v44 = vadd.f32 %v1361_v37, %v1286_v43  ;;  %v1672_v37 = vld [vmem:[#allocation2 + $0x20] sm:$0xff] }
 0xb1c   :  { %v5034_v46 = vmul.f32 -1.442695, %v1364_v44 }
 0xb1e   :  { %6318 = vpow2.f32 %v5034_v46 }
 0xb1f   :  { %v1460_v41 = vpop.f32.mrb[18].mxu0 }
 0xb20   :  { %v1461_v42 = vadd.f32 %v6981_v45, %v1460_v41  ;;  %v5548_v30 = vpop.f32.mrb[19].mxu0 }
 0xb22   :  { %1472 = vrot.lane.b32.xlu1 %v1461_v42, %s6724_s0  ;;  %v1464_v48 = vadd.f32 %v1461_v42, %v1393_v47 }
 0xb24   :  { %v5036_v49 = vmul.f32 -1.442695, %v1464_v48 }
 0xb26   :  { %6320 = vpow2.f32 %v5036_v49 }
 0xb28   :  { %v6319_v50 = vpop.eup %6318 }
 0xb29   :  { %v1368_v51 = vadd.f32 1.0, %v6319_v50 }
 0xb2b   :  { %6322 = vrcp.f32 %v1368_v51 }
 0xb30   :  { %v6321_v52 = vpop.eup %6320 }
 0xb31   :  { %v1468_v53 = vadd.f32 1.0, %v6321_v52 }
 0xb33   :  { %6324 = vrcp.f32 %v1468_v53 }
 0xb35   :  { %v6323_v54 = vpop.eup %6322 }
 0xb3d   :  { %v6325_v57 = vpop.eup %6324 }
 0xb88   :  { %v1373_v55 = vpop.permute.xlu0 %1372 }
 0xb89   :  { %v1375_v56 = vmul.f32 %v6323_v54, %v1373_v55 }
 0xb8b   :  { %1377 = vrot.lane.b32.xlu0 %v1375_v56, %s6724_s0 }
 0xb94   :  { %v1473_v58 = vpop.permute.xlu1 %1472 }
 0xb95   :  { %v1475_v59 = vmul.f32 %v6325_v57, %v1473_v58 }
 0xb97   :  { %1477 = vrot.lane.b32.xlu1 %v1475_v59, %s6724_s0 }
 0xbfd   :  { %v1378_v60 = vpop.permute.xlu0 %1377 }
 0xbfe   :  { %v1380_v61 = vadd.f32 %v1378_v60, %v1286_v43 }
 0xc00   :  { %6326 = vtanh.f32 %v1380_v61 }
 0xc09   :  { %v1478_v62 = vpop.permute.xlu1 %1477 }
 0xc0a   :  { %v6327_v63 = vpop.eup %6326  ;;  %v1480_v2 = vadd.f32 %v1478_v62, %v1393_v47 }
 0xc0b   :  { %v1382_v4 = vsub.f32 %v7145_v29, %v6327_v63 }
 0xc0c   :  { %6328 = vtanh.f32 %v1480_v2 }
 0xc0d   :  { %1384 = vrot.lane.b32.xlu0 %v1382_v4, %s6725_s16 }
 0xc16   :  { %v6329_v5 = vpop.eup %6328 }
 0xc17   :  { %v1482_v6 = vsub.f32 %v7149_v32, %v6329_v5 }
 0xc19   :  { %1484 = vrot.lane.b32.xlu1 %v1482_v6, %s6725_s16 }
 0xc7f   :  { %v1385_v8 = vpop.permute.xlu0 %1384 }
 0xc80   :  { %v1387_v9 = vmul.f32 %v6323_v54, %v1385_v8 }
 0xc82   :  { %1389 = vrot.lane.b32.xlu0 %v1387_v9, %s6726_s18 }
 0xc8b   :  { %v1485_v10 = vpop.permute.xlu1 %1484 }
 0xc8c   :  { %v1487_v11 = vmul.f32 %v6325_v57, %v1485_v10 }
 0xc8e   :  { %1489 = vrot.lane.b32.xlu1 %v1487_v11, %s6726_s18 }
 0xcf4   :  { %v1390_v12 = vpop.permute.xlu0 %1389 }
 0xcf5   :  { %v1392_v14 = vadd.f32 %v6327_v63, %v1390_v12 }
 0xcf7   :  { %1569 = vrot.lane.b32.xlu0 %v1392_v14, %s6724_s0 }
 0xd00   :  { %v1490_v15 = vpop.permute.xlu1 %1489 }
 0xd01   :  { %v7188_v16 = vadd.f32 %v6329_v5, %v1490_v15 }
 0xd03   :  { %1494 = vrot.lane.b32.xlu1 %v7188_v16, %s6724_s0 }
 0xd69   :  { %v1570_v19 = vpop.permute.xlu0 %1569 }
 0xd6a   :  { %5569 = vmatmul.mubr.msk.f32.vlgmr.msra.gmra.mrb[20].mxu0 %vm349_vm3, %v1570_v19 }
 0xd6b   :  { %6071 = vmatpush3.bf16.msra.mxu0 %v6993_v7  ;;  %5590 = vmatprep.mubr.msk.f32.mxu0 %vm6722_vm0, %v6723_v1 }
 0xd6c   :  { %6072 = vmatprep.subr.bf16.mxu0 %v6721_v0 }
 0xd6f   :  { %6074 = vmatpush3.bf16.msra.mxu0 %v6998_v13 }
 0xd70   :  { %6081 = vmatprep.subr.bf16.mxu0 %v6721_v0 }
 0xd75   :  { %v1495_v20 = vpop.permute.xlu1 %1494 }
 0xd76   :  { %5558 = vmatmul.mubr.msk.f32.vlgmr.msra.gmra.mrb[24].mxu1 %vm349_vm3, %v1495_v20 }
 0xd77   :  { %6065 = vmatpush3.bf16.msra.mxu1 %v6927_v18  ;;  %5579 = vmatprep.mubr.msk.f32.mxu1 %vm6722_vm0, %v6723_v1 }
 0xd78   :  { %6066 = vmatprep.subr.bf16.mxu1 %v6721_v0 }
 0xd7b   :  { %6068 = vmatpush3.bf16.msra.mxu1 %v6945_v23 }
 0xd7c   :  { %6075 = vmatprep.subr.bf16.mxu1 %v6721_v0 }
 0xd7e   :  { %5580 = vmatmul.mubr.msk.f32.vlgmr.msra.gmra.mrb[26].mxu1 %vm349_vm3, %v1495_v20 }
 0xd7f   :  { %6077 = vmatpush3.bf16.msra.mxu1 %v7010_v17  ;;  %5601 = vmatprep.mubr.msk.f32.mxu1 %vm6722_vm0, %v6723_v1 }
 0xd80   :  { %6078 = vmatprep.subr.bf16.mxu1 %v6721_v0 }
 0xd83   :  { %6080 = vmatpush3.bf16.msra.mxu1 %v7020_v22 }
 0xd84   :  { %6087 = vmatprep.subr.bf16.mxu1 %v6721_v0 }
 0xe3d   :  { %v1639_v21 = vpop.f32.mrb[20].mxu0 }
 0xe3e   :  { %v1640_v24 = vadd.f32 %v7094_v3, %v1639_v21  ;;  %v5570_v25 = vpop.f32.mrb[21].mxu0 }
 0xe3f   :  { %v1951_v25 = vld [vmem:[#allocation2 + $0x28] sm:$0xff] }
 0xe40   :  { %1651 = vrot.lane.b32.xlu0 %v1640_v24, %s6724_s0 }
 0xe49   :  { %v1564_v26 = vpop.f32.mrb[24].mxu1 }
 0xe4a   :  { %v5559_v27 = vpop.f32.mrb[25].mxu1  ;;  %v1565_v32 = vadd.f32 %v1564_v26, %v7070_v33 }
 0xe4c   :  { %v1643_v34 = vadd.f32 %v1640_v24, %v1565_v32 }
 0xe4e   :  { %v5039_v35 = vmul.f32 -1.442695, %v1643_v34 }
 0xe50   :  { %6330 = vpow2.f32 %v5039_v35 }
 0xe51   :  { %v1739_v28 = vpop.f32.mrb[26].mxu1 }
 0xe52   :  { %v1740_v29 = vadd.f32 %v6981_v45, %v1739_v28  ;;  %v5581_v31 = vpop.f32.mrb[27].mxu1 }
 0xe54   :  { %1751 = vrot.lane.b32.xlu1 %v1740_v29, %s6724_s0  ;;  %v1743_v38 = vadd.f32 %v1740_v29, %v1672_v37 }
 0xe56   :  { %v5041_v40 = vmul.f32 -1.442695, %v1743_v38 }
 0xe5a   :  { %v6331_v36 = vpop.eup %6330 }
 0xe5b   :  { %v1647_v39 = vadd.f32 1.0, %v6331_v36 }
 0xe5d   :  { %6332 = vrcp.f32 %v1647_v39 }
 0xe5e   :  { %6334 = vpow2.f32 %v5041_v40 }
 0xe67   :  { %v6333_v41 = vpop.eup %6332 }
 0xe68   :  { %v6335_v43 = vpop.eup %6334 }
 0xe69   :  { %v1747_v44 = vadd.f32 1.0, %v6335_v43 }
 0xe6b   :  { %6336 = vrcp.f32 %v1747_v44 }
 0xe75   :  { %v6337_v46 = vpop.eup %6336 }
 0xeb2   :  { %v1652_v42 = vpop.permute.xlu0 %1651 }
 0xeb3   :  { %v1654_v30 = vmul.f32 %v6333_v41, %v1652_v42 }
 0xeb5   :  { %1656 = vrot.lane.b32.xlu0 %v1654_v30, %s6724_s0 }
 0xec6   :  { %v1752_v47 = vpop.permute.xlu1 %1751 }
 0xec7   :  { %v1754_v48 = vmul.f32 %v6337_v46, %v1752_v47 }
 0xec9   :  { %1756 = vrot.lane.b32.xlu1 %v1754_v48, %s6724_s0 }
 0xf27   :  { %v1657_v49 = vpop.permute.xlu0 %1656 }
 0xf28   :  { %v1659_v50 = vadd.f32 %v1657_v49, %v1565_v32 }
 0xf2a   :  { %6338 = vtanh.f32 %v1659_v50 }
 0xf34   :  { %v6339_v51 = vpop.eup %6338 }
 0xf35   :  { %v1661_v52 = vsub.f32 %v1392_v14, %v6339_v51 }
 0xf37   :  { %1663 = vrot.lane.b32.xlu0 %v1661_v52, %s6725_s16 }
 0xf3b   :  { %v1757_v53 = vpop.permute.xlu1 %1756 }
 0xf3c   :  { %v1759_v54 = vadd.f32 %v1757_v53, %v1672_v37 }
 0xf3e   :  { %6340 = vtanh.f32 %v1759_v54 }
 0xf48   :  { %v6341_v55 = vpop.eup %6340 }
 0xf49   :  { %v1761_v56 = vsub.f32 %v7188_v16, %v6341_v55 }
 0xf4b   :  { %1763 = vrot.lane.b32.xlu1 %v1761_v56, %s6725_s16 }
 0xfa9   :  { %v1664_v57 = vpop.permute.xlu0 %1663 }
 0xfaa   :  { %v1666_v58 = vmul.f32 %v6333_v41, %v1664_v57 }
 0xfac   :  { %1668 = vrot.lane.b32.xlu0 %v1666_v58, %s6726_s18 }
 0xfbd   :  { %v1764_v59 = vpop.permute.xlu1 %1763 }
 0xfbe   :  { %v1766_v60 = vmul.f32 %v6337_v46, %v1764_v59 }
 0xfc0   :  { %1768 = vrot.lane.b32.xlu1 %v1766_v60, %s6726_s18 }
0x101e   :  { %v1669_v61 = vpop.permute.xlu0 %1668 }
0x101f   :  { %v1671_v62 = vadd.f32 %v6339_v51, %v1669_v61  ;;  %v7294_v61 = vld [vmem:[#allocation10] ss:$0 sm:$0xff] }
0x1021   :  { %1848 = vrot.lane.b32.xlu0 %v1671_v62, %s6724_s0 }
0x1032   :  { %v1769_v63 = vpop.permute.xlu1 %1768 }
0x1033   :  { %v7226_v2 = vadd.f32 %v6341_v55, %v1769_v63 }
0x1035   :  { %1773 = vrot.lane.b32.xlu1 %v7226_v2, %s6724_s0 }
0x1093   :  { %v1849_v4 = vpop.permute.xlu0 %1848 }
0x1094   :  { %5602 = vmatmul.mubr.msk.f32.vlgmr.msra.gmra.mrb[28].mxu1 %vm349_vm3, %v1849_v4 }
0x1095   :  { %6089 = vmatpush3.bf16.msra.mxu1 %v6993_v7  ;;  %5623 = vmatprep.mubr.msk.f32.mxu1 %vm6722_vm0, %v6723_v1 }
0x1096   :  { %6090 = vmatprep.subr.bf16.mxu1 %v6721_v0 }
0x1099   :  { %6092 = vmatpush3.bf16.msra.mxu1 %v6998_v13 }
0x109a   :  { %6099 = vmatprep.subr.bf16.mxu1 %v6721_v0 }
0x10a7   :  { %v1774_v5 = vpop.permute.xlu1 %1773 }
0x10a8   :  { %5591 = vmatmul.mubr.msk.f32.vlgmr.msra.gmra.mrb[22].mxu0 %vm349_vm3, %v1774_v5 }
0x10a9   :  { %6083 = vmatpush3.bf16.msra.mxu0 %v6927_v18  ;;  %5612 = vmatprep.mubr.msk.f32.mxu0 %vm6722_vm0, %v6723_v1 }
0x10aa   :  { %6084 = vmatprep.subr.bf16.mxu0 %v6721_v0 }
0x10ad   :  { %6086 = vmatpush3.bf16.msra.mxu0 %v6945_v23 }
0x10ae   :  { %6093 = vmatprep.subr.bf16.mxu0 %v6721_v0 }
0x10b0   :  { %5613 = vmatmul.mubr.msk.f32.vlgmr.msra.gmra.mrb[24].mxu0 %vm349_vm3, %v1774_v5 }
0x10b1   :  { %6095 = vmatpush3.bf16.msra.mxu0 %v7010_v17  ;;  %5634 = vmatprep.mubr.msk.f32.mxu0 %vm6722_vm0, %v6723_v1 }
0x10b2   :  { %6096 = vmatprep.subr.bf16.mxu0 %v6721_v0 }
0x10b5   :  { %6098 = vmatpush3.bf16.msra.mxu0 %v7020_v22 }
0x10b6   :  { %6105 = vmatprep.subr.bf16.mxu0 %v6721_v0 }
0x1167   :  { %v1918_v6 = vpop.f32.mrb[28].mxu1 }
0x1168   :  { %v1919_v8 = vadd.f32 %v7094_v3, %v1918_v6  ;;  %v5603_v9 = vpop.f32.mrb[29].mxu1 }
0x116a   :  { %1930 = vrot.lane.b32.xlu0 %v1919_v8, %s6724_s0 }
0x117b   :  { %v1843_v10 = vpop.f32.mrb[22].mxu0 }
0x117c   :  { %v5592_v11 = vpop.f32.mrb[23].mxu0  ;;  %v1844_v16 = vadd.f32 %v1843_v10, %v7070_v33  ;;  %v2230_v10 = vld [vmem:[#allocation2 + $0x30] sm:$0xff] }
0x117e   :  { %v1922_v19 = vadd.f32 %v1919_v8, %v1844_v16 }
0x1180   :  { %v5044_v20 = vmul.f32 -1.442695, %v1922_v19 }
0x1182   :  { %6342 = vpow2.f32 %v5044_v20 }
0x1183   :  { %v2018_v12 = vpop.f32.mrb[24].mxu0 }
0x1184   :  { %v2019_v14 = vadd.f32 %v6981_v45, %v2018_v12  ;;  %v5614_v15 = vpop.f32.mrb[25].mxu0 }
0x1186   :  { %2030 = vrot.lane.b32.xlu1 %v2019_v14, %s6724_s0  ;;  %v2022_v26 = vadd.f32 %v2019_v14, %v1951_v25 }
0x1188   :  { %v5046_v27 = vmul.f32 -1.442695, %v2022_v26 }
0x118c   :  { %v6343_v21 = vpop.eup %6342 }
0x118d   :  { %v1926_v24 = vadd.f32 1.0, %v6343_v21 }
0x118f   :  { %6344 = vrcp.f32 %v1926_v24 }
0x1190   :  { %6346 = vpow2.f32 %v5046_v27 }
0x1199   :  { %v6345_v28 = vpop.eup %6344 }
0x119a   :  { %v6347_v45 = vpop.eup %6346 }
0x119b   :  { %v2026_v32 = vadd.f32 1.0, %v6347_v45 }
0x119d   :  { %6348 = vrcp.f32 %v2026_v32 }
0x11a7   :  { %v6349_v34 = vpop.eup %6348 }
0x11dc   :  { %v1931_v29 = vpop.permute.xlu0 %1930 }
0x11dd   :  { %v1933_v31 = vmul.f32 %v6345_v28, %v1931_v29 }
0x11df   :  { %1935 = vrot.lane.b32.xlu0 %v1933_v31, %s6724_s0 }
0x11f8   :  { %v2031_v35 = vpop.permute.xlu1 %2030 }
0x11f9   :  { %v2033_v36 = vmul.f32 %v6349_v34, %v2031_v35 }
0x11fb   :  { %2035 = vrot.lane.b32.xlu1 %v2033_v36, %s6724_s0 }
0x1251   :  { %v1936_v37 = vpop.permute.xlu0 %1935 }
0x1252   :  { %v1938_v38 = vadd.f32 %v1936_v37, %v1844_v16 }
0x1254   :  { %6350 = vtanh.f32 %v1938_v38 }
0x125e   :  { %v6351_v39 = vpop.eup %6350 }
0x125f   :  { %v1940_v40 = vsub.f32 %v1671_v62, %v6351_v39 }
0x1261   :  { %1942 = vrot.lane.b32.xlu0 %v1940_v40, %s6725_s16 }
0x126d   :  { %v2036_v41 = vpop.permute.xlu1 %2035 }
0x126e   :  { %v2038_v42 = vadd.f32 %v2036_v41, %v1951_v25 }
0x1270   :  { %6352 = vtanh.f32 %v2038_v42 }
0x127a   :  { %v6353_v30 = vpop.eup %6352 }
0x127b   :  { %v2040_v43 = vsub.f32 %v7226_v2, %v6353_v30 }
0x127d   :  { %2042 = vrot.lane.b32.xlu1 %v2040_v43, %s6725_s16 }
0x12d3   :  { %v1943_v44 = vpop.permute.xlu0 %1942 }
0x12d4   :  { %v1945_v46 = vmul.f32 %v6345_v28, %v1943_v44 }
0x12d6   :  { %1947 = vrot.lane.b32.xlu0 %v1945_v46, %s6726_s18 }
0x12ef   :  { %v2043_v47 = vpop.permute.xlu1 %2042 }
0x12f0   :  { %v2045_v48 = vmul.f32 %v6349_v34, %v2043_v47 }
0x12f2   :  { %2047 = vrot.lane.b32.xlu1 %v2045_v48, %s6726_s18 }
0x1348   :  { %v1948_v49 = vpop.permute.xlu0 %1947 }
0x1349   :  { %v7263_v50 = vadd.f32 %v6351_v39, %v1948_v49 }
0x134b   :  { %2127 = vrot.lane.b32.xlu0 %v7263_v50, %s6724_s0 }
0x1364   :  { %v2048_v51 = vpop.permute.xlu1 %2047 }
0x1365   :  { %v7267_v52 = vadd.f32 %v6353_v30, %v2048_v51 }
0x1367   :  { %2052 = vrot.lane.b32.xlu1 %v7267_v52, %s6724_s0 }
0x13bd   :  { %v2128_v53 = vpop.permute.xlu0 %2127 }
0x13be   :  { %5635 = vmatmul.mubr.msk.f32.vlgmr.msra.gmra.mrb[26].mxu0 %vm349_vm3, %v2128_v53 }
0x13bf   :  { %6107 = vmatpush3.bf16.msra.mxu0 %v6993_v7  ;;  %5656 = vmatprep.mubr.msk.f32.mxu0 %vm6722_vm0, %v6723_v1 }
0x13c0   :  { %6108 = vmatprep.subr.bf16.mxu0 %v6721_v0 }
0x13c3   :  { %6110 = vmatpush3.bf16.msra.mxu0 %v6998_v13 }
0x13c4   :  { %6117 = vmatprep.subr.bf16.mxu0 %v6721_v0 }
0x13d9   :  { %v2053_v54 = vpop.permute.xlu1 %2052 }
0x13da   :  { %5624 = vmatmul.mubr.msk.f32.vlgmr.msra.gmra.mrb[30].mxu1 %vm349_vm3, %v2053_v54 }
0x13db   :  { %6101 = vmatpush3.bf16.msra.mxu1 %v6927_v18  ;;  %5645 = vmatprep.mubr.msk.f32.mxu1 %vm6722_vm0, %v6723_v1 }
0x13dc   :  { %6102 = vmatprep.subr.bf16.mxu1 %v6721_v0 }
0x13df   :  { %6104 = vmatpush3.bf16.msra.mxu1 %v6945_v23 }
0x13e0   :  { %6111 = vmatprep.subr.bf16.mxu1 %v6721_v0 }
0x13e2   :  { %5646 = vmatmul.mubr.msk.f32.vlgmr.msra.gmra.mrb[32].mxu1 %vm349_vm3, %v2053_v54 }
0x13e3   :  { %6113 = vmatpush3.bf16.msra.mxu1 %v7010_v17  ;;  %5667 = vmatprep.mubr.msk.f32.mxu1 %vm6722_vm0, %v6723_v1 }
0x13e4   :  { %6114 = vmatprep.subr.bf16.mxu1 %v6721_v0 }
0x13e7   :  { %6116 = vmatpush3.bf16.msra.mxu1 %v7020_v22 }
0x13e8   :  { %6123 = vmatprep.subr.bf16.mxu1 %v6721_v0 }
0x1491   :  { %v2197_v55 = vpop.f32.mrb[26].mxu0 }
0x1492   :  { %v2198_v56 = vadd.f32 %v7094_v3, %v2197_v55  ;;  %v5636_v57 = vpop.f32.mrb[27].mxu0 }
0x1494   :  { %2209 = vrot.lane.b32.xlu0 %v2198_v56, %s6724_s0 }
0x14ad   :  { %v2122_v58 = vpop.f32.mrb[30].mxu1 }
0x14ae   :  { %v5625_v59 = vpop.f32.mrb[31].mxu1  ;;  %v2123_v2 = vadd.f32 %v2122_v58, %v7070_v33 }
0x14af   :  { %v2509_v59 = vld [vmem:[#allocation2 + $0x38] sm:$0xff] }
0x14b0   :  { %v2201_v4 = vadd.f32 %v2198_v56, %v2123_v2 }
0x14b2   :  { %v5049_v5 = vmul.f32 -1.442695, %v2201_v4 }
0x14b4   :  { %6354 = vpow2.f32 %v5049_v5 }
0x14b5   :  { %v2297_v60 = vpop.f32.mrb[32].mxu1 }
0x14b6   :  { %v2298_v62 = vadd.f32 %v7294_v61, %v2297_v60  ;;  %v5647_v63 = vpop.f32.mrb[33].mxu1 }
0x14b8   :  { %2309 = vrot.lane.b32.xlu1 %v2298_v62, %s6724_s0  ;;  %v2301_v12 = vadd.f32 %v2298_v62, %v2230_v10 }
0x14ba   :  { %v5051_v15 = vmul.f32 -1.442695, %v2301_v12 }
0x14be   :  { %v6355_v6 = vpop.eup %6354 }
0x14bf   :  { %v2205_v8 = vadd.f32 1.0, %v6355_v6 }
0x14c1   :  { %6356 = vrcp.f32 %v2205_v8 }
0x14c2   :  { %6358 = vpow2.f32 %v5051_v15 }
0x14cb   :  { %v6357_v9 = vpop.eup %6356 }
0x14cc   :  { %v6359_v16 = vpop.eup %6358 }
0x14cd   :  { %v2305_v19 = vadd.f32 1.0, %v6359_v16 }
0x14cf   :  { %6360 = vrcp.f32 %v2305_v19 }
0x14d9   :  { %v6361_v20 = vpop.eup %6360 }
0x1506   :  { %v2210_v11 = vpop.permute.xlu0 %2209 }
0x1507   :  { %v2212_v14 = vmul.f32 %v6357_v9, %v2210_v11 }
0x1509   :  { %2214 = vrot.lane.b32.xlu0 %v2212_v14, %s6724_s0 }
0x152a   :  { %v2310_v21 = vpop.permute.xlu1 %2309 }
0x152b   :  { %v2312_v24 = vmul.f32 %v6361_v20, %v2310_v21 }
0x152d   :  { %2314 = vrot.lane.b32.xlu1 %v2312_v24, %s6724_s0 }
0x157b   :  { %v2215_v25 = vpop.permute.xlu0 %2214 }
0x157c   :  { %v2217_v26 = vadd.f32 %v2215_v25, %v2123_v2 }
0x157e   :  { %6362 = vtanh.f32 %v2217_v26 }
0x1588   :  { %v6363_v27 = vpop.eup %6362 }
0x1589   :  { %v2219_v28 = vsub.f32 %v7263_v50, %v6363_v27 }
0x158b   :  { %2221 = vrot.lane.b32.xlu0 %v2219_v28, %s6725_s16 }
0x159f   :  { %v2315_v29 = vpop.permute.xlu1 %2314 }
0x15a0   :  { %v2317_v31 = vadd.f32 %v2315_v29, %v2230_v10 }
0x15a2   :  { %6364 = vtanh.f32 %v2317_v31 }
0x15ac   :  { %v6365_v45 = vpop.eup %6364 }
0x15ad   :  { %v2319_v32 = vsub.f32 %v7267_v52, %v6365_v45 }
0x15af   :  { %2321 = vrot.lane.b32.xlu1 %v2319_v32, %s6725_s16  ;;  %v7374_v32 = vld [vmem:[#allocation17] ss:$0 sm:$0xff] }
0x15fd   :  { %v2222_v34 = vpop.permute.xlu0 %2221 }
0x15fe   :  { %v2224_v35 = vmul.f32 %v6357_v9, %v2222_v34 }
0x1600   :  { %2226 = vrot.lane.b32.xlu0 %v2224_v35, %s6726_s18 }
0x1621   :  { %v2322_v36 = vpop.permute.xlu1 %2321 }
0x1622   :  { %v2324_v37 = vmul.f32 %v6361_v20, %v2322_v36 }
0x1624   :  { %2326 = vrot.lane.b32.xlu1 %v2324_v37, %s6726_s18 }
0x1672   :  { %v2227_v38 = vpop.permute.xlu0 %2226 }
0x1673   :  { %v2229_v39 = vadd.f32 %v6363_v27, %v2227_v38 }
0x1675   :  { %2406 = vrot.lane.b32.xlu0 %v2229_v39, %s6724_s0 }
0x1696   :  { %v2327_v40 = vpop.permute.xlu1 %2326 }
0x1697   :  { %v7308_v41 = vadd.f32 %v6365_v45, %v2327_v40 }
0x1699   :  { %2331 = vrot.lane.b32.xlu1 %v7308_v41, %s6724_s0 }
0x16e7   :  { %v2407_v42 = vpop.permute.xlu0 %2406 }
0x16e8   :  { %5668 = vmatmul.mubr.msk.f32.vlgmr.msra.gmra.mrb[34].mxu1 %vm349_vm3, %v2407_v42 }
0x16e9   :  { %6125 = vmatpush3.bf16.msra.mxu1 %v6993_v7  ;;  %5689 = vmatprep.mubr.msk.f32.mxu1 %vm6722_vm0, %v6723_v1 }
0x16ea   :  { %6126 = vmatprep.subr.bf16.mxu1 %v6721_v0 }
0x16ed   :  { %6128 = vmatpush3.bf16.msra.mxu1 %v6998_v13 }
0x16ee   :  { %6135 = vmatprep.subr.bf16.mxu1 %v6721_v0 }
0x170b   :  { %v2332_v30 = vpop.permute.xlu1 %2331 }
0x170c   :  { %5657 = vmatmul.mubr.msk.f32.vlgmr.msra.gmra.mrb[28].mxu0 %vm349_vm3, %v2332_v30 }
0x170d   :  { %6119 = vmatpush3.bf16.msra.mxu0 %v6927_v18  ;;  %5678 = vmatprep.mubr.msk.f32.mxu0 %vm6722_vm0, %v6723_v1 }
0x170e   :  { %6120 = vmatprep.subr.bf16.mxu0 %v6721_v0 }
0x1711   :  { %6122 = vmatpush3.bf16.msra.mxu0 %v6945_v23 }
0x1712   :  { %6129 = vmatprep.subr.bf16.mxu0 %v6721_v0 }
0x1714   :  { %5679 = vmatmul.mubr.msk.f32.vlgmr.msra.gmra.mrb[30].mxu0 %vm349_vm3, %v2332_v30 }
0x1715   :  { %6131 = vmatpush3.bf16.msra.mxu0 %v7010_v17  ;;  %5700 = vmatprep.mubr.msk.f32.mxu0 %vm6722_vm0, %v6723_v1 }
0x1716   :  { %6132 = vmatprep.subr.bf16.mxu0 %v6721_v0 }
0x1719   :  { %6134 = vmatpush3.bf16.msra.mxu0 %v7020_v22 }
0x171a   :  { %6141 = vmatprep.subr.bf16.mxu0 %v6721_v0 }
0x17bb   :  { %v2476_v43 = vpop.f32.mrb[34].mxu1 }
0x17bc   :  { %v2477_v44 = vadd.f32 %v7094_v3, %v2476_v43  ;;  %v5669_v46 = vpop.f32.mrb[35].mxu1 }
0x17be   :  { %2488 = vrot.lane.b32.xlu0 %v2477_v44, %s6724_s0 }
0x17df   :  { %v2401_v47 = vpop.f32.mrb[28].mxu0 }
0x17e0   :  { %v5658_v48 = vpop.f32.mrb[29].mxu0  ;;  %v2402_v52 = vadd.f32 %v2401_v47, %v7070_v33 }
0x17e2   :  { %v2480_v53 = vadd.f32 %v2477_v44, %v2402_v52 }
0x17e4   :  { %v5054_v54 = vmul.f32 -1.442695, %v2480_v53 }
0x17e6   :  { %6366 = vpow2.f32 %v5054_v54 }
0x17e7   :  { %v2576_v49 = vpop.f32.mrb[30].mxu0 }
0x17e8   :  { %v2577_v50 = vadd.f32 %v7294_v61, %v2576_v49  ;;  %v5680_v51 = vpop.f32.mrb[31].mxu0  ;;  %v7385_v49 = vld [vmem:[%s7767_s5] ss:$0 sm:$0xff] }
0x17ea   :  { %2588 = vrot.lane.b32.xlu1 %v2577_v50, %s6724_s0  ;;  %v2580_v60 = vadd.f32 %v2577_v50, %v2509_v59 }
0x17ec   :  { %v5056_v62 = vmul.f32 -1.442695, %v2580_v60 }
0x17f0   :  { %v6367_v55 = vpop.eup %6366 }
0x17f1   :  { %v2484_v56 = vadd.f32 1.0, %v6367_v55 }
0x17f3   :  { %6368 = vrcp.f32 %v2484_v56 }
0x17f4   :  { %6370 = vpow2.f32 %v5056_v62 }
0x17fd   :  { %v6369_v3 = vpop.eup %6368 }
0x17fe   :  { %v6371_v63 = vpop.eup %6370 }
0x17ff   :  { %v2584_v2 = vadd.f32 1.0, %v6371_v63 }
0x1801   :  { %6372 = vrcp.f32 %v2584_v2 }
0x180b   :  { %v6373_v4 = vpop.eup %6372 }
0x1830   :  { %v2489_v57 = vpop.permute.xlu0 %2488 }
0x1831   :  { %v2491_v58 = vmul.f32 %v6369_v3, %v2489_v57 }
0x1833   :  { %2493 = vrot.lane.b32.xlu0 %v2491_v58, %s6724_s0 }
0x185c   :  { %v2589_v5 = vpop.permute.xlu1 %2588 }
0x185d   :  { %v2591_v6 = vmul.f32 %v6373_v4, %v2589_v5 }
0x185f   :  { %2593 = vrot.lane.b32.xlu1 %v2591_v6, %s6724_s0 }
0x18a5   :  { %v2494_v8 = vpop.permute.xlu0 %2493 }
0x18a6   :  { %v2496_v9 = vadd.f32 %v2494_v8, %v2402_v52 }
0x18a8   :  { %6374 = vtanh.f32 %v2496_v9 }
0x18b2   :  { %v6375_v10 = vpop.eup %6374 }
0x18b3   :  { %v2498_v11 = vsub.f32 %v2229_v39, %v6375_v10 }
0x18b5   :  { %2500 = vrot.lane.b32.xlu0 %v2498_v11, %s6725_s16 }
0x18d1   :  { %v2594_v12 = vpop.permute.xlu1 %2593 }
0x18d2   :  { %v2596_v14 = vadd.f32 %v2594_v12, %v2509_v59 }
0x18d4   :  { %6376 = vtanh.f32 %v2596_v14 }
0x18de   :  { %v6377_v15 = vpop.eup %6376 }
0x18df   :  { %v2598_v16 = vsub.f32 %v7308_v41, %v6377_v15 }
0x18e1   :  { %2600 = vrot.lane.b32.xlu1 %v2598_v16, %s6725_s16 }
0x1927   :  { %v2501_v19 = vpop.permute.xlu0 %2500 }
0x1928   :  { %v2503_v20 = vmul.f32 %v6369_v3, %v2501_v19 }
0x192a   :  { %2505 = vrot.lane.b32.xlu0 %v2503_v20, %s6726_s18 }
0x1953   :  { %v2601_v21 = vpop.permute.xlu1 %2600 }
0x1954   :  { %v2603_v24 = vmul.f32 %v6373_v4, %v2601_v21 }
0x1956   :  { %2605 = vrot.lane.b32.xlu1 %v2603_v24, %s6726_s18 }
0x199c   :  { %v2506_v25 = vpop.permute.xlu0 %2505 }
0x199d   :  { %v7345_v26 = vadd.f32 %v6375_v10, %v2506_v25 }
0x199f   :  { %2685 = vrot.lane.b32.xlu0 %v7345_v26, %s6724_s0 }
0x19c8   :  { %v2606_v27 = vpop.permute.xlu1 %2605 }
0x19c9   :  { %v7349_v28 = vadd.f32 %v6377_v15, %v2606_v27  ;;  %v2887_v27 = vld [vmem:[#allocation3] sm:$0xff] }
0x19cb   :  { %2610 = vrot.lane.b32.xlu1 %v7349_v28, %s6724_s0 }
0x1a11   :  { %v2686_v29 = vpop.permute.xlu0 %2685 }
0x1a12   :  { %5701 = vmatmul.mubr.msk.f32.vlgmr.msra.gmra.mrb[32].mxu0 %vm349_vm3, %v2686_v29 }
0x1a13   :  { %6143 = vmatpush3.bf16.msra.mxu0 %v6993_v7  ;;  %5722 = vmatprep.mubr.msk.f32.mxu0 %vm6722_vm0, %v6723_v1 }
0x1a14   :  { %6144 = vmatprep.subr.bf16.mxu0 %v6721_v0 }
0x1a17   :  { %6146 = vmatpush3.bf16.msra.mxu0 %v6998_v13 }
0x1a18   :  { %6153 = vmatprep.subr.bf16.mxu0 %v6721_v0 }
0x1a3d   :  { %v2611_v31 = vpop.permute.xlu1 %2610 }
0x1a3e   :  { %5690 = vmatmul.mubr.msk.f32.vlgmr.msra.gmra.mrb[36].mxu1 %vm349_vm3, %v2611_v31 }
0x1a3f   :  { %6137 = vmatpush3.bf16.msra.mxu1 %v6927_v18  ;;  %5711 = vmatprep.mubr.msk.f32.mxu1 %vm6722_vm0, %v6723_v1 }
0x1a40   :  { %6138 = vmatprep.subr.bf16.mxu1 %v6721_v0 }
0x1a43   :  { %6140 = vmatpush3.bf16.msra.mxu1 %v6945_v23 }
0x1a44   :  { %6147 = vmatprep.subr.bf16.mxu1 %v6721_v0 }
0x1a46   :  { %5712 = vmatmul.mubr.msk.f32.vlgmr.msra.gmra.mrb[38].mxu1 %vm349_vm3, %v2611_v31 }
0x1a47   :  { %6149 = vmatpush3.bf16.msra.mxu1 %v7010_v17  ;;  %5733 = vmatprep.mubr.msk.f32.mxu1 %vm6722_vm0, %v6723_v1 }
0x1a48   :  { %6150 = vmatprep.subr.bf16.mxu1 %v6721_v0 }
0x1a4b   :  { %6152 = vmatpush3.bf16.msra.mxu1 %v7020_v22 }
0x1a4c   :  { %6159 = vmatprep.subr.bf16.mxu1 %v6721_v0 }
0x1ae5   :  { %v2755_v45 = vpop.f32.mrb[32].mxu0 }
0x1ae6   :  { %v2756_v34 = vadd.f32 %v7374_v32, %v2755_v45  ;;  %v5702_v35 = vpop.f32.mrb[33].mxu0 }
0x1ae8   :  { %2767 = vrot.lane.b32.xlu0 %v2756_v34, %s6724_s0 }
0x1b11   :  { %v2680_v36 = vpop.f32.mrb[36].mxu1 }
0x1b12   :  { %v5691_v37 = vpop.f32.mrb[37].mxu1  ;;  %v2681_v41 = vadd.f32 %v2680_v36, %v7070_v33 }
0x1b14   :  { %v2759_v42 = vadd.f32 %v2756_v34, %v2681_v41 }
0x1b16   :  { %v5059_v30 = vmul.f32 -1.442695, %v2759_v42 }
0x1b18   :  { %6378 = vpow2.f32 %v5059_v30 }
0x1b19   :  { %v2854_v38 = vpop.f32.mrb[38].mxu1 }
0x1b1a   :  { %v2855_v39 = vadd.f32 %v7294_v61, %v2854_v38  ;;  %v5713_v40 = vpop.f32.mrb[39].mxu1 }
0x1b1c   :  { %2866 = vrot.lane.b32.xlu1 %v2855_v39, %s6724_s0  ;;  %v2858_v50 = vadd.f32 %v7385_v49, %v2855_v39 }
0x1b1e   :  { %v5061_v51 = vmul.f32 -1.442695, %v2858_v50 }
0x1b22   :  { %v6379_v43 = vpop.eup %6378 }
0x1b23   :  { %v2763_v44 = vadd.f32 1.0, %v6379_v43 }
0x1b25   :  { %6380 = vrcp.f32 %v2763_v44 }
0x1b26   :  { %6382 = vpow2.f32 %v5061_v51 }
0x1b2f   :  { %v6381_v46 = vpop.eup %6380 }
0x1b30   :  { %v6383_v33 = vpop.eup %6382 }
0x1b31   :  { %v2862_v52 = vadd.f32 1.0, %v6383_v33 }
0x1b33   :  { %6384 = vrcp.f32 %v2862_v52 }
0x1b3d   :  { %v6385_v53 = vpop.eup %6384 }
0x1b5a   :  { %v2768_v47 = vpop.permute.xlu0 %2767 }
0x1b5b   :  { %v2770_v48 = vmul.f32 %v6381_v46, %v2768_v47 }
0x1b5d   :  { %2772 = vrot.lane.b32.xlu0 %v2770_v48, %s6724_s0 }
0x1b8e   :  { %v2867_v54 = vpop.permute.xlu1 %2866 }
0x1b8f   :  { %v2869_v55 = vmul.f32 %v6385_v53, %v2867_v54 }
0x1b91   :  { %2871 = vrot.lane.b32.xlu1 %v2869_v55, %s6724_s0 }
0x1bcf   :  { %v2773_v56 = vpop.permute.xlu0 %2772 }
0x1bd0   :  { %v2775_v3 = vadd.f32 %v2773_v56, %v2681_v41 }
0x1bd2   :  { %6386 = vtanh.f32 %v2775_v3 }
0x1bdc   :  { %v6387_v57 = vpop.eup %6386 }
0x1bdd   :  { %v2777_v58 = vsub.f32 %v7345_v26, %v6387_v57 }
0x1bdf   :  { %2779 = vrot.lane.b32.xlu0 %v2777_v58, %s6725_s16 }
0x1c03   :  { %v2872_v59 = vpop.permute.xlu1 %2871 }
0x1c04   :  { %v2874_v60 = vadd.f32 %v7385_v49, %v2872_v59 }
0x1c06   :  { %6388 = vtanh.f32 %v2874_v60 }
0x1c10   :  { %v6389_v62 = vpop.eup %6388 }
0x1c11   :  { %v2876_v63 = vsub.f32 %v7349_v28, %v6389_v62 }
0x1c13   :  { %2878 = vrot.lane.b32.xlu1 %v2876_v63, %s6725_s16 }
0x1c51   :  { %v2780_v2 = vpop.permute.xlu0 %2779 }
0x1c52   :  { %v2782_v4 = vmul.f32 %v6381_v46, %v2780_v2 }
0x1c54   :  { %2784 = vrot.lane.b32.xlu0 %v2782_v4, %s6726_s18 }
0x1c85   :  { %v2879_v5 = vpop.permute.xlu1 %2878 }
0x1c86   :  { %v2881_v6 = vmul.f32 %v6385_v53, %v2879_v5 }
0x1c88   :  { %2883 = vrot.lane.b32.xlu1 %v2881_v6, %s6726_s18 }
0x1cc6   :  { %v2785_v8 = vpop.permute.xlu0 %2784 }
0x1cc7   :  { %v2787_v9 = vadd.f32 %v6387_v57, %v2785_v8 }
0x1cc9   :  { %2964 = vrot.lane.b32.xlu0 %v2787_v9, %s6724_s0 }
0x1cfa   :  { %v2884_v10 = vpop.permute.xlu1 %2883 }
0x1cfb   :  { %v7397_v11 = vadd.f32 %v6389_v62, %v2884_v10 }
0x1cfd   :  { %2889 = vrot.lane.b32.xlu1 %v7397_v11, %s6724_s0 }
0x1d3b   :  { %v2965_v12 = vpop.permute.xlu0 %2964 }
0x1d3c   :  { %5734 = vmatmul.mubr.msk.f32.vlgmr.msra.gmra.mrb[40].mxu1 %vm349_vm3, %v2965_v12 }
0x1d3d   :  { %6161 = vmatpush3.bf16.msra.mxu1 %v6993_v7  ;;  %5755 = vmatprep.mubr.msk.f32.mxu1 %vm6722_vm0, %v6723_v1 }
0x1d3e   :  { %6162 = vmatprep.subr.bf16.mxu1 %v6721_v0 }
0x1d41   :  { %6164 = vmatpush3.bf16.msra.mxu1 %v6998_v13 }
0x1d42   :  { %6171 = vmatprep.subr.bf16.mxu1 %v6721_v0 }
0x1d6f   :  { %v2890_v14 = vpop.permute.xlu1 %2889 }
0x1d70   :  { %5723 = vmatmul.mubr.msk.f32.vlgmr.msra.gmra.mrb[34].mxu0 %vm349_vm3, %v2890_v14 }
0x1d71   :  { %6155 = vmatpush3.bf16.msra.mxu0 %v6927_v18  ;;  %5744 = vmatprep.mubr.msk.f32.mxu0 %vm6722_vm0, %v6723_v1 }
0x1d72   :  { %6156 = vmatprep.subr.bf16.mxu0 %v6721_v0 }
0x1d75   :  { %6158 = vmatpush3.bf16.msra.mxu0 %v6945_v23 }
0x1d76   :  { %6165 = vmatprep.subr.bf16.mxu0 %v6721_v0 }
0x1d78   :  { %5745 = vmatmul.mubr.msk.f32.vlgmr.msra.gmra.mrb[36].mxu0 %vm349_vm3, %v2890_v14 }
0x1d79   :  { %6167 = vmatpush3.bf16.msra.mxu0 %v7010_v17  ;;  %5766 = vmatprep.mubr.msk.f32.mxu0 %vm6722_vm0, %v6723_v1 }
0x1d7a   :  { %6168 = vmatprep.subr.bf16.mxu0 %v6721_v0 }
0x1d7d   :  { %6170 = vmatpush3.bf16.msra.mxu0 %v7020_v22 }
0x1d7e   :  { %6177 = vmatprep.subr.bf16.mxu0 %v6721_v0 }
0x1e0f   :  { %v3034_v15 = vpop.f32.mrb[40].mxu1 }
0x1e10   :  { %v3035_v16 = vadd.f32 %v7374_v32, %v3034_v15  ;;  %v5735_v19 = vpop.f32.mrb[41].mxu1 }
0x1e12   :  { %3046 = vrot.lane.b32.xlu0 %v3035_v16, %s6724_s0 }
0x1e43   :  { %v2959_v20 = vpop.f32.mrb[34].mxu0 }
0x1e44   :  { %v5724_v21 = vpop.f32.mrb[35].mxu0  ;;  %v2960_v28 = vadd.f32 %v2959_v20, %v2887_v27 }
0x1e46   :  { %v3038_v29 = vadd.f32 %v3035_v16, %v2960_v28 }
0x1e48   :  { %v5064_v31 = vmul.f32 -1.442695, %v3038_v29 }
0x1e4a   :  { %6390 = vpow2.f32 %v5064_v31 }
0x1e4b   :  { %v3138_v24 = vpop.f32.mrb[36].mxu0 }
0x1e4c   :  { %v3139_v25 = vadd.f32 %v7294_v61, %v3138_v24  ;;  %v5746_v26 = vpop.f32.mrb[37].mxu0 }
0x1e4e   :  { %3150 = vrot.lane.b32.xlu1 %v3139_v25, %s6724_s0  ;;  %v3142_v38 = vadd.f32 %v7385_v49, %v3139_v25 }
0x1e50   :  { %v5066_v39 = vmul.f32 -1.442695, %v3142_v38 }
0x1e54   :  { %v6391_v45 = vpop.eup %6390 }
0x1e55   :  { %v3042_v34 = vadd.f32 1.0, %v6391_v45 }
0x1e57   :  { %6392 = vrcp.f32 %v3042_v34 }
0x1e58   :  { %6394 = vpow2.f32 %v5066_v39 }
0x1e61   :  { %v6393_v35 = vpop.eup %6392 }
0x1e62   :  { %v6395_v40 = vpop.eup %6394 }
0x1e63   :  { %v3146_v41 = vadd.f32 1.0, %v6395_v40 }
0x1e65   :  { %6396 = vrcp.f32 %v3146_v41 }
0x1e6f   :  { %v6397_v42 = vpop.eup %6396 }
0x1e84   :  { %v3047_v36 = vpop.permute.xlu0 %3046 }
0x1e85   :  { %v3049_v37 = vmul.f32 %v6393_v35, %v3047_v36 }
0x1e87   :  { %3051 = vrot.lane.b32.xlu0 %v3049_v37, %s6724_s0 }
0x1ec0   :  { %v3151_v30 = vpop.permute.xlu1 %3150 }
0x1ec1   :  { %v3153_v43 = vmul.f32 %v6397_v42, %v3151_v30 }
0x1ec3   :  { %3155 = vrot.lane.b32.xlu1 %v3153_v43, %s6724_s0 }
0x1ef9   :  { %v3052_v44 = vpop.permute.xlu0 %3051 }
0x1efa   :  { %v3054_v46 = vadd.f32 %v3052_v44, %v2960_v28 }
0x1efc   :  { %6398 = vtanh.f32 %v3054_v46 }
0x1f06   :  { %v6399_v47 = vpop.eup %6398 }
0x1f07   :  { %v3056_v48 = vsub.f32 %v2787_v9, %v6399_v47 }
0x1f09   :  { %3058 = vrot.lane.b32.xlu0 %v3056_v48, %s6725_s16 }
0x1f35   :  { %v3156_v50 = vpop.permute.xlu1 %3155 }
0x1f36   :  { %v3158_v51 = vadd.f32 %v7385_v49, %v3156_v50 }
0x1f38   :  { %6400 = vtanh.f32 %v3158_v51 }
0x1f42   :  { %v6401_v33 = vpop.eup %6400 }
0x1f43   :  { %v3160_v52 = vsub.f32 %v7397_v11, %v6401_v33  ;;  %v3171_v11 = vld [vmem:[#allocation3 + $0x8] sm:$0xff] }
0x1f45   :  { %3162 = vrot.lane.b32.xlu1 %v3160_v52, %s6725_s16 }
0x1f7b   :  { %v3059_v53 = vpop.permute.xlu0 %3058 }
0x1f7c   :  { %v3061_v54 = vmul.f32 %v6393_v35, %v3059_v53 }
0x1f7e   :  { %3063 = vrot.lane.b32.xlu0 %v3061_v54, %s6726_s18 }
0x1fb7   :  { %v3163_v55 = vpop.permute.xlu1 %3162 }
0x1fb8   :  { %v3165_v56 = vmul.f32 %v6397_v42, %v3163_v55 }
0x1fba   :  { %3167 = vrot.lane.b32.xlu1 %v3165_v56, %s6726_s18 }
0x1ff0   :  { %v3064_v3 = vpop.permute.xlu0 %3063 }
0x1ff1   :  { %v7435_v57 = vadd.f32 %v6399_v47, %v3064_v3 }
0x1ff3   :  { %3068 = vrot.lane.b32.xlu0 %v7435_v57, %s6724_s0 }
0x202c   :  { %v3168_v58 = vpop.permute.xlu1 %3167 }
0x202d   :  { %v7439_v59 = vadd.f32 %v6401_v33, %v3168_v58 }
0x202f   :  { %3173 = vrot.lane.b32.xlu1 %v7439_v59, %s6724_s0 }
0x2065   :  { %v3069_v60 = vpop.permute.xlu0 %3068 }
0x2066   :  { %3071 = vst.msk [vmem:[#allocation4] sm:$0xff] %vm349_vm3, %v3069_v60  ;;  %5767 = vmatmul.mubr.msk.f32.vlgmr.msra.gmra.mrb[38].mxu0 %vm349_vm3, %v3069_v60 }
0x2067   :  { %6179 = vmatpush3.bf16.msra.mxu0 %v6993_v7  ;;  %5788 = vmatprep.mubr.msk.f32.mxu0 %vm6722_vm0, %v6723_v1 }
0x2068   :  { %6180 = vmatprep.subr.bf16.mxu0 %v6721_v0 }
0x206b   :  { %6182 = vmatpush3.bf16.msra.mxu0 %v6998_v13 }
0x206c   :  { %6189 = vmatprep.subr.bf16.mxu0 %v6721_v0 }
0x20a1   :  { %v3174_v62 = vpop.permute.xlu1 %3173 }
0x20a2   :  { %5756 = vmatmul.mubr.msk.f32.vlgmr.msra.gmra.mrb[42].mxu1 %vm349_vm3, %v3174_v62 }
0x20a3   :  { %6173 = vmatpush3.bf16.msra.mxu1 %v6927_v18  ;;  %5777 = vmatprep.mubr.msk.f32.mxu1 %vm6722_vm0, %v6723_v1 }
0x20a4   :  { %6174 = vmatprep.subr.bf16.mxu1 %v6721_v0 }
0x20a7   :  { %6176 = vmatpush3.bf16.msra.mxu1 %v6945_v23 }
0x20a8   :  { %6183 = vmatprep.subr.bf16.mxu1 %v6721_v0 }
0x20aa   :  { %5778 = vmatmul.mubr.msk.f32.vlgmr.msra.gmra.mrb[44].mxu1 %vm349_vm3, %v3174_v62 }
0x20ab   :  { %6185 = vmatpush3.bf16.msra.mxu1 %v7010_v17  ;;  %5799 = vmatprep.mubr.msk.f32.mxu1 %vm6722_vm0, %v6723_v1 }
0x20ac   :  { %6186 = vmatprep.subr.bf16.mxu1 %v6721_v0 }
0x20af   :  { %6188 = vmatpush3.bf16.msra.mxu1 %v7020_v22 }
0x20b0   :  { %6195 = vmatprep.subr.bf16.mxu1 %v6721_v0 }
0x2139   :  { %v3315_v63 = vpop.f32.mrb[38].mxu0 }
0x213a   :  { %v3316_v2 = vadd.f32 %v7374_v32, %v3315_v63  ;;  %v5768_v4 = vpop.f32.mrb[39].mxu0 }
0x213c   :  { %3327 = vrot.lane.b32.xlu1 %v3316_v2, %s6724_s0 }
0x2175   :  { %v3243_v5 = vpop.f32.mrb[42].mxu1 }
0x2176   :  { %v5757_v6 = vpop.f32.mrb[43].mxu1  ;;  %v3244_v12 = vadd.f32 %v3243_v5, %v3171_v11 }
0x2178   :  { %v3319_v14 = vadd.f32 %v3316_v2, %v3244_v12 }
0x217a   :  { %v5069_v15 = vmul.f32 -1.442695, %v3319_v14 }
0x217c   :  { %6402 = vpow2.f32 %v5069_v15 }
0x217d   :  { %v3419_v8 = vpop.f32.mrb[44].mxu1 }
0x217e   :  { %v3420_v9 = vadd.f32 %v7294_v61, %v3419_v8  ;;  %v5779_v10 = vpop.f32.mrb[45].mxu1 }
0x2180   :  { %3431 = vrot.lane.b32.xlu0 %v3420_v9, %s6724_s0  ;;  %v3423_v25 = vadd.f32 %v7385_v49, %v3420_v9 }
0x2182   :  { %v5071_v26 = vmul.f32 -1.442695, %v3423_v25 }
0x2186   :  { %v6403_v16 = vpop.eup %6402 }
0x2187   :  { %v3323_v19 = vadd.f32 1.0, %v6403_v16 }
0x2189   :  { %6404 = vrcp.f32 %v3323_v19 }
0x218a   :  { %6406 = vpow2.f32 %v5071_v26 }
0x2193   :  { %v6405_v20 = vpop.eup %6404 }
0x2194   :  { %v6407_v27 = vpop.eup %6406 }
0x2195   :  { %v3427_v28 = vadd.f32 1.0, %v6407_v27 }
0x2197   :  { %6408 = vrcp.f32 %v3427_v28 }
0x21a1   :  { %v6409_v29 = vpop.eup %6408 }
0x21ae   :  { %v3328_v21 = vpop.permute.xlu1 %3327 }
0x21af   :  { %v3330_v24 = vmul.f32 %v6405_v20, %v3328_v21 }
0x21b1   :  { %3332 = vrot.lane.b32.xlu1 %v3330_v24, %s6724_s0 }
0x21f2   :  { %v3432_v31 = vpop.permute.xlu0 %3431 }
0x21f3   :  { %v3434_v45 = vmul.f32 %v6409_v29, %v3432_v31 }
0x21f5   :  { %3436 = vrot.lane.b32.xlu0 %v3434_v45, %s6724_s0 }
0x2223   :  { %v3333_v34 = vpop.permute.xlu1 %3332 }
0x2224   :  { %v3335_v35 = vadd.f32 %v3333_v34, %v3244_v12 }
0x2226   :  { %6410 = vtanh.f32 %v3335_v35 }
0x2230   :  { %v6411_v36 = vpop.eup %6410 }
0x2231   :  { %v3337_v37 = vsub.f32 %v7435_v57, %v6411_v36  ;;  %v3452_v57 = vld [vmem:[#allocation3 + $0x10] sm:$0xff] }
0x2233   :  { %3339 = vrot.lane.b32.xlu1 %v3337_v37, %s6725_s16 }
0x2267   :  { %v3437_v38 = vpop.permute.xlu0 %3436 }
0x2268   :  { %v3439_v39 = vadd.f32 %v7385_v49, %v3437_v38 }
0x226a   :  { %6412 = vtanh.f32 %v3439_v39 }
0x2274   :  { %v6413_v40 = vpop.eup %6412 }
0x2275   :  { %v3441_v41 = vsub.f32 %v7439_v59, %v6413_v40 }
0x2277   :  { %3443 = vrot.lane.b32.xlu0 %v3441_v41, %s6725_s16 }
0x22a5   :  { %v3340_v42 = vpop.permute.xlu1 %3339 }
0x22a6   :  { %v3342_v30 = vmul.f32 %v6405_v20, %v3340_v42 }
0x22a8   :  { %3344 = vrot.lane.b32.xlu1 %v3342_v30, %s6726_s18 }
0x22e9   :  { %v3444_v43 = vpop.permute.xlu0 %3443 }
0x22ea   :  { %v3446_v44 = vmul.f32 %v6409_v29, %v3444_v43 }
0x22ec   :  { %3448 = vrot.lane.b32.xlu0 %v3446_v44, %s6726_s18  ;;  %v3733_v44 = vld [vmem:[#allocation3 + $0x18] sm:$0xff] }
0x231a   :  { %v3345_v46 = vpop.permute.xlu1 %3344 }
0x231b   :  { %v7479_v47 = vadd.f32 %v6411_v36, %v3345_v46 }
0x231d   :  { %3349 = vrot.lane.b32.xlu1 %v7479_v47, %s6724_s0 }
0x235e   :  { %v3449_v48 = vpop.permute.xlu0 %3448 }
0x235f   :  { %v7483_v50 = vadd.f32 %v6413_v40, %v3449_v48 }
0x2361   :  { %3454 = vrot.lane.b32.xlu0 %v7483_v50, %s6724_s0 }
0x238f   :  { %v3350_v51 = vpop.permute.xlu1 %3349 }
0x2390   :  { %3352 = vst.msk [vmem:[#allocation4 + $0x8] sm:$0xff] %vm349_vm3, %v3350_v51  ;;  %5800 = vmatmul.mubr.msk.f32.vlgmr.msra.gmra.mrb[46].mxu1 %vm349_vm3, %v3350_v51 }
0x2391   :  { %6197 = vmatpush3.bf16.msra.mxu1 %v6993_v7  ;;  %5821 = vmatprep.mubr.msk.f32.mxu1 %vm6722_vm0, %v6723_v1 }
0x2392   :  { %6198 = vmatprep.subr.bf16.mxu1 %v6721_v0 }
0x2395   :  { %6200 = vmatpush3.bf16.msra.mxu1 %v6998_v13 }
0x2396   :  { %6207 = vmatprep.subr.bf16.mxu1 %v6721_v0 }
0x23d3   :  { %v3455_v33 = vpop.permute.xlu0 %3454 }
0x23d4   :  { %5789 = vmatmul.mubr.msk.f32.vlgmr.msra.gmra.mrb[40].mxu0 %vm349_vm3, %v3455_v33 }
0x23d5   :  { %6191 = vmatpush3.bf16.msra.mxu0 %v6927_v18  ;;  %5810 = vmatprep.mubr.msk.f32.mxu0 %vm6722_vm0, %v6723_v1 }
0x23d6   :  { %6192 = vmatprep.subr.bf16.mxu0 %v6721_v0 }
0x23d9   :  { %6194 = vmatpush3.bf16.msra.mxu0 %v6945_v23 }
0x23da   :  { %6201 = vmatprep.subr.bf16.mxu0 %v6721_v0 }
0x23dc   :  { %5811 = vmatmul.mubr.msk.f32.vlgmr.msra.gmra.mrb[42].mxu0 %vm349_vm3, %v3455_v33 }
0x23dd   :  { %6203 = vmatpush3.bf16.msra.mxu0 %v7010_v17  ;;  %5832 = vmatprep.mubr.msk.f32.mxu0 %vm6722_vm0, %v6723_v1 }
0x23de   :  { %6204 = vmatprep.subr.bf16.mxu0 %v6721_v0 }
0x23e1   :  { %6206 = vmatpush3.bf16.msra.mxu0 %v7020_v22 }
0x23e2   :  { %6213 = vmatprep.subr.bf16.mxu0 %v6721_v0 }
0x2463   :  { %v3596_v52 = vpop.f32.mrb[46].mxu1 }
0x2464   :  { %v3597_v53 = vadd.f32 %v7374_v32, %v3596_v52  ;;  %v5801_v54 = vpop.f32.mrb[47].mxu1 }
0x2466   :  { %3608 = vrot.lane.b32.xlu1 %v3597_v53, %s6724_s0 }
0x24a7   :  { %v3524_v55 = vpop.f32.mrb[40].mxu0 }
0x24a8   :  { %v5790_v56 = vpop.f32.mrb[41].mxu0  ;;  %v3525_v60 = vadd.f32 %v3524_v55, %v3452_v57 }
0x24aa   :  { %v3600_v62 = vadd.f32 %v3597_v53, %v3525_v60 }
0x24ac   :  { %v5074_v63 = vmul.f32 -1.442695, %v3600_v62 }
0x24ae   :  { %6414 = vpow2.f32 %v5074_v63 }
0x24af   :  { %v3700_v3 = vpop.f32.mrb[42].mxu0 }
0x24b0   :  { %v3701_v58 = vadd.f32 %v7294_v61, %v3700_v3  ;;  %v5812_v59 = vpop.f32.mrb[43].mxu0 }
0x24b2   :  { %3712 = vrot.lane.b32.xlu0 %v3701_v58, %s6724_s0  ;;  %v3704_v9 = vadd.f32 %v7385_v49, %v3701_v58 }
0x24b4   :  { %v5076_v10 = vmul.f32 -1.442695, %v3704_v9 }
0x24b8   :  { %v6415_v2 = vpop.eup %6414 }
0x24b9   :  { %v3604_v4 = vadd.f32 1.0, %v6415_v2 }
0x24bb   :  { %6416 = vrcp.f32 %v3604_v4 }
0x24bc   :  { %6418 = vpow2.f32 %v5076_v10 }
0x24c5   :  { %v6417_v5 = vpop.eup %6416 }
0x24c6   :  { %v6419_v11 = vpop.eup %6418 }
0x24c7   :  { %v3708_v12 = vadd.f32 1.0, %v6419_v11 }
0x24c9   :  { %6420 = vrcp.f32 %v3708_v12 }
0x24d3   :  { %v6421_v14 = vpop.eup %6420 }
0x24d8   :  { %v3609_v6 = vpop.permute.xlu1 %3608 }
0x24d9   :  { %v3611_v8 = vmul.f32 %v6417_v5, %v3609_v6 }
0x24db   :  { %3613 = vrot.lane.b32.xlu1 %v3611_v8, %s6724_s0 }
0x2524   :  { %v3713_v15 = vpop.permute.xlu0 %3712 }
0x2525   :  { %v3715_v16 = vmul.f32 %v6421_v14, %v3713_v15 }
0x2527   :  { %3717 = vrot.lane.b32.xlu0 %v3715_v16, %s6724_s0 }
0x254d   :  { %v3614_v19 = vpop.permute.xlu1 %3613 }
0x254e   :  { %v3616_v20 = vadd.f32 %v3614_v19, %v3525_v60 }
0x2550   :  { %6422 = vtanh.f32 %v3616_v20 }
0x255a   :  { %v6423_v21 = vpop.eup %6422 }
0x255b   :  { %v3618_v24 = vsub.f32 %v7479_v47, %v6423_v21 }
0x255d   :  { %3620 = vrot.lane.b32.xlu1 %v3618_v24, %s6725_s16 }
0x2599   :  { %v3718_v25 = vpop.permute.xlu0 %3717 }
0x259a   :  { %v3720_v26 = vadd.f32 %v7385_v49, %v3718_v25 }
0x259c   :  { %6424 = vtanh.f32 %v3720_v26 }
0x25a6   :  { %v6425_v27 = vpop.eup %6424 }
0x25a7   :  { %v3722_v28 = vsub.f32 %v7483_v50, %v6425_v27 }
0x25a9   :  { %3724 = vrot.lane.b32.xlu0 %v3722_v28, %s6725_s16 }
0x25cf   :  { %v3621_v29 = vpop.permute.xlu1 %3620 }
0x25d0   :  { %v3623_v31 = vmul.f32 %v6417_v5, %v3621_v29 }
0x25d2   :  { %3625 = vrot.lane.b32.xlu1 %v3623_v31, %s6726_s18  ;;  %v4014_v31 = vld [vmem:[#allocation3 + $0x20] sm:$0xff] }
0x261b   :  { %v3725_v45 = vpop.permute.xlu0 %3724 }
0x261c   :  { %v3727_v34 = vmul.f32 %v6421_v14, %v3725_v45 }
0x261e   :  { %3729 = vrot.lane.b32.xlu0 %v3727_v34, %s6726_s18 }
0x2644   :  { %v3626_v35 = vpop.permute.xlu1 %3625 }
0x2645   :  { %v7523_v36 = vadd.f32 %v6423_v21, %v3626_v35 }
0x2647   :  { %3630 = vrot.lane.b32.xlu1 %v7523_v36, %s6724_s0 }
0x2690   :  { %v3730_v37 = vpop.permute.xlu0 %3729 }
0x2691   :  { %v7527_v38 = vadd.f32 %v6425_v27, %v3730_v37 }
0x2693   :  { %3735 = vrot.lane.b32.xlu0 %v7527_v38, %s6724_s0 }
0x26b9   :  { %v3631_v39 = vpop.permute.xlu1 %3630 }
0x26ba   :  { %3633 = vst.msk [vmem:[#allocation4 + $0x10] sm:$0xff] %vm349_vm3, %v3631_v39  ;;  %5833 = vmatmul.mubr.msk.f32.vlgmr.msra.gmra.mrb[44].mxu0 %vm349_vm3, %v3631_v39  ;;  %v7599_v39 = vld [vmem:[#allocation10] ss:$0 sm:$0xff] }
0x26bb   :  { %6215 = vmatpush3.bf16.msra.mxu0 %v6993_v7  ;;  %5854 = vmatprep.mubr.msk.f32.mxu0 %vm6722_vm0, %v6723_v1 }
0x26bc   :  { %6216 = vmatprep.subr.bf16.mxu0 %v6721_v0 }
0x26bf   :  { %6218 = vmatpush3.bf16.msra.mxu0 %v6998_v13 }
0x26c0   :  { %6225 = vmatprep.subr.bf16.mxu0 %v6721_v0 }
0x2705   :  { %v3736_v40 = vpop.permute.xlu0 %3735 }
0x2706   :  { %5822 = vmatmul.mubr.msk.f32.vlgmr.msra.gmra.mrb[48].mxu1 %vm349_vm3, %v3736_v40 }
0x2707   :  { %6209 = vmatpush3.bf16.msra.mxu1 %v6927_v18  ;;  %5843 = vmatprep.mubr.msk.f32.mxu1 %vm6722_vm0, %v6723_v1 }
0x2708   :  { %6210 = vmatprep.subr.bf16.mxu1 %v6721_v0 }
0x270b   :  { %6212 = vmatpush3.bf16.msra.mxu1 %v6945_v23 }
0x270c   :  { %6219 = vmatprep.subr.bf16.mxu1 %v6721_v0 }
0x270e   :  { %5844 = vmatmul.mubr.msk.f32.vlgmr.msra.gmra.mrb[50].mxu1 %vm349_vm3, %v3736_v40 }
0x270f   :  { %6221 = vmatpush3.bf16.msra.mxu1 %v7010_v17  ;;  %5865 = vmatprep.mubr.msk.f32.mxu1 %vm6722_vm0, %v6723_v1 }
0x2710   :  { %6222 = vmatprep.subr.bf16.mxu1 %v6721_v0 }
0x2713   :  { %6224 = vmatpush3.bf16.msra.mxu1 %v7020_v22 }
0x2714   :  { %6231 = vmatprep.subr.bf16.mxu1 %v6721_v0 }
0x278d   :  { %v3877_v41 = vpop.f32.mrb[44].mxu0 }
0x278e   :  { %v3878_v42 = vadd.f32 %v7374_v32, %v3877_v41  ;;  %v5834_v30 = vpop.f32.mrb[45].mxu0 }
0x2790   :  { %3889 = vrot.lane.b32.xlu1 %v3878_v42, %s6724_s0 }
0x27d9   :  { %v3805_v43 = vpop.f32.mrb[48].mxu1 }
0x27da   :  { %v5823_v46 = vpop.f32.mrb[49].mxu1  ;;  %v3806_v47 = vadd.f32 %v3805_v43, %v3733_v44 }
0x27dc   :  { %v3881_v48 = vadd.f32 %v3878_v42, %v3806_v47 }
0x27de   :  { %v5079_v52 = vmul.f32 -1.442695, %v3881_v48 }
0x27e0   :  { %6426 = vpow2.f32 %v5079_v52 }
0x27e1   :  { %v3981_v50 = vpop.f32.mrb[50].mxu1 }
0x27e2   :  { %v3982_v51 = vadd.f32 %v7294_v61, %v3981_v50  ;;  %v5845_v33 = vpop.f32.mrb[51].mxu1 }
0x27e4   :  { %3993 = vrot.lane.b32.xlu0 %v3982_v51, %s6724_s0  ;;  %v3985_v57 = vadd.f32 %v7385_v49, %v3982_v51 }
0x27e6   :  { %v5081_v58 = vmul.f32 -1.442695, %v3985_v57 }
0x27ea   :  { %v6427_v53 = vpop.eup %6426 }
0x27eb   :  { %v3885_v54 = vadd.f32 1.0, %v6427_v53 }
0x27ed   :  { %6428 = vrcp.f32 %v3885_v54 }
0x27ee   :  { %6430 = vpow2.f32 %v5081_v58 }
0x27f7   :  { %v6429_v55 = vpop.eup %6428 }
0x27f8   :  { %v6431_v59 = vpop.eup %6430 }
0x27f9   :  { %v3989_v60 = vadd.f32 1.0, %v6431_v59 }
0x27fb   :  { %6432 = vrcp.f32 %v3989_v60 }
0x2802   :  { %v3890_v56 = vpop.permute.xlu1 %3889 }
0x2803   :  { %v3892_v3 = vmul.f32 %v6429_v55, %v3890_v56 }
0x2805   :  { %3894 = vrot.lane.b32.xlu1 %v3892_v3, %s6724_s0  ;;  %v6433_v61 = vpop.eup %6432 }
0x2856   :  { %v3994_v62 = vpop.permute.xlu0 %3993 }
0x2857   :  { %v3996_v63 = vmul.f32 %v6433_v61, %v3994_v62 }
0x2859   :  { %3998 = vrot.lane.b32.xlu0 %v3996_v63, %s6724_s0 }
0x2877   :  { %v3895_v2 = vpop.permute.xlu1 %3894 }
0x2878   :  { %v3897_v4 = vadd.f32 %v3895_v2, %v3806_v47 }
0x287a   :  { %6434 = vtanh.f32 %v3897_v4 }
0x2884   :  { %v6435_v5 = vpop.eup %6434 }
0x2885   :  { %v3899_v6 = vsub.f32 %v7523_v36, %v6435_v5 }
0x2887   :  { %3901 = vrot.lane.b32.xlu1 %v3899_v6, %s6725_s16 }
0x28cb   :  { %v3999_v8 = vpop.permute.xlu0 %3998 }
0x28cc   :  { %v4001_v9 = vadd.f32 %v7385_v49, %v3999_v8 }
0x28ce   :  { %6436 = vtanh.f32 %v4001_v9 }
0x28d8   :  { %v6437_v10 = vpop.eup %6436 }
0x28d9   :  { %v4003_v11 = vsub.f32 %v7527_v38, %v6437_v10 }
0x28db   :  { %4005 = vrot.lane.b32.xlu0 %v4003_v11, %s6725_s16 }
0x28f9   :  { %v3902_v12 = vpop.permute.xlu1 %3901 }
0x28fa   :  { %v3904_v14 = vmul.f32 %v6429_v55, %v3902_v12 }
0x28fc   :  { %3906 = vrot.lane.b32.xlu1 %v3904_v14, %s6726_s18 }
0x294d   :  { %v4006_v15 = vpop.permute.xlu0 %4005 }
0x294e   :  { %v4008_v16 = vmul.f32 %v6433_v61, %v4006_v15 }
0x2950   :  { %4010 = vrot.lane.b32.xlu0 %v4008_v16, %s6726_s18 }
0x296e   :  { %v3907_v19 = vpop.permute.xlu1 %3906 }
0x296f   :  { %v7567_v20 = vadd.f32 %v6435_v5, %v3907_v19 }
0x2971   :  { %3911 = vrot.lane.b32.xlu1 %v7567_v20, %s6724_s0 }
0x29c2   :  { %v4011_v21 = vpop.permute.xlu0 %4010 }
0x29c3   :  { %v7571_v24 = vadd.f32 %v6437_v10, %v4011_v21 }
0x29c5   :  { %4016 = vrot.lane.b32.xlu0 %v7571_v24, %s6724_s0 }
0x29e3   :  { %v3912_v25 = vpop.permute.xlu1 %3911 }
0x29e4   :  { %3914 = vst.msk [vmem:[#allocation4 + $0x18] sm:$0xff] %vm349_vm3, %v3912_v25  ;;  %5866 = vmatmul.mubr.msk.f32.vlgmr.msra.gmra.mrb[52].mxu1 %vm349_vm3, %v3912_v25 }
0x29e5   :  { %6233 = vmatpush3.bf16.msra.mxu1 %v6993_v7  ;;  %5887 = vmatprep.mubr.msk.f32.mxu1 %vm6722_vm0, %v6723_v1 }
0x29e6   :  { %6234 = vmatprep.subr.bf16.mxu1 %v6721_v0 }
0x29e9   :  { %6236 = vmatpush3.bf16.msra.mxu1 %v6998_v13 }
0x29ea   :  { %6243 = vmatprep.subr.bf16.mxu1 %v6721_v0 }
0x2a37   :  { %v4017_v26 = vpop.permute.xlu0 %4016 }
0x2a38   :  { %5855 = vmatmul.mubr.msk.f32.vlgmr.msra.gmra.mrb[46].mxu0 %vm349_vm3, %v4017_v26 }
0x2a39   :  { %6227 = vmatpush3.bf16.msra.mxu0 %v6927_v18  ;;  %5876 = vmatprep.mubr.msk.f32.mxu0 %vm6722_vm0, %v6723_v1 }
0x2a3a   :  { %6228 = vmatprep.subr.bf16.mxu0 %v6721_v0 }
0x2a3d   :  { %6230 = vmatpush3.bf16.msra.mxu0 %v6945_v23 }
0x2a3e   :  { %6237 = vmatprep.subr.bf16.mxu0 %v6721_v0 }
0x2a40   :  { %5877 = vmatmul.mubr.msk.f32.vlgmr.msra.gmra.mrb[48].mxu0 %vm349_vm3, %v4017_v26 }
0x2a41   :  { %6239 = vmatpush3.bf16.msra.mxu0 %v7010_v17  ;;  %5898 = vmatprep.mubr.msk.f32.mxu0 %vm6722_vm0, %v6723_v1 }
0x2a42   :  { %6240 = vmatprep.subr.bf16.mxu0 %v6721_v0 }
0x2a45   :  { %6242 = vmatpush3.bf16.msra.mxu0 %v7020_v22 }
0x2a46   :  { %6249 = vmatprep.subr.bf16.mxu0 %v6721_v0 }
0x2ab7   :  { %v4158_v27 = vpop.f32.mrb[52].mxu1 }
0x2ab8   :  { %v4159_v28 = vadd.f32 %v7374_v32, %v4158_v27  ;;  %v5867_v29 = vpop.f32.mrb[53].mxu1 }
0x2aba   :  { %4170 = vrot.lane.b32.xlu1 %v4159_v28, %s6724_s0 }
0x2b0b   :  { %v4086_v45 = vpop.f32.mrb[46].mxu0 }
0x2b0c   :  { %v4087_v34 = vadd.f32 %v4086_v45, %v4014_v31  ;;  %v5856_v35 = vpop.f32.mrb[47].mxu0 }
0x2b0e   :  { %v4162_v36 = vadd.f32 %v4159_v28, %v4087_v34 }
0x2b10   :  { %v5084_v37 = vmul.f32 -1.442695, %v4162_v36 }
0x2b12   :  { %6438 = vpow2.f32 %v5084_v37 }
0x2b13   :  { %v4262_v38 = vpop.f32.mrb[48].mxu0 }
0x2b14   :  { %v4263_v40 = vadd.f32 %v7599_v39, %v4262_v38  ;;  %v5878_v41 = vpop.f32.mrb[49].mxu0 }
0x2b16   :  { %4274 = vrot.lane.b32.xlu0 %v4263_v40, %s6724_s0  ;;  %v4266_v47 = vadd.f32 %v7385_v49, %v4263_v40 }
0x2b18   :  { %v5086_v48 = vmul.f32 -1.442695, %v4266_v47 }
0x2b1c   :  { %v6439_v42 = vpop.eup %6438 }
0x2b1d   :  { %v4166_v30 = vadd.f32 1.0, %v6439_v42 }
0x2b1f   :  { %6440 = vrcp.f32 %v4166_v30 }
0x2b20   :  { %6442 = vpow2.f32 %v5086_v48 }
0x2b29   :  { %v6441_v43 = vpop.eup %6440 }
0x2b2a   :  { %v6443_v50 = vpop.eup %6442 }
0x2b2b   :  { %v4270_v51 = vadd.f32 1.0, %v6443_v50 }
0x2b2c   :  { %v4171_v44 = vpop.permute.xlu1 %4170 }
0x2b2d   :  { %v4173_v46 = vmul.f32 %v6441_v43, %v4171_v44  ;;  %6444 = vrcp.f32 %v4270_v51  ;;  %v4765_v51 = vld [vmem:[%s7774_s12] sm:$0xff] }
0x2b2f   :  { %4175 = vrot.lane.b32.xlu1 %v4173_v46, %s6724_s0 }
0x2b37   :  { %v6445_v33 = vpop.eup %6444 }
0x2b88   :  { %v4275_v52 = vpop.permute.xlu0 %4274 }
0x2b89   :  { %v4277_v53 = vmul.f32 %v6445_v33, %v4275_v52 }
0x2b8b   :  { %4279 = vrot.lane.b32.xlu0 %v4277_v53, %s6724_s0  ;;  %v4767_v53 = vld [vmem:[%s7774_s12 + $0x10] sm:$0xff] }
0x2ba1   :  { %v4176_v54 = vpop.permute.xlu1 %4175 }
0x2ba2   :  { %v4178_v55 = vadd.f32 %v4176_v54, %v4087_v34  ;;  %v4768_v54 = vld [vmem:[%s7774_s12 + $0x18] sm:$0xff] }
0x2ba4   :  { %6446 = vtanh.f32 %v4178_v55 }
0x2bae   :  { %v6447_v56 = vpop.eup %6446 }
0x2baf   :  { %v4180_v3 = vsub.f32 %v7567_v20, %v6447_v56 }
0x2bb1   :  { %4182 = vrot.lane.b32.xlu1 %v4180_v3, %s6725_s16 }
0x2bfd   :  { %v4280_v57 = vpop.permute.xlu0 %4279 }
0x2bfe   :  { %v4282_v58 = vadd.f32 %v7385_v49, %v4280_v57 }
0x2c00   :  { %6448 = vtanh.f32 %v4282_v58 }
0x2c0a   :  { %v6449_v59 = vpop.eup %6448 }
0x2c0b   :  { %v4284_v60 = vsub.f32 %v7571_v24, %v6449_v59 }
0x2c0d   :  { %4286 = vrot.lane.b32.xlu0 %v4284_v60, %s6725_s16  ;;  %v4759_v60 = vld [vmem:[#allocation4 + $0x8] sm:$0xff] }
0x2c23   :  { %v4183_v61 = vpop.permute.xlu1 %4182 }
0x2c24   :  { %v4185_v62 = vmul.f32 %v6441_v43, %v4183_v61  ;;  %v4760_v61 = vld [vmem:[#allocation4 + $0x10] sm:$0xff] }
0x2c26   :  { %4187 = vrot.lane.b32.xlu1 %v4185_v62, %s6726_s18 }
0x2c7f   :  { %v4287_v63 = vpop.permute.xlu0 %4286 }
0x2c80   :  { %v4289_v2 = vmul.f32 %v6445_v33, %v4287_v63  ;;  %v4766_v33 = vld [vmem:[%s7774_s12 + $0x8] sm:$0xff]  ;;  %v6500_v63 = vld [vmem:[#allocation17] ss:$0 sm:$0xff] }
0x2c81   :  { %v6262_v52 = vpack.c.bf16 %v4766_v33, %v4765_v51 }
0x2c82   :  { %4291 = vrot.lane.b32.xlu0 %v4289_v2, %s6726_s18 }
0x2c98   :  { %v4188_v4 = vpop.permute.xlu1 %4187 }
0x2c99   :  { %v7613_v5 = vadd.f32 %v6447_v56, %v4188_v4  ;;  %v6265_v56 = vpack.c.bf16 %v4768_v54, %v4767_v53 }
0x2c9b   :  { %4192 = vrot.lane.b32.xlu1 %v7613_v5, %s6724_s0 }
0x2cf4   :  { %v4292_v6 = vpop.permute.xlu0 %4291 }
0x2cf5   :  { %v7617_v8 = vadd.f32 %v6449_v59, %v4292_v6  ;;  %v4758_v59 = vld [vmem:[#allocation4] sm:$0xff] }
0x2cf7   :  { %4297 = vrot.lane.b32.xlu0 %v7617_v8, %s6724_s0 }
0x2d0d   :  { %v4193_v9 = vpop.permute.xlu1 %4192 }
0x2d0e   :  { %4195 = vst.msk [vmem:[#allocation4 + $0x20] sm:$0xff] %vm349_vm3, %v4193_v9  ;;  %5899 = vmatmul.mubr.msk.f32.vlgmr.msra.gmra.mrb[50].mxu0 %vm349_vm3, %v4193_v9 }
0x2d0f   :  { %6251 = vmatpush3.bf16.msra.mxu0 %v6993_v7  ;;  %5920 = vmatprep.mubr.msk.f32.mxu0 %vm6722_vm0, %v6723_v1 }
0x2d10   :  { %6252 = vmatprep.subr.bf16.mxu0 %v6721_v0 }
0x2d13   :  { %6254 = vmatpush3.bf16.msra.mxu0 %v6998_v13 }
0x2d14   :  { %6261 = vmatprep.subr.bf16.mxu0 %v6721_v0 }
0x2d15   :  { %v4762_v3 = vld [vmem:[#allocation4 + $0x20] sm:$0xff] }
0x2d69   :  { %v4298_v10 = vpop.permute.xlu0 %4297 }
0x2d6a   :  { %5888 = vmatmul.mubr.msk.f32.vlgmr.msra.gmra.mrb[54].mxu1 %vm349_vm3, %v4298_v10 }
0x2d6b   :  { %6245 = vmatpush3.bf16.msra.mxu1 %v6927_v18  ;;  %5909 = vmatprep.mubr.msk.f32.mxu1 %vm6722_vm0, %v6723_v1 }
0x2d6c   :  { %6246 = vmatprep.subr.bf16.mxu1 %v6721_v0 }
0x2d6f   :  { %6248 = vmatpush3.bf16.msra.mxu1 %v6945_v23  ;;  %v4295_v23 = vld [vmem:[#allocation3 + $0x28] sm:$0xff] }
0x2d70   :  { %6255 = vmatprep.subr.bf16.mxu1 %v6721_v0 }
0x2d72   :  { %5910 = vmatmul.mubr.msk.f32.vlgmr.msra.gmra.mrb[56].mxu1 %vm349_vm3, %v4298_v10  ;;  %v4576_v10 = vld [vmem:[#allocation3 + $0x30] sm:$0xff] }
0x2d73   :  { %6257 = vmatpush3.bf16.msra.mxu1 %v7010_v17  ;;  %5931 = vmatprep.mubr.msk.f32.mxu1 %vm6722_vm0, %v6723_v1 }
0x2d74   :  { %6258 = vmatprep.subr.bf16.mxu1 %v6721_v0 }
0x2d77   :  { %6260 = vmatpush3.bf16.msra.mxu1 %v7020_v22 }
0x2d78   :  { %6267 = vmatprep.subr.bf16.mxu1 %v6721_v0 }
0x2de1   :  { %v4439_v18 = vpop.f32.mrb[50].mxu0 }
0x2de2   :  { %v4440_v7 = vadd.f32 %v7374_v32, %v4439_v18  ;;  %v5900_v13 = vpop.f32.mrb[51].mxu0 }
0x2de4   :  { %4451 = vrot.lane.b32.xlu1 %v4440_v7, %s6724_s0 }
0x2e3d   :  { %v4367_v11 = vpop.f32.mrb[54].mxu1 }
0x2e3e   :  { %v4368_v12 = vadd.f32 %v4367_v11, %v4295_v23  ;;  %v5889_v14 = vpop.f32.mrb[55].mxu1 }
0x2e40   :  { %v4443_v17 = vadd.f32 %v4440_v7, %v4368_v12 }
0x2e42   :  { %v5089_v15 = vmul.f32 -1.442695, %v4443_v17 }
0x2e44   :  { %6450 = vpow2.f32 %v5089_v15 }
0x2e45   :  { %v4543_v16 = vpop.f32.mrb[56].mxu1 }
0x2e46   :  { %v4544_v19 = vadd.f32 %v7599_v39, %v4543_v16  ;;  %v5911_v20 = vpop.f32.mrb[57].mxu1 }
0x2e48   :  { %4555 = vrot.lane.b32.xlu0 %v4544_v19, %s6724_s0  ;;  %v4547_v26 = vadd.f32 %v7385_v49, %v4544_v19 }
0x2e4a   :  { %v5091_v27 = vmul.f32 -1.442695, %v4547_v26 }
0x2e4e   :  { %v6451_v22 = vpop.eup %6450 }
0x2e4f   :  { %v4447_v21 = vadd.f32 1.0, %v6451_v22 }
0x2e51   :  { %6452 = vrcp.f32 %v4447_v21 }
0x2e52   :  { %6454 = vpow2.f32 %v5091_v27 }
0x2e56   :  { %v4452_v32 = vpop.permute.xlu1 %4451 }
0x2e5b   :  { %v6453_v24 = vpop.eup %6452 }
0x2e5c   :  { %v4454_v25 = vmul.f32 %v6453_v24, %v4452_v32  ;;  %v6455_v28 = vpop.eup %6454 }
0x2e5d   :  { %v4551_v29 = vadd.f32 1.0, %v6455_v28 }
0x2e5e   :  { %4456 = vrot.lane.b32.xlu1 %v4454_v25, %s6724_s0 }
0x2e5f   :  { %6456 = vrcp.f32 %v4551_v29 }
0x2e69   :  { %v6457_v31 = vpop.eup %6456 }
0x2eba   :  { %v4556_v45 = vpop.permute.xlu0 %4555 }
0x2ebb   :  { %v4558_v34 = vmul.f32 %v6457_v31, %v4556_v45 }
0x2ebd   :  { %4560 = vrot.lane.b32.xlu0 %v4558_v34, %s6724_s0  ;;  %v7707_v34 = vld [vmem:[%s7775_s13] ss:$0 sm:$0xff]  ;;  %s6727_s13 = smov [#allocation19]  }
0x2ed0   :  { %v4457_v35 = vpop.permute.xlu1 %4456 }
0x2ed1   :  { %v4459_v36 = vadd.f32 %v4457_v35, %v4368_v12 }
0x2ed3   :  { %6458 = vtanh.f32 %v4459_v36 }
0x2edd   :  { %v6459_v37 = vpop.eup %6458 }
0x2ede   :  { %v4461_v38 = vsub.f32 %v7613_v5, %v6459_v37 }
0x2ee0   :  { %4463 = vrot.lane.b32.xlu1 %v4461_v38, %s6725_s16 }
0x2f2f   :  { %v4561_v39 = vpop.permute.xlu0 %4560 }
0x2f30   :  { %v4563_v40 = vadd.f32 %v7385_v49, %v4561_v39 }
0x2f32   :  { %6460 = vtanh.f32 %v4563_v40 }
0x2f3c   :  { %v6461_v41 = vpop.eup %6460 }
0x2f3d   :  { %v4565_v42 = vsub.f32 %v7617_v8, %v6461_v41 }
0x2f3f   :  { %4567 = vrot.lane.b32.xlu0 %v4565_v42, %s6725_s16 }
0x2f52   :  { %v4464_v30 = vpop.permute.xlu1 %4463 }
0x2f53   :  { %v4466_v43 = vmul.f32 %v6453_v24, %v4464_v30 }
0x2f55   :  { %4468 = vrot.lane.b32.xlu1 %v4466_v43, %s6726_s18 }
0x2fb1   :  { %v4568_v44 = vpop.permute.xlu0 %4567 }
0x2fb2   :  { %v4570_v46 = vmul.f32 %v6457_v31, %v4568_v44 }
0x2fb4   :  { %4572 = vrot.lane.b32.xlu0 %v4570_v46, %s6726_s18 }
0x2fc7   :  { %v4469_v47 = vpop.permute.xlu1 %4468 }
0x2fc8   :  { %v7657_v48 = vadd.f32 %v6459_v37, %v4469_v47 }
0x2fca   :  { %4473 = vrot.lane.b32.xlu1 %v7657_v48, %s6724_s0 }
0x3026   :  { %v4573_v49 = vpop.permute.xlu0 %4572 }
0x3027   :  { %v4575_v50 = vadd.f32 %v6461_v41, %v4573_v49 }
0x3029   :  { %4578 = vrot.lane.b32.xlu0 %v4575_v50, %s6724_s0 }
0x303c   :  { %v4474_v55 = vpop.permute.xlu1 %4473 }
0x303d   :  { %4476 = vst.msk [vmem:[#allocation4 + $0x28] sm:$0xff] %vm349_vm3, %v4474_v55  ;;  %5932 = vmatmul.mubr.msk.f32.vlgmr.msra.gmra.mrb[58].mxu1 %vm349_vm3, %v4474_v55 }
0x303e   :  { %6269 = vmatpush3.bf16.msra.mxu1 %v6262_v52  ;;  %5954 = vmatprep.mubr.msk.f32.mxu1 %vm6722_vm0, %v6723_v1 }
0x303f   :  { %6268 = vmatprep.subr.bf16.mxu1 %v6721_v0 }
0x3042   :  { %6270 = vmatpush3.bf16.msra.mxu1 %v6265_v56 }
0x3044   :  { %v4763_v57 = vld [vmem:[#allocation4 + $0x28] sm:$0xff] }
0x3045   :  { %5955 = vmatmul.mubr.msk.f32.vlgmr.msra.gmra.mrb[60].mxu1 %vm349_vm3, %v4762_v3 }
0x3046   :  { %5957 = vmatprep.mubr.msk.f32.mxu1 %vm6722_vm0, %v6723_v1 }
0x3049   :  { %5958 = vmatmul.mubr.msk.f32.gmra.mrb[62].mxu1 %vm349_vm3, %v4763_v57 }
0x304a   :  { %5960 = vmatprep.mubr.msk.f32.mxu1 %vm6722_vm0, %v6723_v1 }
0x309b   :  { %v4579_v58 = vpop.permute.xlu0 %4578 }
0x309c   :  { %5921 = vmatmul.mubr.msk.f32.vlgmr.msra.gmra.mrb[52].mxu0 %vm349_vm3, %v4579_v58 }
0x309d   :  { %6263 = vmatpush3.bf16.msra.mxu0 %v6262_v52  ;;  %5942 = vmatprep.mubr.msk.f32.mxu0 %vm6722_vm0, %v6723_v1 }
0x309e   :  { %6264 = vmatprep.subr.bf16.mxu0 %v6721_v0  ;;  %v4761_v0 = vld [vmem:[#allocation4 + $0x18] sm:$0xff] }
0x30a1   :  { %6266 = vmatpush3.bf16.msra.mxu0 %v6265_v56 }
0x30a4   :  { %5943 = vmatmul.mubr.msk.f32.vlgmr.msra.gmra.mrb[54].mxu0 %vm349_vm3, %v4758_v59 }
0x30a5   :  { %5945 = vmatprep.mubr.msk.f32.mxu0 %vm6722_vm0, %v6723_v1 }
0x30a8   :  { %5946 = vmatmul.mubr.msk.f32.gmra.mrb[56].mxu0 %vm349_vm3, %v4759_v60 }
0x30a9   :  { %5948 = vmatprep.mubr.msk.f32.mxu0 %vm6722_vm0, %v6723_v1 }
0x30ac   :  { %5949 = vmatmul.mubr.msk.f32.gmra.mrb[58].mxu0 %vm349_vm3, %v4760_v61 }
0x30ad   :  { %5951 = vmatprep.mubr.msk.f32.mxu0 %vm6722_vm0, %v6723_v1 }
0x30b0   :  { %5952 = vmatmul.mubr.msk.f32.gmra.mrb[60].mxu0 %vm349_vm3, %v4761_v0 }
0x3110   :  { %v4720_v62 = vpop.f32.mrb[58].mxu1 }
0x3111   :  { %v4721_v2 = vadd.f32 %v6500_v63, %v4720_v62  ;;  %v5933_v4 = vpop.f32.mrb[59].mxu1 }
0x3113   :  { %4732 = vrot.lane.b32.xlu1 %v4721_v2, %s6724_s0 }
0x3118   :  { %v4883_v5 = vpop.f32.mrb[60].mxu1 }
0x3119   :  { %v5956_v6 = vpop.f32.mrb[61].mxu1  ;;  %v7725_v42 = vadd.f32 %v7707_v34, %v4883_v5 }
0x311c   :  { %v4888_v8 = vpop.f32.mrb[62].mxu1 }
0x311d   :  { %v5959_v9 = vpop.f32.mrb[63].mxu1  ;;  %v7716_v38 = vadd.f32 %v7707_v34, %v4888_v8 }
0x316f   :  { %v4648_v18 = vpop.f32.mrb[52].mxu0 }
0x3170   :  { %v4649_v7 = vadd.f32 %v4648_v18, %v4576_v10  ;;  %v5922_v13 = vpop.f32.mrb[53].mxu0 }
0x3172   :  { %v4724_v23 = vadd.f32 %v4721_v2, %v4649_v7 }
0x3174   :  { %v5094_v11 = vmul.f32 -1.442695, %v4724_v23 }
0x3176   :  { %6462 = vpow2.f32 %v5094_v11 }
0x3177   :  { %v4863_v1 = vpop.f32.mrb[54].mxu0 }
0x3178   :  { %v5944_v12 = vpop.f32.mrb[55].mxu0  ;;  %v4864_v35 = vadd.f32 %v7707_v34, %v4863_v1 }
0x317b   :  { %v4868_v14 = vpop.f32.mrb[56].mxu0 }
0x317c   :  { %v5947_v17 = vpop.f32.mrb[57].mxu0  ;;  %v7721_v41 = vadd.f32 %v7707_v34, %v4868_v14 }
0x317f   :  { %v4873_v15 = vpop.f32.mrb[58].mxu0 }
0x3180   :  { %v6463_v16 = vpop.eup %6462  ;;  %v5950_v19 = vpop.f32.mrb[59].mxu0  ;;  %v4874_v36 = vadd.f32 %v7707_v34, %v4873_v15 }
0x3181   :  { %v4728_v20 = vadd.f32 1.0, %v6463_v16 }
0x3183   :  { %6464 = vrcp.f32 %v4728_v20  ;;  %v4878_v22 = vpop.f32.mrb[60].mxu0 }
0x3184   :  { %v5953_v21 = vpop.f32.mrb[61].mxu0  ;;  %v7712_v37 = vadd.f32 %v7707_v34, %v4878_v22 }
0x3185   :  { %v4733_v32 = vpop.permute.xlu1 %4732 }
0x318d   :  { %v6465_v24 = vpop.eup %6464 }
0x318e   :  { %v4735_v25 = vmul.f32 %v6465_v24, %v4733_v32 }
0x3190   :  { %4737 = vrot.lane.b32.xlu0 %v4735_v25, %s6724_s0 }
0x3202   :  { %v4738_v26 = vpop.permute.xlu0 %4737 }
0x3203   :  { %v4740_v27 = vadd.f32 %v4738_v26, %v4649_v7 }
0x3205   :  { %6466 = vtanh.f32 %v4740_v27 }
0x320f   :  { %v6467_v28 = vpop.eup %6466 }
0x3210   :  { %v4742_v29 = vsub.f32 %v7657_v48, %v6467_v28 }
0x3212   :  { %4744 = vrot.lane.b32.xlu1 %v4742_v29, %s6725_s16 }
0x3284   :  { %v4745_v31 = vpop.permute.xlu1 %4744 }
0x3285   :  { %v4747_v45 = vmul.f32 %v6465_v24, %v4745_v31 }
0x3287   :  { %4749 = vrot.lane.b32.xlu0 %v4747_v45, %s6726_s18 }
0x32a6   :  { %4897 = vmax.xlane.f32.xlu0 %v4864_v35 }
0x32aa   :  { %4901 = vmax.xlane.f32.xlu0 %v4874_v36 }
0x32ae   :  { %4903 = vmax.xlane.f32.xlu0 %v7712_v37 }
0x32b2   :  { %4907 = vmax.xlane.f32.xlu0 %v7716_v38 }
0x32f9   :  { %v4750_v39 = vpop.permute.xlu0 %4749 }
0x32fa   :  { %v4752_v40 = vadd.f32 %v6467_v28, %v4750_v39 }
0x32fc   :  { %4754 = vrot.lane.b32.xlu1 %v4752_v40, %s6724_s0  ;;  %s4986_s0 = sshll.u32 %s6727_s13, 4  ;;  %s4987_s0 = int_to_ptr.vmem [resolvable:$true] %s4986_s0 }
0x32fd   :  { %s6677_s16 = scalar_lea.vmem %s4987_s0, 896  ;;  %p6682_p9 = scmp.lt.s32.totalorder %s4987_s0, %s4987_s0 }
0x32fe   :  { %p6678_p8 = scmp.ne.s32.totalorder %s4987_s0, %s6677_s16  ;;  %p6683_p10 = scmp.lt.s32.totalorder %s6677_s16, %s6677_s16 }
0x3300   :  { %p6684_p11 = por %p6683_p10, %p6682_p9 }
0x3302   :  { %p6685_p12 = pnand %p6684_p11, %p6678_p8 }
0x3320   :  { %4899 = vmax.xlane.f32.xlu1 %v7721_v41 }
0x3324   :  { %4905 = vmax.xlane.f32.xlu1 %v7725_v42 }
0x3333   :  { %v4898_v30 = vpop.xlane.xlu0 %4897 }
0x3334   :  { %v4911_v43 = vsub.f32 %v4864_v35, %v4898_v30 }
0x3336   :  { %v4918_v44 = vmul.f32 1.442695, %v4911_v43 }
0x3337   :  { %v4902_v46 = vpop.xlane.xlu0 %4901 }
0x3338   :  { %6468 = vpow2.f32 %v4918_v44  ;;  %v4913_v47 = vsub.f32 %v4874_v36, %v4902_v46 }
0x333a   :  { %v4922_v48 = vmul.f32 1.442695, %v4913_v47 }
0x333b   :  { %v4904_v3 = vpop.xlane.xlu0 %4903 }
0x333c   :  { %6470 = vpow2.f32 %v4922_v48  ;;  %v4914_v8 = vsub.f32 %v7712_v37, %v4904_v3 }
0x333e   :  { %v4924_v10 = vmul.f32 1.442695, %v4914_v8 }
0x333f   :  { %v7733_v57 = vpop.xlane.xlu0 %4907 }
0x3340   :  { %v4916_v18 = vsub.f32 %v7716_v38, %v7733_v57 }
0x3342   :  { %v6469_v49 = vpop.eup %6468  ;;  %v4928_v7 = vmul.f32 1.442695, %v4916_v18 }
0x3343   :  { %4932 = vadd.xlane.f32.xlu0 %v6469_v49 }
0x3346   :  { %v6471_v50 = vpop.eup %6470 }
0x3347   :  { %4936 = vadd.xlane.f32.xlu0 %v6471_v50 }
0x336e   :  { %v4755_v51 = vpop.permute.xlu1 %4754 }
0x336f   :  { %4757 = vst.msk [vmem:[#allocation4 + $0x30] sm:$0xff] %vm349_vm3, %v4755_v51 }
0x3376   :  { %v4764_v33 = vld [vmem:[#allocation4 + $0x30] sm:$0xff] }
0x3377   :  { %5961 = vmatmul.mubr.msk.f32.gmra.mrb[64].mxu1 %vm349_vm3, %v4764_v33 }
0x33ad   :  { %v7730_v52 = vpop.xlane.xlu1 %4899 }
0x33ae   :  { %v4912_v6 = vsub.f32 %v7721_v41, %v7730_v52 }
0x33b0   :  { %v4920_v9 = vmul.f32 1.442695, %v4912_v6 }
0x33b1   :  { %v4906_v53 = vpop.xlane.xlu1 %4905 }
0x33b2   :  { %v4915_v54 = vsub.f32 %v7725_v42, %v4906_v53 }
0x33b4   :  { %v4926_v55 = vmul.f32 1.442695, %v4915_v54 }
0x33b6   :  { %6472 = vpow2.f32 %v4926_v55 }
0x33c0   :  { %v6473_v56 = vpop.eup %6472 }
0x33c1   :  { %4940 = vadd.xlane.f32.xlu0 %v6473_v56 }
0x33d0   :  { %v4933_v58 = vpop.xlane.xlu0 %4932 }
0x33d1   :  { %6474 = vlog2.f32 %v4933_v58 }
0x33d4   :  { %v4937_v59 = vpop.xlane.xlu0 %4936 }
0x33d5   :  { %6476 = vlog2.f32 %v4937_v59 }
0x33d6   :  { %6478 = vpow2.f32 %v4920_v9 }
0x33d7   :  { %6480 = vpow2.f32 %v4924_v10 }
0x33d8   :  { %6482 = vpow2.f32 %v4928_v7 }
0x33db   :  { %v6475_v60 = vpop.eup %6474 }
0x33dc   :  { %v4947_v61 = vmul.f32 0.6931472, %v6475_v60 }
0x33de   :  { %v4960_v0 = vadd.f32 %v4947_v61, %v4898_v30 }
0x33df   :  { %v6477_v62 = vpop.eup %6476 }
0x33e0   :  { %v4967_v63 = vsub.f32 %v4864_v35, %v4960_v0  ;;  %v4951_v2 = vmul.f32 0.6931472, %v6477_v62  ;;  %v6479_v12 = vpop.eup %6478 }
0x33e1   :  { %v6481_v14 = vpop.eup %6480 }
0x33e2   :  { %4974 = vst [vmem:[#allocation19] sm:$0xff] %v4967_v63  ;;  %v4962_v4 = vadd.f32 %v4951_v2, %v4902_v46  ;;  %v6483_v17 = vpop.eup %6482 }
0x33e4   :  { %v4969_v5 = vsub.f32 %v4874_v36, %v4962_v4 }
0x33e6   :  { %4976 = vst [vmem:[#allocation19 + $0x10] sm:$0xff] %v4969_v5 }
0x344a   :  { %v4893_v13 = vpop.f32.mrb[64].mxu1 }
0x344b   :  { %v4894_v23 = vadd.f32 %v7707_v34, %v4893_v13  ;;  %v5962_v11 = vpop.f32.mrb[65].mxu1 }
0x344d   :  { %4909 = vmax.xlane.f32.xlu1 %v4894_v23 }
0x344e   :  { %v4941_v1 = vpop.xlane.xlu0 %4940 }
0x344f   :  { %6484 = vlog2.f32 %v4941_v1 }
0x3451   :  { %4934 = vadd.xlane.f32.xlu1 %v6479_v12 }
0x3455   :  { %4938 = vadd.xlane.f32.xlu1 %v6481_v14 }
0x3459   :  { %v6485_v15 = vpop.eup %6484  ;;  %4942 = vadd.xlane.f32.xlu1 %v6483_v17 }
0x345a   :  { %v4955_v16 = vmul.f32 0.6931472, %v6485_v15 }
0x345c   :  { %v4964_v19 = vadd.f32 %v4955_v16, %v4906_v53 }
0x345e   :  { %v4971_v20 = vsub.f32 %v7725_v42, %v4964_v19 }
0x3460   :  { %4978 = vst [vmem:[#allocation19 + $0x20] sm:$0xff] %v4971_v20 }
0x34da   :  { %v4910_v22 = vpop.xlane.xlu1 %4909 }
0x34db   :  { %v4917_v21 = vsub.f32 %v4894_v23, %v4910_v22 }
0x34dd   :  { %v4930_v32 = vmul.f32 1.442695, %v4917_v21 }
0x34de   :  { %v4935_v24 = vpop.xlane.xlu1 %4934 }
0x34df   :  { %6486 = vpow2.f32 %v4930_v32 }
0x34e0   :  { %6488 = vlog2.f32 %v4935_v24 }
0x34e2   :  { %v4939_v25 = vpop.xlane.xlu1 %4938 }
0x34e3   :  { %6490 = vlog2.f32 %v4939_v25 }
0x34e6   :  { %v4943_v26 = vpop.xlane.xlu1 %4942 }
0x34e7   :  { %6492 = vlog2.f32 %v4943_v26 }
0x34e9   :  { %v6487_v27 = vpop.eup %6486 }
0x34ea   :  { %v6489_v28 = vpop.eup %6488  ;;  %4944 = vadd.xlane.f32.xlu0 %v6487_v27 }
0x34eb   :  { %v4949_v29 = vmul.f32 0.6931472, %v6489_v28 }
0x34ed   :  { %v6491_v31 = vpop.eup %6490  ;;  %v4961_v45 = vadd.f32 %v4949_v29, %v7730_v52 }
0x34ee   :  { %v4953_v34 = vmul.f32 0.6931472, %v6491_v31 }
0x34ef   :  { %v4968_v35 = vsub.f32 %v7721_v41, %v4961_v45 }
0x34f0   :  { %v4963_v36 = vadd.f32 %v4953_v34, %v4904_v3 }
0x34f1   :  { %v6493_v39 = vpop.eup %6492  ;;  %4975 = vst [vmem:[#allocation19 + $0x8] sm:$0xff] %v4968_v35 }
0x34f2   :  { %v4970_v40 = vsub.f32 %v7712_v37, %v4963_v36  ;;  %v4957_v42 = vmul.f32 0.6931472, %v6493_v39 }
0x34f4   :  { %4977 = vst [vmem:[#allocation19 + $0x18] sm:$0xff] %v4970_v40  ;;  %v4965_v30 = vadd.f32 %v4957_v42, %v7733_v57 }
0x34f6   :  { %v4972_v43 = vsub.f32 %v7716_v38, %v4965_v30 }
0x34f8   :  { %4979 = vst [vmem:[#allocation19 + $0x28] sm:$0xff] %v4972_v43 }
0x3577   :  { %v4945_v44 = vpop.xlane.xlu0 %4944 }
0x3578   :  { %6494 = vlog2.f32 %v4945_v44 }
0x3582   :  { %v6495_v46 = vpop.eup %6494 }
0x3583   :  { %v4959_v47 = vmul.f32 0.6931472, %v6495_v46 }
0x3585   :  { %v4966_v48 = vadd.f32 %v4959_v47, %v4910_v22 }
0x3587   :  { %v4973_v41 = vsub.f32 %v4894_v23, %v4966_v48 }
0x3589   :  { %4980 = vst [vmem:[#allocation19 + $0x30] sm:$0xff] %v4973_v41 }
0x358a   :  { %6688 = shalt.err (!%p6685_p12)
}
0x358b   :  { %s6689_s17 = scalar_lea.hbm %s7776_s14, 896 }
0x358c   :  { %p6690_p13 = scmp.ne.s32.totalorder %s7776_s14, %s6689_s17  ;;  %p6693_p0 = scmp.lt.u32.totalorder %s6689_s17, %s7776_s14 }
0x358e   :  { %p6695_p1 = pnand %p6693_p0, %p6690_p13 }
0x3590   :  { %6698 = shalt.err (!%p6695_p1)
}
0x3591   :  { %4992 = dma.vmem_to_hbm [thread:$0]  %s4987_s0, 896, %s7776_s14, [#allocation7], %s6712_s23, %s6712_s23, %s6713_s24  }
0x3592   :  { %6709 = dma.done.wait [#allocation7], 896  }
0x3593   :  { %6710 = vsyncadd [#allocation7], 4294966400 }
0x3594   :  { %4996 = vsyncpa [#allocation6], 1 }
0x3595   :  { %4997 = vsyncpa [#allocation9], 1 }
0x3596   :  { %4998 = vsyncpa [#allocation12], 1 }
0x3597   :  { %4999 = vsyncpa [#allocation15], 1 }
0x3598   :  { %5000 = vsyncpa [#allocation18], 1 }
0x3599   :  { %5001 = vsyncpa [#allocation7], 1 }

</bundles_post_ra>
